<compile_context>
chip_gen: v7x
topology: tpu7x:2x2x1
jax: 0.10.0
libtpu: 0.0.40
codegen_flags: <defaults>
</compile_context>

<pallas_src>
import jax
import jax.numpy as jnp
from jax import lax
from jax.experimental import pallas as pl
from jax.experimental.pallas import tpu as pltpu

EPS = 1e-5


# ----------------------------------------------------------------------------
# Pallas kernel factory: one fused conv layer, one batch sample per grid step.
#   p_ref : (1, K, HW)   im2col patches, K = kh*kw*Cin, HW = Ho*Wo (lanes)
#   w_ref : (Cout, K)    weight matrix
#   b_ref : (Cout, 1)    optional bias
#   sc/sh : (Cout, 1)    folded BatchNorm scale/shift (inference mode)
#   r_ref : (1, Cout, HW) optional residual (ResnetBlock input)
#   o_ref : (1, Cout, HW)
# ----------------------------------------------------------------------------
def _make_layer_kernel(has_bias, norm, act, has_res):
    def kernel(*refs):
        i = 0
        p_ref = refs[i]; i += 1
        w_ref = refs[i]; i += 1
        b_ref = None
        if has_bias:
            b_ref = refs[i]; i += 1
        sc_ref = sh_ref = None
        if norm == "affine":
            sc_ref = refs[i]; sh_ref = refs[i + 1]; i += 2
        r_ref = None
        if has_res:
            r_ref = refs[i]; i += 1
        o_ref = refs[i]

        # (Cout, K) @ (K, HW) -> (Cout, HW): pixels on the 128-lane axis.
        z = jnp.dot(w_ref[...], p_ref[0], preferred_element_type=jnp.float32)
        if has_bias:
            z = z + b_ref[...]
        if norm == "instance":
            # InstanceNorm2d: per-sample, per-channel stats over H*W (lane reduce).
            mu = jnp.mean(z, axis=1, keepdims=True)
            var = jnp.mean(jnp.square(z - mu), axis=1, keepdims=True)
            z = (z - mu) * lax.rsqrt(var + EPS)          # rsqrt -> EUP slot
        elif norm == "affine":
            # BatchNorm2d (eval mode) folded to per-channel scale/shift.
            z = z * sc_ref[...] + sh_ref[...]
        if has_res:
            z = z + r_ref[0]
        if act == "relu":
            z = jnp.maximum(z, 0.0)
        elif act == "tanh":
            z = jnp.tanh(z)                              # EUP slot
        o_ref[0] = z.astype(o_ref.dtype)

    return kernel


# ----------------------------------------------------------------------------
# Wrapper-side layout plumbing
# ----------------------------------------------------------------------------
def _im2col(x, kh, kw, stride):
    """x: (N, C, Hp, Wp) already padded; valid conv. Returns (N, kh*kw*C, Ho*Wo)."""
    n, c, hp, wp = x.shape
    ho = (hp - kh) // stride + 1
    wo = (wp - kw) // stride + 1
    taps = []
    for dy in range(kh):
        for dx in range(kw):
            taps.append(x[:, :,
                          dy:dy + stride * (ho - 1) + 1:stride,
                          dx:dx + stride * (wo - 1) + 1:stride])
    p = jnp.stack(taps, axis=1)                 # (N, kh*kw, C, Ho, Wo)
    return p.reshape(n, kh * kw * c, ho * wo), ho, wo


def _dilate2d(x, s):
    """Insert (s-1) zeros between pixels (lhs dilation for conv-transpose)."""
    if s == 1:
        return x
    n, c, h, w = x.shape
    out = jnp.zeros((n, c, (h - 1) * s + 1, (w - 1) * s + 1), x.dtype)
    return out.at[:, :, ::s, ::s].set(x)


def _convt_weight_as_conv(w_t):
    """PyTorch ConvTranspose2d weight (Cin, Cout, kh, kw) -> equivalent forward
    conv weight (Cout, Cin, kh, kw) with spatially flipped taps."""
    return jnp.transpose(jnp.flip(w_t, axis=(2, 3)), (1, 0, 2, 3))


def fused_conv_layer(x, w_oihw, *, stride=1, bias=None, norm="none", act="none",
                     bn_scale=None, bn_shift=None, residual=None):
    """x: (N, Cin, Hp, Wp) already padded as required; returns (N, Cout, Ho, Wo)."""
    n = x.shape[0]
    cout, cin, kh, kw = w_oihw.shape
    p, ho, wo = _im2col(x, kh, kw, stride)
    hw = ho * wo
    k = kh * kw * cin
    w_mat = jnp.transpose(w_oihw, (0, 2, 3, 1)).reshape(cout, k)

    has_bias = bias is not None
    has_res = residual is not None

    args = [p, w_mat]
    in_specs = [
        pl.BlockSpec((1, k, hw), lambda i: (i, 0, 0)),
        pl.BlockSpec((cout, k), lambda i: (0, 0)),
    ]
    if has_bias:
        args.append(bias.reshape(cout, 1).astype(jnp.float32))
        in_specs.append(pl.BlockSpec((cout, 1), lambda i: (0, 0)))
    if norm == "affine":
        args.append(bn_scale.reshape(cout, 1).astype(jnp.float32))
        args.append(bn_shift.reshape(cout, 1).astype(jnp.float32))
        in_specs.append(pl.BlockSpec((cout, 1), lambda i: (0, 0)))
        in_specs.append(pl.BlockSpec((cout, 1), lambda i: (0, 0)))
    if has_res:
        args.append(residual.reshape(n, cout, hw))
        in_specs.append(pl.BlockSpec((1, cout, hw), lambda i: (i, 0, 0)))

    out = pl.pallas_call(
        _make_layer_kernel(has_bias, norm, act, has_res),
        out_shape=jax.ShapeDtypeStruct((n, cout, hw), jnp.float32),
        grid=(n,),
        in_specs=in_specs,
        out_specs=pl.BlockSpec((1, cout, hw), lambda i: (i, 0, 0)),
        compiler_params=pltpu.CompilerParams(
            dimension_semantics=("parallel",),        # batch across TCs on v7x
            vmem_limit_bytes=32 * 1024 * 1024,
        ),
    )(*args)
    return out.reshape(n, cout, ho, wo)


def _bn_fold(gamma, beta, mean, var):
    scale = gamma * lax.rsqrt(var + EPS)
    return scale, beta - mean * scale


# ----------------------------------------------------------------------------
# Generator forward (Pallas path)
# ----------------------------------------------------------------------------
def _generator_forward(x, p):
    # ---------- encoder: Conv(s1) / Conv(s2) / Conv(s2), each + IN + ReLU ----------
    h = fused_conv_layer(x, p["e1_w"], stride=1, bias=p["e1_b"],
                         norm="instance", act="relu")
    h = fused_conv_layer(h, p["e2_w"], stride=2, bias=p["e2_b"],
                         norm="instance", act="relu")
    h = fused_conv_layer(h, p["e3_w"], stride=2, bias=p["e3_b"],
                         norm="instance", act="relu")

    # ---------- bottleneck: 4 x ResnetBlock(32) ----------
    # TODO(synk): BatchNorm2d is applied in inference mode (running stats folded
    # to a per-channel affine); training-mode batch statistics are not implemented.
    for b in range(4):
        res_in = h
        s1, t1 = _bn_fold(p[f"r{b}_g1"], p[f"r{b}_b1"], p[f"r{b}_m1"], p[f"r{b}_v1"])
        hp = jnp.pad(h, ((0, 0), (0, 0), (1, 1), (1, 1)), mode="reflect")
        h = fused_conv_layer(hp, p[f"r{b}_w1"], stride=1, norm="affine", act="relu",
                             bn_scale=s1, bn_shift=t1)
        s2, t2 = _bn_fold(p[f"r{b}_g2"], p[f"r{b}_b2"], p[f"r{b}_m2"], p[f"r{b}_v2"])
        hp = jnp.pad(h, ((0, 0), (0, 0), (1, 1), (1, 1)), mode="reflect")
        h = fused_conv_layer(hp, p[f"r{b}_w2"], stride=1, norm="affine", act="none",
                             bn_scale=s2, bn_shift=t2, residual=res_in)

    # ---------- decoder: ConvTranspose == zero-dilate + pad(k-1) + flipped conv ----
    w = _convt_weight_as_conv(p["d1_w"])                              # k=3, s=2
    hd = jnp.pad(_dilate2d(h, 2), ((0, 0), (0, 0), (2, 2), (2, 2)))
    h = fused_conv_layer(hd, w, stride=1, norm="instance", act="relu")

    w = _convt_weight_as_conv(p["d2_w"])                              # k=3, s=2
    hd = jnp.pad(_dilate2d(h, 2), ((0, 0), (0, 0), (2, 2), (2, 2)))
    h = fused_conv_layer(hd, w, stride=1, norm="instance", act="relu")

    w = _convt_weight_as_conv(p["d3_w"])                              # k=6, s=1
    hd = jnp.pad(h, ((0, 0), (0, 0), (5, 5), (5, 5)))
    h = fused_conv_layer(hd, w, stride=1, norm="none", act="tanh")
    return h


generator_forward = jax.jit(_generator_forward)


# ----------------------------------------------------------------------------
# Pure-JAX reference (lax convolutions) for correctness checking
# ----------------------------------------------------------------------------
def _ref_forward(x, p):
    dn = ("NCHW", "OIHW", "NCHW")

    def conv(x, w, b=None, stride=1):
        y = lax.conv_general_dilated(x, w, (stride, stride), "VALID",
                                     dimension_numbers=dn,
                                     precision=lax.Precision.HIGHEST)
        if b is not None:
            y = y + b.reshape(1, -1, 1, 1)
        return y

    def conv_t(x, w_t, stride):
        k = w_t.shape[-1]
        w = _convt_weight_as_conv(w_t)
        return lax.conv_general_dilated(x, w, (1, 1), [(k - 1, k - 1)] * 2,
                                        lhs_dilation=(stride, stride),
                                        dimension_numbers=dn,
                                        precision=lax.Precision.HIGHEST)

    def inorm(x):
        mu = x.mean((2, 3), keepdims=True)
        var = ((x - mu) ** 2).mean((2, 3), keepdims=True)
        return (x - mu) * lax.rsqrt(var + EPS)

    def bnorm(x, g, b, m, v):
        sc = (g * lax.rsqrt(v + EPS)).reshape(1, -1, 1, 1)
        sh = (b - m * g * lax.rsqrt(v + EPS)).reshape(1, -1, 1, 1)
        return x * sc + sh

    relu = lambda z: jnp.maximum(z, 0.0)

    h = relu(inorm(conv(x, p["e1_w"], p["e1_b"], 1)))
    h = relu(inorm(conv(h, p["e2_w"], p["e2_b"], 2)))
    h = relu(inorm(conv(h, p["e3_w"], p["e3_b"], 2)))
    for i in range(4):
        r = h
        hp = jnp.pad(h, ((0, 0), (0, 0), (1, 1), (1, 1)), mode="reflect")
        h = relu(bnorm(conv(hp, p[f"r{i}_w1"]), p[f"r{i}_g1"], p[f"r{i}_b1"],
                       p[f"r{i}_m1"], p[f"r{i}_v1"]))
        hp = jnp.pad(h, ((0, 0), (0, 0), (1, 1), (1, 1)), mode="reflect")
        h = r + bnorm(conv(hp, p[f"r{i}_w2"]), p[f"r{i}_g2"], p[f"r{i}_b2"],
                      p[f"r{i}_m2"], p[f"r{i}_v2"])
    h = relu(inorm(conv_t(h, p["d1_w"], 2)))
    h = relu(inorm(conv_t(h, p["d2_w"], 2)))
    return jnp.tanh(conv_t(h, p["d3_w"], 1))


ref_forward = jax.jit(_ref_forward)


# ----------------------------------------------------------------------------
# Deterministic parameter init (PyTorch layouts: Conv OIHW, ConvTranspose IOHW)
# ----------------------------------------------------------------------------
def init_params(key, gen_input_nc, image_nc):
    def nxt():
        nonlocal key
        key, sub = jax.random.split(key)
        return sub

    def conv_w(shape, fan_in):
        return jax.random.normal(nxt(), shape, jnp.float32) / jnp.sqrt(float(fan_in))

    p = {}
    # encoder
    p["e1_w"] = conv_w((8, gen_input_nc, 3, 3), gen_input_nc * 9)
    p["e1_b"] = 0.1 * jax.random.normal(nxt(), (8,), jnp.float32)
    p["e2_w"] = conv_w((16, 8, 3, 3), 8 * 9)
    p["e2_b"] = 0.1 * jax.random.normal(nxt(), (16,), jnp.float32)
    p["e3_w"] = conv_w((32, 16, 3, 3), 16 * 9)
    p["e3_b"] = 0.1 * jax.random.normal(nxt(), (32,), jnp.float32)
    # bottleneck (4 ResnetBlocks, conv bias=False; BN params as-if loaded)
    for b in range(4):
        for j in (1, 2):
            p[f"r{b}_w{j}"] = conv_w((32, 32, 3, 3), 32 * 9)
            p[f"r{b}_g{j}"] = 1.0 + 0.1 * jax.random.normal(nxt(), (32,), jnp.float32)
            p[f"r{b}_b{j}"] = 0.1 * jax.random.normal(nxt(), (32,), jnp.float32)
            p[f"r{b}_m{j}"] = 0.1 * jax.random.normal(nxt(), (32,), jnp.float32)
            p[f"r{b}_v{j}"] = 1.0 + 0.1 * jax.random.uniform(nxt(), (32,), jnp.float32)
    # decoder (ConvTranspose2d weights: (Cin, Cout, k, k), bias=False)
    p["d1_w"] = conv_w((32, 16, 3, 3), 32 * 9)
    p["d2_w"] = conv_w((16, 8, 3, 3), 16 * 9)
    p["d3_w"] = conv_w((8, image_nc, 6, 6), 8 * 36)
    return p


if __name__ == "__main__":
    key = jax.random.PRNGKey(0)
    kx, kp = jax.random.split(key)

    batch, gen_input_nc, image_nc, hw = 2, 3, 3, 32
    x = jax.random.normal(kx, (batch, gen_input_nc, hw, hw), jnp.float32)
    params = init_params(kp, gen_input_nc, image_nc)

    out = jax.block_until_ready(generator_forward(x, params))
    ref = jax.block_until_ready(ref_forward(x, params))

    assert out.shape == (batch, image_nc, hw, hw), out.shape
    assert bool(jnp.all(jnp.isfinite(out)))
    assert jnp.allclose(out, ref, atol=5e-2, rtol=5e-2), "mismatch vs lax reference"

    print("KERNEL_OK")
</pallas_src>

<mosaic_0001>
module attributes {stable_mosaic.version = 11 : i64} {
  func.func @kernel(%arg0: i32, %arg1: memref<1x27x900xf32, #tpu.memory_space<vmem>>, %arg2: memref<8x27xf32, #tpu.memory_space<vmem>>, %arg3: memref<8x1xf32, #tpu.memory_space<vmem>>, %arg4: memref<1x8x900xf32, #tpu.memory_space<vmem>>) attributes {dimension_semantics = [#tpu.dimension_semantics<parallel>], iteration_bounds = array<i64: 2>, scalar_prefetch = 0 : i64, scratch_operands = 0 : i64, tpu.core_type = #tpu.core_type<tc>, window_params = [{transform_indices = @transform_0, window_bounds = array<i64: 1, 27, 900>}, {pipeline_mode = #tpu.pipeline_mode<synchronous>, transform_indices = @transform_1, window_bounds = array<i64: 8, 27>}, {pipeline_mode = #tpu.pipeline_mode<synchronous>, transform_indices = @transform_2, window_bounds = array<i64: 8, 1>}, {transform_indices = @transform_3, window_bounds = array<i64: 1, 8, 900>}]} {
    %c0 = arith.constant 0 : index
    %c0_0 = arith.constant 0 : index
    %0 = vector.load %arg2[%c0, %c0_0] : memref<8x27xf32, #tpu.memory_space<vmem>>, vector<8x27xf32>
    %c0_1 = arith.constant 0 : index
    %c0_2 = arith.constant 0 : index
    %c0_3 = arith.constant 0 : index
    %1 = vector.load %arg1[%c0_1, %c0_2, %c0_3] : memref<1x27x900xf32, #tpu.memory_space<vmem>>, vector<1x27x900xf32>
    %2 = vector.shape_cast %1 : vector<1x27x900xf32> to vector<27x900xf32>
    %cst = arith.constant dense<0.000000e+00> : vector<8x900xf32>
    %3 = tpu.matmul %0, %2, %cst {dimension_numbers = #tpu.dot_dimension_numbers<[1], [0], [0], [1], [0, 0, 1, 1], [], []>} : vector<8x27xf32>, vector<27x900xf32>, vector<8x900xf32> -> vector<8x900xf32>
    %c0_4 = arith.constant 0 : index
    %c0_5 = arith.constant 0 : index
    %4 = vector.load %arg3[%c0_4, %c0_5] : memref<8x1xf32, #tpu.memory_space<vmem>>, vector<8x1xf32>
    %5 = vector.broadcast %4 : vector<8x1xf32> to vector<8x900xf32>
    %6 = arith.addf %3, %5 : vector<8x900xf32>
    %cst_6 = arith.constant dense<0.000000e+00> : vector<8xf32>
    %7 = vector.multi_reduction <add>, %6, %cst_6 [1] : vector<8x900xf32> to vector<8xf32>
    %8 = vector.shape_cast %7 : vector<8xf32> to vector<8x1xf32>
    %cst_7 = arith.constant 9.000000e+02 : f32
    %9 = vector.broadcast %cst_7 : f32 to vector<8x1xf32>
    %10 = arith.divf %8, %9 : vector<8x1xf32>
    %11 = vector.broadcast %10 : vector<8x1xf32> to vector<8x900xf32>
    %12 = arith.subf %6, %11 : vector<8x900xf32>
    %13 = arith.mulf %12, %12 : vector<8x900xf32>
    %cst_8 = arith.constant dense<0.000000e+00> : vector<8xf32>
    %14 = vector.multi_reduction <add>, %13, %cst_8 [1] : vector<8x900xf32> to vector<8xf32>
    %15 = vector.shape_cast %14 : vector<8xf32> to vector<8x1xf32>
    %cst_9 = arith.constant 9.000000e+02 : f32
    %16 = vector.broadcast %cst_9 : f32 to vector<8x1xf32>
    %17 = arith.divf %15, %16 : vector<8x1xf32>
    %18 = vector.broadcast %10 : vector<8x1xf32> to vector<8x900xf32>
    %19 = arith.subf %6, %18 : vector<8x900xf32>
    %cst_10 = arith.constant 9.99999974E-6 : f32
    %20 = vector.broadcast %cst_10 : f32 to vector<8x1xf32>
    %21 = arith.addf %17, %20 : vector<8x1xf32>
    %22 = math.rsqrt %21 : vector<8x1xf32>
    %23 = vector.broadcast %22 : vector<8x1xf32> to vector<8x900xf32>
    %24 = arith.mulf %19, %23 : vector<8x900xf32>
    %cst_11 = arith.constant 0.000000e+00 : f32
    %25 = vector.broadcast %cst_11 : f32 to vector<8x900xf32>
    %26 = arith.maximumf %24, %25 : vector<8x900xf32>
    %c0_12 = arith.constant 0 : index
    %c0_13 = arith.constant 0 : index
    %c0_14 = arith.constant 0 : index
    %27 = vector.load %arg4[%c0_12, %c0_13, %c0_14] : memref<1x8x900xf32, #tpu.memory_space<vmem>>, vector<1x8x900xf32>
    %28 = vector.shape_cast %27 : vector<1x8x900xf32> to vector<8x900xf32>
    %29 = vector.shape_cast %26 : vector<8x900xf32> to vector<1x8x900xf32>
    tpu.vector_store %arg4[%c0_12, %c0_13, %c0_14], %29 {strides = array<i32>} : memref<1x8x900xf32, #tpu.memory_space<vmem>>, vector<1x8x900xf32>,
    return
  }
  func.func @transform_0(%arg0: i32) -> (i32, i32, i32) {
    %c0_i32 = arith.constant 0 : i32
    %c0_i32_0 = arith.constant 0 : i32
    %c0_i32_1 = arith.constant 0 : i32
    return %arg0, %c0_i32, %c0_i32_0 : i32, i32, i32
  }
  func.func @transform_1(%arg0: i32) -> (i32, i32) {
    %c0_i32 = arith.constant 0 : i32
    %c0_i32_0 = arith.constant 0 : i32
    %c0_i32_1 = arith.constant 0 : i32
    return %c0_i32, %c0_i32_0 : i32, i32
  }
  func.func @transform_2(%arg0: i32) -> (i32, i32) {
    %c0_i32 = arith.constant 0 : i32
    %c0_i32_0 = arith.constant 0 : i32
    %c0_i32_1 = arith.constant 0 : i32
    return %c0_i32, %c0_i32_0 : i32, i32
  }
  func.func @transform_3(%arg0: i32) -> (i32, i32, i32) {
    %c0_i32 = arith.constant 0 : i32
    %c0_i32_0 = arith.constant 0 : i32
    %c0_i32_1 = arith.constant 0 : i32
    return %arg0, %c0_i32, %c0_i32_0 : i32, i32, i32
  }
}

module attributes {stable_mosaic.version = 11 : i64} {
  func.func @kernel(%arg0: i32, %arg1: memref<1x72x196xf32, #tpu.memory_space<vmem>>, %arg2: memref<16x72xf32, #tpu.memory_space<vmem>>, %arg3: memref<16x1xf32, #tpu.memory_space<vmem>>, %arg4: memref<1x16x196xf32, #tpu.memory_space<vmem>>) attributes {dimension_semantics = [#tpu.dimension_semantics<parallel>], iteration_bounds = array<i64: 2>, scalar_prefetch = 0 : i64, scratch_operands = 0 : i64, tpu.core_type = #tpu.core_type<tc>, window_params = [{transform_indices = @transform_0, window_bounds = array<i64: 1, 72, 196>}, {pipeline_mode = #tpu.pipeline_mode<synchronous>, transform_indices = @transform_1, window_bounds = array<i64: 16, 72>}, {pipeline_mode = #tpu.pipeline_mode<synchronous>, transform_indices = @transform_2, window_bounds = array<i64: 16, 1>}, {transform_indices = @transform_3, window_bounds = array<i64: 1, 16, 196>}]} {
    %c0 = arith.constant 0 : index
    %c0_0 = arith.constant 0 : index
    %0 = vector.load %arg2[%c0, %c0_0] : memref<16x72xf32, #tpu.memory_space<vmem>>, vector<16x72xf32>
    %c0_1 = arith.constant 0 : index
    %c0_2 = arith.constant 0 : index
    %c0_3 = arith.constant 0 : index
    %1 = vector.load %arg1[%c0_1, %c0_2, %c0_3] : memref<1x72x196xf32, #tpu.memory_space<vmem>>, vector<1x72x196xf32>
    %2 = vector.shape_cast %1 : vector<1x72x196xf32> to vector<72x196xf32>
    %cst = arith.constant dense<0.000000e+00> : vector<16x196xf32>
    %3 = tpu.matmul %0, %2, %cst {dimension_numbers = #tpu.dot_dimension_numbers<[1], [0], [0], [1], [0, 0, 1, 1], [], []>} : vector<16x72xf32>, vector<72x196xf32>, vector<16x196xf32> -> vector<16x196xf32>
    %c0_4 = arith.constant 0 : index
    %c0_5 = arith.constant 0 : index
    %4 = vector.load %arg3[%c0_4, %c0_5] : memref<16x1xf32, #tpu.memory_space<vmem>>, vector<16x1xf32>
    %5 = vector.broadcast %4 : vector<16x1xf32> to vector<16x196xf32>
    %6 = arith.addf %3, %5 : vector<16x196xf32>
    %cst_6 = arith.constant dense<0.000000e+00> : vector<16xf32>
    %7 = vector.multi_reduction <add>, %6, %cst_6 [1] : vector<16x196xf32> to vector<16xf32>
    %8 = vector.shape_cast %7 : vector<16xf32> to vector<16x1xf32>
    %cst_7 = arith.constant 1.960000e+02 : f32
    %9 = vector.broadcast %cst_7 : f32 to vector<16x1xf32>
    %10 = arith.divf %8, %9 : vector<16x1xf32>
    %11 = vector.broadcast %10 : vector<16x1xf32> to vector<16x196xf32>
    %12 = arith.subf %6, %11 : vector<16x196xf32>
    %13 = arith.mulf %12, %12 : vector<16x196xf32>
    %cst_8 = arith.constant dense<0.000000e+00> : vector<16xf32>
    %14 = vector.multi_reduction <add>, %13, %cst_8 [1] : vector<16x196xf32> to vector<16xf32>
    %15 = vector.shape_cast %14 : vector<16xf32> to vector<16x1xf32>
    %cst_9 = arith.constant 1.960000e+02 : f32
    %16 = vector.broadcast %cst_9 : f32 to vector<16x1xf32>
    %17 = arith.divf %15, %16 : vector<16x1xf32>
    %18 = vector.broadcast %10 : vector<16x1xf32> to vector<16x196xf32>
    %19 = arith.subf %6, %18 : vector<16x196xf32>
    %cst_10 = arith.constant 9.99999974E-6 : f32
    %20 = vector.broadcast %cst_10 : f32 to vector<16x1xf32>
    %21 = arith.addf %17, %20 : vector<16x1xf32>
    %22 = math.rsqrt %21 : vector<16x1xf32>
    %23 = vector.broadcast %22 : vector<16x1xf32> to vector<16x196xf32>
    %24 = arith.mulf %19, %23 : vector<16x196xf32>
    %cst_11 = arith.constant 0.000000e+00 : f32
    %25 = vector.broadcast %cst_11 : f32 to vector<16x196xf32>
    %26 = arith.maximumf %24, %25 : vector<16x196xf32>
    %c0_12 = arith.constant 0 : index
    %c0_13 = arith.constant 0 : index
    %c0_14 = arith.constant 0 : index
    %27 = vector.load %arg4[%c0_12, %c0_13, %c0_14] : memref<1x16x196xf32, #tpu.memory_space<vmem>>, vector<1x16x196xf32>
    %28 = vector.shape_cast %27 : vector<1x16x196xf32> to vector<16x196xf32>
    %29 = vector.shape_cast %26 : vector<16x196xf32> to vector<1x16x196xf32>
    tpu.vector_store %arg4[%c0_12, %c0_13, %c0_14], %29 {strides = array<i32>} : memref<1x16x196xf32, #tpu.memory_space<vmem>>, vector<1x16x196xf32>,
    return
  }
  func.func @transform_0(%arg0: i32) -> (i32, i32, i32) {
    %c0_i32 = arith.constant 0 : i32
    %c0_i32_0 = arith.constant 0 : i32
    %c0_i32_1 = arith.constant 0 : i32
    return %arg0, %c0_i32, %c0_i32_0 : i32, i32, i32
  }
  func.func @transform_1(%arg0: i32) -> (i32, i32) {
    %c0_i32 = arith.constant 0 : i32
    %c0_i32_0 = arith.constant 0 : i32
    %c0_i32_1 = arith.constant 0 : i32
    return %c0_i32, %c0_i32_0 : i32, i32
  }
  func.func @transform_2(%arg0: i32) -> (i32, i32) {
    %c0_i32 = arith.constant 0 : i32
    %c0_i32_0 = arith.constant 0 : i32
    %c0_i32_1 = arith.constant 0 : i32
    return %c0_i32, %c0_i32_0 : i32, i32
  }
  func.func @transform_3(%arg0: i32) -> (i32, i32, i32) {
    %c0_i32 = arith.constant 0 : i32
    %c0_i32_0 = arith.constant 0 : i32
    %c0_i32_1 = arith.constant 0 : i32
    return %arg0, %c0_i32, %c0_i32_0 : i32, i32, i32
  }
}

module attributes {stable_mosaic.version = 11 : i64} {
  func.func @kernel(%arg0: i32, %arg1: memref<1x144x36xf32, #tpu.memory_space<vmem>>, %arg2: memref<32x144xf32, #tpu.memory_space<vmem>>, %arg3: memref<32x1xf32, #tpu.memory_space<vmem>>, %arg4: memref<1x32x36xf32, #tpu.memory_space<vmem>>) attributes {dimension_semantics = [#tpu.dimension_semantics<parallel>], iteration_bounds = array<i64: 2>, scalar_prefetch = 0 : i64, scratch_operands = 0 : i64, tpu.core_type = #tpu.core_type<tc>, window_params = [{transform_indices = @transform_0, window_bounds = array<i64: 1, 144, 36>}, {pipeline_mode = #tpu.pipeline_mode<synchronous>, transform_indices = @transform_1, window_bounds = array<i64: 32, 144>}, {pipeline_mode = #tpu.pipeline_mode<synchronous>, transform_indices = @transform_2, window_bounds = array<i64: 32, 1>}, {transform_indices = @transform_3, window_bounds = array<i64: 1, 32, 36>}]} {
    %c0 = arith.constant 0 : index
    %c0_0 = arith.constant 0 : index
    %0 = vector.load %arg2[%c0, %c0_0] : memref<32x144xf32, #tpu.memory_space<vmem>>, vector<32x144xf32>
    %c0_1 = arith.constant 0 : index
    %c0_2 = arith.constant 0 : index
    %c0_3 = arith.constant 0 : index
    %1 = vector.load %arg1[%c0_1, %c0_2, %c0_3] : memref<1x144x36xf32, #tpu.memory_space<vmem>>, vector<1x144x36xf32>
    %2 = vector.shape_cast %1 : vector<1x144x36xf32> to vector<144x36xf32>
    %cst = arith.constant dense<0.000000e+00> : vector<32x36xf32>
    %3 = tpu.matmul %0, %2, %cst {dimension_numbers = #tpu.dot_dimension_numbers<[1], [0], [0], [1], [0, 0, 1, 1], [], []>} : vector<32x144xf32>, vector<144x36xf32>, vector<32x36xf32> -> vector<32x36xf32>
    %c0_4 = arith.constant 0 : index
    %c0_5 = arith.constant 0 : index
    %4 = vector.load %arg3[%c0_4, %c0_5] : memref<32x1xf32, #tpu.memory_space<vmem>>, vector<32x1xf32>
    %5 = vector.broadcast %4 : vector<32x1xf32> to vector<32x36xf32>
    %6 = arith.addf %3, %5 : vector<32x36xf32>
    %cst_6 = arith.constant dense<0.000000e+00> : vector<32xf32>
    %7 = vector.multi_reduction <add>, %6, %cst_6 [1] : vector<32x36xf32> to vector<32xf32>
    %8 = vector.shape_cast %7 : vector<32xf32> to vector<32x1xf32>
    %cst_7 = arith.constant 3.600000e+01 : f32
    %9 = vector.broadcast %cst_7 : f32 to vector<32x1xf32>
    %10 = arith.divf %8, %9 : vector<32x1xf32>
    %11 = vector.broadcast %10 : vector<32x1xf32> to vector<32x36xf32>
    %12 = arith.subf %6, %11 : vector<32x36xf32>
    %13 = arith.mulf %12, %12 : vector<32x36xf32>
    %cst_8 = arith.constant dense<0.000000e+00> : vector<32xf32>
    %14 = vector.multi_reduction <add>, %13, %cst_8 [1] : vector<32x36xf32> to vector<32xf32>
    %15 = vector.shape_cast %14 : vector<32xf32> to vector<32x1xf32>
    %cst_9 = arith.constant 3.600000e+01 : f32
    %16 = vector.broadcast %cst_9 : f32 to vector<32x1xf32>
    %17 = arith.divf %15, %16 : vector<32x1xf32>
    %18 = vector.broadcast %10 : vector<32x1xf32> to vector<32x36xf32>
    %19 = arith.subf %6, %18 : vector<32x36xf32>
    %cst_10 = arith.constant 9.99999974E-6 : f32
    %20 = vector.broadcast %cst_10 : f32 to vector<32x1xf32>
    %21 = arith.addf %17, %20 : vector<32x1xf32>
    %22 = math.rsqrt %21 : vector<32x1xf32>
    %23 = vector.broadcast %22 : vector<32x1xf32> to vector<32x36xf32>
    %24 = arith.mulf %19, %23 : vector<32x36xf32>
    %cst_11 = arith.constant 0.000000e+00 : f32
    %25 = vector.broadcast %cst_11 : f32 to vector<32x36xf32>
    %26 = arith.maximumf %24, %25 : vector<32x36xf32>
    %c0_12 = arith.constant 0 : index
    %c0_13 = arith.constant 0 : index
    %c0_14 = arith.constant 0 : index
    %27 = vector.load %arg4[%c0_12, %c0_13, %c0_14] : memref<1x32x36xf32, #tpu.memory_space<vmem>>, vector<1x32x36xf32>
    %28 = vector.shape_cast %27 : vector<1x32x36xf32> to vector<32x36xf32>
    %29 = vector.shape_cast %26 : vector<32x36xf32> to vector<1x32x36xf32>
    tpu.vector_store %arg4[%c0_12, %c0_13, %c0_14], %29 {strides = array<i32>} : memref<1x32x36xf32, #tpu.memory_space<vmem>>, vector<1x32x36xf32>,
    return
  }
  func.func @transform_0(%arg0: i32) -> (i32, i32, i32) {
    %c0_i32 = arith.constant 0 : i32
    %c0_i32_0 = arith.constant 0 : i32
    %c0_i32_1 = arith.constant 0 : i32
    return %arg0, %c0_i32, %c0_i32_0 : i32, i32, i32
  }
  func.func @transform_1(%arg0: i32) -> (i32, i32) {
    %c0_i32 = arith.constant 0 : i32
    %c0_i32_0 = arith.constant 0 : i32
    %c0_i32_1 = arith.constant 0 : i32
    return %c0_i32, %c0_i32_0 : i32, i32
  }
  func.func @transform_2(%arg0: i32) -> (i32, i32) {
    %c0_i32 = arith.constant 0 : i32
    %c0_i32_0 = arith.constant 0 : i32
    %c0_i32_1 = arith.constant 0 : i32
    return %c0_i32, %c0_i32_0 : i32, i32
  }
  func.func @transform_3(%arg0: i32) -> (i32, i32, i32) {
    %c0_i32 = arith.constant 0 : i32
    %c0_i32_0 = arith.constant 0 : i32
    %c0_i32_1 = arith.constant 0 : i32
    return %arg0, %c0_i32, %c0_i32_0 : i32, i32, i32
  }
}

module attributes {stable_mosaic.version = 11 : i64} {
  func.func @kernel(%arg0: i32, %arg1: memref<1x288x36xf32, #tpu.memory_space<vmem>>, %arg2: memref<32x288xf32, #tpu.memory_space<vmem>>, %arg3: memref<32x1xf32, #tpu.memory_space<vmem>>, %arg4: memref<32x1xf32, #tpu.memory_space<vmem>>, %arg5: memref<1x32x36xf32, #tpu.memory_space<vmem>>) attributes {dimension_semantics = [#tpu.dimension_semantics<parallel>], iteration_bounds = array<i64: 2>, scalar_prefetch = 0 : i64, scratch_operands = 0 : i64, tpu.core_type = #tpu.core_type<tc>, window_params = [{transform_indices = @transform_0, window_bounds = array<i64: 1, 288, 36>}, {pipeline_mode = #tpu.pipeline_mode<synchronous>, transform_indices = @transform_1, window_bounds = array<i64: 32, 288>}, {pipeline_mode = #tpu.pipeline_mode<synchronous>, transform_indices = @transform_2, window_bounds = array<i64: 32, 1>}, {pipeline_mode = #tpu.pipeline_mode<synchronous>, transform_indices = @transform_3, window_bounds = array<i64: 32, 1>}, {transform_indices = @transform_4, window_bounds = array<i64: 1, 32, 36>}]} {
    %c0 = arith.constant 0 : index
    %c0_0 = arith.constant 0 : index
    %0 = vector.load %arg2[%c0, %c0_0] : memref<32x288xf32, #tpu.memory_space<vmem>>, vector<32x288xf32>
    %c0_1 = arith.constant 0 : index
    %c0_2 = arith.constant 0 : index
    %c0_3 = arith.constant 0 : index
    %1 = vector.load %arg1[%c0_1, %c0_2, %c0_3] : memref<1x288x36xf32, #tpu.memory_space<vmem>>, vector<1x288x36xf32>
    %2 = vector.shape_cast %1 : vector<1x288x36xf32> to vector<288x36xf32>
    %cst = arith.constant dense<0.000000e+00> : vector<32x36xf32>
    %3 = tpu.matmul %0, %2, %cst {dimension_numbers = #tpu.dot_dimension_numbers<[1], [0], [0], [1], [0, 0, 1, 1], [], []>} : vector<32x288xf32>, vector<288x36xf32>, vector<32x36xf32> -> vector<32x36xf32>
    %c0_4 = arith.constant 0 : index
    %c0_5 = arith.constant 0 : index
    %4 = vector.load %arg3[%c0_4, %c0_5] : memref<32x1xf32, #tpu.memory_space<vmem>>, vector<32x1xf32>
    %5 = vector.broadcast %4 : vector<32x1xf32> to vector<32x36xf32>
    %6 = arith.mulf %3, %5 : vector<32x36xf32>
    %c0_6 = arith.constant 0 : index
    %c0_7 = arith.constant 0 : index
    %7 = vector.load %arg4[%c0_6, %c0_7] : memref<32x1xf32, #tpu.memory_space<vmem>>, vector<32x1xf32>
    %8 = vector.broadcast %7 : vector<32x1xf32> to vector<32x36xf32>
    %9 = arith.addf %6, %8 : vector<32x36xf32>
    %cst_8 = arith.constant 0.000000e+00 : f32
    %10 = vector.broadcast %cst_8 : f32 to vector<32x36xf32>
    %11 = arith.maximumf %9, %10 : vector<32x36xf32>
    %c0_9 = arith.constant 0 : index
    %c0_10 = arith.constant 0 : index
    %c0_11 = arith.constant 0 : index
    %12 = vector.load %arg5[%c0_9, %c0_10, %c0_11] : memref<1x32x36xf32, #tpu.memory_space<vmem>>, vector<1x32x36xf32>
    %13 = vector.shape_cast %12 : vector<1x32x36xf32> to vector<32x36xf32>
    %14 = vector.shape_cast %11 : vector<32x36xf32> to vector<1x32x36xf32>
    tpu.vector_store %arg5[%c0_9, %c0_10, %c0_11], %14 {strides = array<i32>} : memref<1x32x36xf32, #tpu.memory_space<vmem>>, vector<1x32x36xf32>,
    return
  }
  func.func @transform_0(%arg0: i32) -> (i32, i32, i32) {
    %c0_i32 = arith.constant 0 : i32
    %c0_i32_0 = arith.constant 0 : i32
    %c0_i32_1 = arith.constant 0 : i32
    return %arg0, %c0_i32, %c0_i32_0 : i32, i32, i32
  }
  func.func @transform_1(%arg0: i32) -> (i32, i32) {
    %c0_i32 = arith.constant 0 : i32
    %c0_i32_0 = arith.constant 0 : i32
    %c0_i32_1 = arith.constant 0 : i32
    return %c0_i32, %c0_i32_0 : i32, i32
  }
  func.func @transform_2(%arg0: i32) -> (i32, i32) {
    %c0_i32 = arith.constant 0 : i32
    %c0_i32_0 = arith.constant 0 : i32
    %c0_i32_1 = arith.constant 0 : i32
    return %c0_i32, %c0_i32_0 : i32, i32
  }
  func.func @transform_3(%arg0: i32) -> (i32, i32) {
    %c0_i32 = arith.constant 0 : i32
    %c0_i32_0 = arith.constant 0 : i32
    %c0_i32_1 = arith.constant 0 : i32
    return %c0_i32, %c0_i32_0 : i32, i32
  }
  func.func @transform_4(%arg0: i32) -> (i32, i32, i32) {
    %c0_i32 = arith.constant 0 : i32
    %c0_i32_0 = arith.constant 0 : i32
    %c0_i32_1 = arith.constant 0 : i32
    return %arg0, %c0_i32, %c0_i32_0 : i32, i32, i32
  }
}

module attributes {stable_mosaic.version = 11 : i64} {
  func.func @kernel(%arg0: i32, %arg1: memref<1x288x36xf32, #tpu.memory_space<vmem>>, %arg2: memref<32x288xf32, #tpu.memory_space<vmem>>, %arg3: memref<32x1xf32, #tpu.memory_space<vmem>>, %arg4: memref<32x1xf32, #tpu.memory_space<vmem>>, %arg5: memref<1x32x36xf32, #tpu.memory_space<vmem>>, %arg6: memref<1x32x36xf32, #tpu.memory_space<vmem>>) attributes {dimension_semantics = [#tpu.dimension_semantics<parallel>], iteration_bounds = array<i64: 2>, scalar_prefetch = 0 : i64, scratch_operands = 0 : i64, tpu.core_type = #tpu.core_type<tc>, window_params = [{transform_indices = @transform_0, window_bounds = array<i64: 1, 288, 36>}, {pipeline_mode = #tpu.pipeline_mode<synchronous>, transform_indices = @transform_1, window_bounds = array<i64: 32, 288>}, {pipeline_mode = #tpu.pipeline_mode<synchronous>, transform_indices = @transform_2, window_bounds = array<i64: 32, 1>}, {pipeline_mode = #tpu.pipeline_mode<synchronous>, transform_indices = @transform_3, window_bounds = array<i64: 32, 1>}, {transform_indices = @transform_4, window_bounds = array<i64: 1, 32, 36>}, {transform_indices = @transform_5, window_bounds = array<i64: 1, 32, 36>}]} {
    %c0 = arith.constant 0 : index
    %c0_0 = arith.constant 0 : index
    %0 = vector.load %arg2[%c0, %c0_0] : memref<32x288xf32, #tpu.memory_space<vmem>>, vector<32x288xf32>
    %c0_1 = arith.constant 0 : index
    %c0_2 = arith.constant 0 : index
    %c0_3 = arith.constant 0 : index
    %1 = vector.load %arg1[%c0_1, %c0_2, %c0_3] : memref<1x288x36xf32, #tpu.memory_space<vmem>>, vector<1x288x36xf32>
    %2 = vector.shape_cast %1 : vector<1x288x36xf32> to vector<288x36xf32>
    %cst = arith.constant dense<0.000000e+00> : vector<32x36xf32>
    %3 = tpu.matmul %0, %2, %cst {dimension_numbers = #tpu.dot_dimension_numbers<[1], [0], [0], [1], [0, 0, 1, 1], [], []>} : vector<32x288xf32>, vector<288x36xf32>, vector<32x36xf32> -> vector<32x36xf32>
    %c0_4 = arith.constant 0 : index
    %c0_5 = arith.constant 0 : index
    %4 = vector.load %arg3[%c0_4, %c0_5] : memref<32x1xf32, #tpu.memory_space<vmem>>, vector<32x1xf32>
    %5 = vector.broadcast %4 : vector<32x1xf32> to vector<32x36xf32>
    %6 = arith.mulf %3, %5 : vector<32x36xf32>
    %c0_6 = arith.constant 0 : index
    %c0_7 = arith.constant 0 : index
    %7 = vector.load %arg4[%c0_6, %c0_7] : memref<32x1xf32, #tpu.memory_space<vmem>>, vector<32x1xf32>
    %8 = vector.broadcast %7 : vector<32x1xf32> to vector<32x36xf32>
    %9 = arith.addf %6, %8 : vector<32x36xf32>
    %c0_8 = arith.constant 0 : index
    %c0_9 = arith.constant 0 : index
    %c0_10 = arith.constant 0 : index
    %10 = vector.load %arg5[%c0_8, %c0_9, %c0_10] : memref<1x32x36xf32, #tpu.memory_space<vmem>>, vector<1x32x36xf32>
    %11 = vector.shape_cast %10 : vector<1x32x36xf32> to vector<32x36xf32>
    %12 = arith.addf %9, %11 : vector<32x36xf32>
    %c0_11 = arith.constant 0 : index
    %c0_12 = arith.constant 0 : index
    %c0_13 = arith.constant 0 : index
    %13 = vector.load %arg6[%c0_11, %c0_12, %c0_13] : memref<1x32x36xf32, #tpu.memory_space<vmem>>, vector<1x32x36xf32>
    %14 = vector.shape_cast %13 : vector<1x32x36xf32> to vector<32x36xf32>
    %15 = vector.shape_cast %12 : vector<32x36xf32> to vector<1x32x36xf32>
    tpu.vector_store %arg6[%c0_11, %c0_12, %c0_13], %15 {strides = array<i32>} : memref<1x32x36xf32, #tpu.memory_space<vmem>>, vector<1x32x36xf32>,
    return
  }
  func.func @transform_0(%arg0: i32) -> (i32, i32, i32) {
    %c0_i32 = arith.constant 0 : i32
    %c0_i32_0 = arith.constant 0 : i32
    %c0_i32_1 = arith.constant 0 : i32
    return %arg0, %c0_i32, %c0_i32_0 : i32, i32, i32
  }
  func.func @transform_1(%arg0: i32) -> (i32, i32) {
    %c0_i32 = arith.constant 0 : i32
    %c0_i32_0 = arith.constant 0 : i32
    %c0_i32_1 = arith.constant 0 : i32
    return %c0_i32, %c0_i32_0 : i32, i32
  }
  func.func @transform_2(%arg0: i32) -> (i32, i32) {
    %c0_i32 = arith.constant 0 : i32
    %c0_i32_0 = arith.constant 0 : i32
    %c0_i32_1 = arith.constant 0 : i32
    return %c0_i32, %c0_i32_0 : i32, i32
  }
  func.func @transform_3(%arg0: i32) -> (i32, i32) {
    %c0_i32 = arith.constant 0 : i32
    %c0_i32_0 = arith.constant 0 : i32
    %c0_i32_1 = arith.constant 0 : i32
    return %c0_i32, %c0_i32_0 : i32, i32
  }
  func.func @transform_4(%arg0: i32) -> (i32, i32, i32) {
    %c0_i32 = arith.constant 0 : i32
    %c0_i32_0 = arith.constant 0 : i32
    %c0_i32_1 = arith.constant 0 : i32
    return %arg0, %c0_i32, %c0_i32_0 : i32, i32, i32
  }
  func.func @transform_5(%arg0: i32) -> (i32, i32, i32) {
    %c0_i32 = arith.constant 0 : i32
    %c0_i32_0 = arith.constant 0 : i32
    %c0_i32_1 = arith.constant 0 : i32
    return %arg0, %c0_i32, %c0_i32_0 : i32, i32, i32
  }
}

module attributes {stable_mosaic.version = 11 : i64} {
  func.func @kernel(%arg0: i32, %arg1: memref<1x288x169xf32, #tpu.memory_space<vmem>>, %arg2: memref<16x288xf32, #tpu.memory_space<vmem>>, %arg3: memref<1x16x169xf32, #tpu.memory_space<vmem>>) attributes {dimension_semantics = [#tpu.dimension_semantics<parallel>], iteration_bounds = array<i64: 2>, scalar_prefetch = 0 : i64, scratch_operands = 0 : i64, tpu.core_type = #tpu.core_type<tc>, window_params = [{transform_indices = @transform_0, window_bounds = array<i64: 1, 288, 169>}, {pipeline_mode = #tpu.pipeline_mode<synchronous>, transform_indices = @transform_1, window_bounds = array<i64: 16, 288>}, {transform_indices = @transform_2, window_bounds = array<i64: 1, 16, 169>}]} {
    %c0 = arith.constant 0 : index
    %c0_0 = arith.constant 0 : index
    %0 = vector.load %arg2[%c0, %c0_0] : memref<16x288xf32, #tpu.memory_space<vmem>>, vector<16x288xf32>
    %c0_1 = arith.constant 0 : index
    %c0_2 = arith.constant 0 : index
    %c0_3 = arith.constant 0 : index
    %1 = vector.load %arg1[%c0_1, %c0_2, %c0_3] : memref<1x288x169xf32, #tpu.memory_space<vmem>>, vector<1x288x169xf32>
    %2 = vector.shape_cast %1 : vector<1x288x169xf32> to vector<288x169xf32>
    %cst = arith.constant dense<0.000000e+00> : vector<16x169xf32>
    %3 = tpu.matmul %0, %2, %cst {dimension_numbers = #tpu.dot_dimension_numbers<[1], [0], [0], [1], [0, 0, 1, 1], [], []>} : vector<16x288xf32>, vector<288x169xf32>, vector<16x169xf32> -> vector<16x169xf32>
    %cst_4 = arith.constant dense<0.000000e+00> : vector<16xf32>
    %4 = vector.multi_reduction <add>, %3, %cst_4 [1] : vector<16x169xf32> to vector<16xf32>
    %5 = vector.shape_cast %4 : vector<16xf32> to vector<16x1xf32>
    %cst_5 = arith.constant 1.690000e+02 : f32
    %6 = vector.broadcast %cst_5 : f32 to vector<16x1xf32>
    %7 = arith.divf %5, %6 : vector<16x1xf32>
    %8 = vector.broadcast %7 : vector<16x1xf32> to vector<16x169xf32>
    %9 = arith.subf %3, %8 : vector<16x169xf32>
    %10 = arith.mulf %9, %9 : vector<16x169xf32>
    %cst_6 = arith.constant dense<0.000000e+00> : vector<16xf32>
    %11 = vector.multi_reduction <add>, %10, %cst_6 [1] : vector<16x169xf32> to vector<16xf32>
    %12 = vector.shape_cast %11 : vector<16xf32> to vector<16x1xf32>
    %cst_7 = arith.constant 1.690000e+02 : f32
    %13 = vector.broadcast %cst_7 : f32 to vector<16x1xf32>
    %14 = arith.divf %12, %13 : vector<16x1xf32>
    %15 = vector.broadcast %7 : vector<16x1xf32> to vector<16x169xf32>
    %16 = arith.subf %3, %15 : vector<16x169xf32>
    %cst_8 = arith.constant 9.99999974E-6 : f32
    %17 = vector.broadcast %cst_8 : f32 to vector<16x1xf32>
    %18 = arith.addf %14, %17 : vector<16x1xf32>
    %19 = math.rsqrt %18 : vector<16x1xf32>
    %20 = vector.broadcast %19 : vector<16x1xf32> to vector<16x169xf32>
    %21 = arith.mulf %16, %20 : vector<16x169xf32>
    %cst_9 = arith.constant 0.000000e+00 : f32
    %22 = vector.broadcast %cst_9 : f32 to vector<16x169xf32>
    %23 = arith.maximumf %21, %22 : vector<16x169xf32>
    %c0_10 = arith.constant 0 : index
    %c0_11 = arith.constant 0 : index
    %c0_12 = arith.constant 0 : index
    %24 = vector.load %arg3[%c0_10, %c0_11, %c0_12] : memref<1x16x169xf32, #tpu.memory_space<vmem>>, vector<1x16x169xf32>
    %25 = vector.shape_cast %24 : vector<1x16x169xf32> to vector<16x169xf32>
    %26 = vector.shape_cast %23 : vector<16x169xf32> to vector<1x16x169xf32>
    tpu.vector_store %arg3[%c0_10, %c0_11, %c0_12], %26 {strides = array<i32>} : memref<1x16x169xf32, #tpu.memory_space<vmem>>, vector<1x16x169xf32>,
    return
  }
  func.func @transform_0(%arg0: i32) -> (i32, i32, i32) {
    %c0_i32 = arith.constant 0 : i32
    %c0_i32_0 = arith.constant 0 : i32
    %c0_i32_1 = arith.constant 0 : i32
    return %arg0, %c0_i32, %c0_i32_0 : i32, i32, i32
  }
  func.func @transform_1(%arg0: i32) -> (i32, i32) {
    %c0_i32 = arith.constant 0 : i32
    %c0_i32_0 = arith.constant 0 : i32
    %c0_i32_1 = arith.constant 0 : i32
    return %c0_i32, %c0_i32_0 : i32, i32
  }
  func.func @transform_2(%arg0: i32) -> (i32, i32, i32) {
    %c0_i32 = arith.constant 0 : i32
    %c0_i32_0 = arith.constant 0 : i32
    %c0_i32_1 = arith.constant 0 : i32
    return %arg0, %c0_i32, %c0_i32_0 : i32, i32, i32
  }
}

module attributes {stable_mosaic.version = 11 : i64} {
  func.func @kernel(%arg0: i32, %arg1: memref<1x144x729xf32, #tpu.memory_space<vmem>>, %arg2: memref<8x144xf32, #tpu.memory_space<vmem>>, %arg3: memref<1x8x729xf32, #tpu.memory_space<vmem>>) attributes {dimension_semantics = [#tpu.dimension_semantics<parallel>], iteration_bounds = array<i64: 2>, scalar_prefetch = 0 : i64, scratch_operands = 0 : i64, tpu.core_type = #tpu.core_type<tc>, window_params = [{transform_indices = @transform_0, window_bounds = array<i64: 1, 144, 729>}, {pipeline_mode = #tpu.pipeline_mode<synchronous>, transform_indices = @transform_1, window_bounds = array<i64: 8, 144>}, {transform_indices = @transform_2, window_bounds = array<i64: 1, 8, 729>}]} {
    %c0 = arith.constant 0 : index
    %c0_0 = arith.constant 0 : index
    %0 = vector.load %arg2[%c0, %c0_0] : memref<8x144xf32, #tpu.memory_space<vmem>>, vector<8x144xf32>
    %c0_1 = arith.constant 0 : index
    %c0_2 = arith.constant 0 : index
    %c0_3 = arith.constant 0 : index
    %1 = vector.load %arg1[%c0_1, %c0_2, %c0_3] : memref<1x144x729xf32, #tpu.memory_space<vmem>>, vector<1x144x729xf32>
    %2 = vector.shape_cast %1 : vector<1x144x729xf32> to vector<144x729xf32>
    %cst = arith.constant dense<0.000000e+00> : vector<8x729xf32>
    %3 = tpu.matmul %0, %2, %cst {dimension_numbers = #tpu.dot_dimension_numbers<[1], [0], [0], [1], [0, 0, 1, 1], [], []>} : vector<8x144xf32>, vector<144x729xf32>, vector<8x729xf32> -> vector<8x729xf32>
    %cst_4 = arith.constant dense<0.000000e+00> : vector<8xf32>
    %4 = vector.multi_reduction <add>, %3, %cst_4 [1] : vector<8x729xf32> to vector<8xf32>
    %5 = vector.shape_cast %4 : vector<8xf32> to vector<8x1xf32>
    %cst_5 = arith.constant 7.290000e+02 : f32
    %6 = vector.broadcast %cst_5 : f32 to vector<8x1xf32>
    %7 = arith.divf %5, %6 : vector<8x1xf32>
    %8 = vector.broadcast %7 : vector<8x1xf32> to vector<8x729xf32>
    %9 = arith.subf %3, %8 : vector<8x729xf32>
    %10 = arith.mulf %9, %9 : vector<8x729xf32>
    %cst_6 = arith.constant dense<0.000000e+00> : vector<8xf32>
    %11 = vector.multi_reduction <add>, %10, %cst_6 [1] : vector<8x729xf32> to vector<8xf32>
    %12 = vector.shape_cast %11 : vector<8xf32> to vector<8x1xf32>
    %cst_7 = arith.constant 7.290000e+02 : f32
    %13 = vector.broadcast %cst_7 : f32 to vector<8x1xf32>
    %14 = arith.divf %12, %13 : vector<8x1xf32>
    %15 = vector.broadcast %7 : vector<8x1xf32> to vector<8x729xf32>
    %16 = arith.subf %3, %15 : vector<8x729xf32>
    %cst_8 = arith.constant 9.99999974E-6 : f32
    %17 = vector.broadcast %cst_8 : f32 to vector<8x1xf32>
    %18 = arith.addf %14, %17 : vector<8x1xf32>
    %19 = math.rsqrt %18 : vector<8x1xf32>
    %20 = vector.broadcast %19 : vector<8x1xf32> to vector<8x729xf32>
    %21 = arith.mulf %16, %20 : vector<8x729xf32>
    %cst_9 = arith.constant 0.000000e+00 : f32
    %22 = vector.broadcast %cst_9 : f32 to vector<8x729xf32>
    %23 = arith.maximumf %21, %22 : vector<8x729xf32>
    %c0_10 = arith.constant 0 : index
    %c0_11 = arith.constant 0 : index
    %c0_12 = arith.constant 0 : index
    %24 = vector.load %arg3[%c0_10, %c0_11, %c0_12] : memref<1x8x729xf32, #tpu.memory_space<vmem>>, vector<1x8x729xf32>
    %25 = vector.shape_cast %24 : vector<1x8x729xf32> to vector<8x729xf32>
    %26 = vector.shape_cast %23 : vector<8x729xf32> to vector<1x8x729xf32>
    tpu.vector_store %arg3[%c0_10, %c0_11, %c0_12], %26 {strides = array<i32>} : memref<1x8x729xf32, #tpu.memory_space<vmem>>, vector<1x8x729xf32>,
    return
  }
  func.func @transform_0(%arg0: i32) -> (i32, i32, i32) {
    %c0_i32 = arith.constant 0 : i32
    %c0_i32_0 = arith.constant 0 : i32
    %c0_i32_1 = arith.constant 0 : i32
    return %arg0, %c0_i32, %c0_i32_0 : i32, i32, i32
  }
  func.func @transform_1(%arg0: i32) -> (i32, i32) {
    %c0_i32 = arith.constant 0 : i32
    %c0_i32_0 = arith.constant 0 : i32
    %c0_i32_1 = arith.constant 0 : i32
    return %c0_i32, %c0_i32_0 : i32, i32
  }
  func.func @transform_2(%arg0: i32) -> (i32, i32, i32) {
    %c0_i32 = arith.constant 0 : i32
    %c0_i32_0 = arith.constant 0 : i32
    %c0_i32_1 = arith.constant 0 : i32
    return %arg0, %c0_i32, %c0_i32_0 : i32, i32, i32
  }
}

module attributes {stable_mosaic.version = 11 : i64} {
  func.func @kernel(%arg0: i32, %arg1: memref<1x288x1024xf32, #tpu.memory_space<vmem>>, %arg2: memref<3x288xf32, #tpu.memory_space<vmem>>, %arg3: memref<1x3x1024xf32, #tpu.memory_space<vmem>>) attributes {dimension_semantics = [#tpu.dimension_semantics<parallel>], iteration_bounds = array<i64: 2>, scalar_prefetch = 0 : i64, scratch_operands = 0 : i64, tpu.core_type = #tpu.core_type<tc>, window_params = [{transform_indices = @transform_0, window_bounds = array<i64: 1, 288, 1024>}, {pipeline_mode = #tpu.pipeline_mode<synchronous>, transform_indices = @transform_1, window_bounds = array<i64: 3, 288>}, {transform_indices = @transform_2, window_bounds = array<i64: 1, 3, 1024>}]} {
    %c0 = arith.constant 0 : index
    %c0_0 = arith.constant 0 : index
    %0 = vector.load %arg2[%c0, %c0_0] : memref<3x288xf32, #tpu.memory_space<vmem>>, vector<3x288xf32>
    %c0_1 = arith.constant 0 : index
    %c0_2 = arith.constant 0 : index
    %c0_3 = arith.constant 0 : index
    %1 = vector.load %arg1[%c0_1, %c0_2, %c0_3] : memref<1x288x1024xf32, #tpu.memory_space<vmem>>, vector<1x288x1024xf32>
    %2 = vector.shape_cast %1 : vector<1x288x1024xf32> to vector<288x1024xf32>
    %cst = arith.constant dense<0.000000e+00> : vector<3x1024xf32>
    %3 = tpu.matmul %0, %2, %cst {dimension_numbers = #tpu.dot_dimension_numbers<[1], [0], [0], [1], [0, 0, 1, 1], [], []>} : vector<3x288xf32>, vector<288x1024xf32>, vector<3x1024xf32> -> vector<3x1024xf32>
    %4 = math.tanh %3 : vector<3x1024xf32>
    %c0_4 = arith.constant 0 : index
    %c0_5 = arith.constant 0 : index
    %c0_6 = arith.constant 0 : index
    %5 = vector.load %arg3[%c0_4, %c0_5, %c0_6] : memref<1x3x1024xf32, #tpu.memory_space<vmem>>, vector<1x3x1024xf32>
    %6 = vector.shape_cast %5 : vector<1x3x1024xf32> to vector<3x1024xf32>
    %7 = vector.shape_cast %4 : vector<3x1024xf32> to vector<1x3x1024xf32>
    tpu.vector_store %arg3[%c0_4, %c0_5, %c0_6], %7 {strides = array<i32>} : memref<1x3x1024xf32, #tpu.memory_space<vmem>>, vector<1x3x1024xf32>,
    return
  }
  func.func @transform_0(%arg0: i32) -> (i32, i32, i32) {
    %c0_i32 = arith.constant 0 : i32
    %c0_i32_0 = arith.constant 0 : i32
    %c0_i32_1 = arith.constant 0 : i32
    return %arg0, %c0_i32, %c0_i32_0 : i32, i32, i32
  }
  func.func @transform_1(%arg0: i32) -> (i32, i32) {
    %c0_i32 = arith.constant 0 : i32
    %c0_i32_0 = arith.constant 0 : i32
    %c0_i32_1 = arith.constant 0 : i32
    return %c0_i32, %c0_i32_0 : i32, i32
  }
  func.func @transform_2(%arg0: i32) -> (i32, i32, i32) {
    %c0_i32 = arith.constant 0 : i32
    %c0_i32_0 = arith.constant 0 : i32
    %c0_i32_1 = arith.constant 0 : i32
    return %arg0, %c0_i32, %c0_i32_0 : i32, i32, i32
  }
}

</mosaic_0001>

<bundles_post_ra>
// kernel: _generator_forward.14
= control target key start
LH: loop header
LB: loop body
LE: loop exit
PB: predicated region body
PF: predicated region fallthrough
CT: control target
= control target key end

     0   :  { %s754_s12 = smov 0   ;;  %s846_s0 = inlined_call_operand.vmem [shape: f32[2,27,900], index: 0, kind: input, shape index: {}]   ;;  %s847_s1 = inlined_call_operand.vmem [shape: f32[8,27], index: 1, kind: input, shape index: {}]   ;;  %s848_s2 = inlined_call_operand.vmem [shape: f32[8,1], index: 2, kind: input, shape index: {}]   ;;  %s849_s3 = inlined_call_operand.vmem [shape: f32[2,8,900], index: 3, kind: output, shape index: {}]  }
   0x1 LB: > { %s644_s13 = sadd.s32 4294967295, %s729_s12   ;;  %p648_p0 = scmp.ge.s32.totalorder %s729_s12, 1  ;;  %s729_s12 = sphi %s754_s12, %s13_s12  }
   0x2   : > { %p137_p1 = scmp.lt.s32.totalorder %s729_s12, 3 }
   0x4   : > { %p138_p2 = pnand %p648_p0, %p137_p1 }
   0x5   : > { %p161_p3 = scmp.lt.s32.totalorder (!%p138_p2), %s644_s13, 1  ;;  %v731_v0 = vmov (!%p138_p2), 0.0   ;;  %v204_v1 = vld [vmem:[%s848_s2] sm:$0xff] (!%p138_p2)  ;;  %vm214_vm0 = vcmask (!%p138_p2), 1042432   ;;  %v732_v2 = vmov (!%p138_p2), 0   ;;  %vm733_vm1 = vmmov (!%p138_p2), 1  }
   0x6   : > { %141 = sbr.rel (%p138_p2) target bundleno = 585 (0x249), region = 32  ;;  %303 = vmatprep.mubr.f32.mxu0 (!%p138_p2), %v731_v0  ;;  %374 = vmatprep.mubr.f32.mxu1 (!%p138_p2), %v731_v0  ;;  %vm775_vm2 = vmpackc.low (!%p138_p2), %vm214_vm0, %vm733_vm1  ;;  %v171_v30 = vld [vmem:[%s847_s1] sm:$0xff] (!%p138_p2)  ;;  %vm210_vm3 = vcmask (!%p138_p2), 220160   ;;  %vm529_vm4 = vcmask (!%p138_p2), 31744  }
   0x7   : > { %720 = vset.pattern.permute.xlu0 (!%p138_p2), %v732_v2 }
   0x8   : > { %207 = vperm.xlu0 (!%p138_p2), %720, %v204_v1  }
   0xd   : > { %s853_s13 = smov (!%p161_p3, %s644_s13), 1 }
   0xe   : > { %s667_s16 = sshll.u32 %s853_s13, 8  ;;  %s668_s22 = sshll.u32 %s853_s13, 6 }
   0xf   : > { %s773_s19 = scalar_lea.vmem %s846_s0, %s667_s16  ;;  %s170_s25 = scalar_lea.vmem %s849_s3, %s668_s22 }
  0x10   : > { %v173_v4 = vld [vmem:[%s773_s19 + $0x8] sm:$0xff]  ;;  %v175_v6 = vld [vmem:[%s773_s19 + $0x18] sm:$0xff]  ;;  %v172_v9 = vld [vmem:[%s773_s19] sm:$0xff] }
  0x11   : > { %v181_v5 = vld [vmem:[%s773_s19 + $0x48] sm:$0xff]  ;;  %v183_v8 = vld [vmem:[%s773_s19 + $0x58] sm:$0xff]  ;;  %v180_v10 = vld [vmem:[%s773_s19 + $0x40] sm:$0xff] }
  0x12   : > { %v669_v7 = vpack.c.bf16 %v181_v5, %v173_v4  ;;  %v679_v11 = vpack.c.bf16 %v183_v8, %v175_v6  ;;  %v671_v12 = vpack.c.bf16 %v180_v10, %v172_v9  ;;  %v174_v13 = vld [vmem:[%s773_s19 + $0x10] sm:$0xff]  ;;  %v189_v15 = vld [vmem:[%s773_s19 + $0x88] sm:$0xff]  ;;  %v191_v18 = vld [vmem:[%s773_s19 + $0x98] sm:$0xff] }
  0x13   : > { %v182_v14 = vld [vmem:[%s773_s19 + $0x50] sm:$0xff]  ;;  %v197_v17 = vld [vmem:[%s773_s19 + $0xc8] sm:$0x7]  ;;  %v199_v19 = vld [vmem:[%s773_s19 + $0xd8] sm:$0x7] }
  0x14   : > { %670 = vmatprep.subr.bf16.mxu0 %v669_v7  ;;  %v681_v16 = vpack.c.bf16 %v182_v14, %v174_v13  ;;  %680 = vmatprep.subr.bf16.mxu1 %v679_v11  ;;  %v673_v20 = vpack.c.bf16 %v197_v17, %v189_v15  ;;  %v683_v21 = vpack.c.bf16 %v199_v19, %v191_v18  ;;  %v188_v22 = vld [vmem:[%s773_s19 + $0x80] sm:$0xff]  ;;  %v190_v24 = vld [vmem:[%s773_s19 + $0x90] sm:$0xff]  ;;  %v177_v27 = vld [vmem:[%s773_s19 + $0x28] sm:$0xff] }
  0x15   : > { %672 = vmatpush1.bf16.msra.mxu0 %v671_v12  ;;  %v196_v23 = vld [vmem:[%s773_s19 + $0xc0] sm:$0x7]  ;;  %v198_v26 = vld [vmem:[%s773_s19 + $0xd0] sm:$0x7]  ;;  %v185_v28 = vld [vmem:[%s773_s19 + $0x68] sm:$0xff] }
  0x16   : > { %682 = vmatpush1.bf16.msra.mxu1 %v681_v16  ;;  %v676_v25 = vpack.c.bf16 %v196_v23, %v188_v22  ;;  %675 = vmatprep.subr.msk.bf16.mxu0 %vm775_vm2, %v673_v20  ;;  %v686_v29 = vpack.c.bf16 %v198_v26, %v190_v24  ;;  %v689_v31 = vpack.c.bf16 %v185_v28, %v177_v27  ;;  %v179_v32 = vld [vmem:[%s773_s19 + $0x38] sm:$0xff]  ;;  %v176_v34 = vld [vmem:[%s773_s19 + $0x20] sm:$0xff]  ;;  %v178_v37 = vld [vmem:[%s773_s19 + $0x30] sm:$0xff] }
  0x17   : > { %685 = vmatprep.subr.msk.bf16.mxu1 %vm775_vm2, %v683_v21  ;;  %v187_v33 = vld [vmem:[%s773_s19 + $0x78] sm:$0xff]  ;;  %v184_v36 = vld [vmem:[%s773_s19 + $0x60] sm:$0xff]  ;;  %v186_v38 = vld [vmem:[%s773_s19 + $0x70] sm:$0xff] }
  0x18   : > { %v699_v35 = vpack.c.bf16 %v187_v33, %v179_v32  ;;  %v691_v39 = vpack.c.bf16 %v184_v36, %v176_v34  ;;  %v193_v40 = vld [vmem:[%s773_s19 + $0xa8] sm:$0xff]  ;;  %v195_v42 = vld [vmem:[%s773_s19 + $0xb8] sm:$0xff]  ;;  %v701_v43 = vpack.c.bf16 %v186_v38, %v178_v37  ;;  %v192_v46 = vld [vmem:[%s773_s19 + $0xa0] sm:$0xff] }
  0x19   : > { %678 = vmatpush1.bf16.msk.msra.mxu0 %vm775_vm2, %v676_v25  ;;  %v201_v41 = vld [vmem:[%s773_s19 + $0xe8] sm:$0x7]  ;;  %v203_v45 = vld [vmem:[%s773_s19 + $0xf8] sm:$0x7]  ;;  %v200_v47 = vld [vmem:[%s773_s19 + $0xe0] sm:$0x7] }
  0x1a   : > { %688 = vmatpush1.bf16.msk.msra.mxu1 %vm775_vm2, %v686_v29  ;;  %690 = vmatprep.subr.bf16.mxu0 %v689_v31  ;;  %v693_v44 = vpack.c.bf16 %v201_v41, %v193_v40  ;;  %v703_v48 = vpack.c.bf16 %v203_v45, %v195_v42  ;;  %v194_v49 = vld [vmem:[%s773_s19 + $0xb0] sm:$0xff]  ;;  %v696_v51 = vpack.c.bf16 %v200_v47, %v192_v46 }
  0x1b   : > { %700 = vmatprep.subr.bf16.mxu1 %v699_v35  ;;  %v202_v50 = vld [vmem:[%s773_s19 + $0xf0] sm:$0x7] }
  0x1c   : > { %655 = vmatmul.mubr.msk.f32.vlgmr.msra.gmra.mrb[0].mxu0 %vm210_vm3, %v171_v30  ;;  %v706_v52 = vpack.c.bf16 %v202_v50, %v194_v49 }
  0x1d   : > { %658 = vmatmul.mubr.msk.f32.vlgmr.msra.gmra.mrb[0].mxu1 %vm210_vm3, %v171_v30  ;;  %692 = vmatpush1.bf16.msra.mxu0 %v691_v39 }
  0x1e   : > { %702 = vmatpush1.bf16.msra.mxu1 %v701_v43  ;;  %695 = vmatprep.subr.msk.bf16.mxu0 %vm775_vm2, %v693_v44 }
  0x1f   : > { %705 = vmatprep.subr.msk.bf16.mxu1 %vm775_vm2, %v703_v48  ;;  %445 = vmatprep.mubr.f32.mxu0 %v731_v0 }
  0x20   : > { %516 = vmatprep.mubr.f32.mxu1 %v731_v0 }
  0x21   : > { %698 = vmatpush1.bf16.msk.msra.mxu0 %vm775_vm2, %v696_v51 }
  0x22   : > { %708 = vmatpush1.bf16.msk.msra.mxu1 %vm775_vm2, %v706_v52 }
  0x24   : > { %661 = vmatmul.mubr.msk.f32.vlgmr.msra.gmra.mrb[2].mxu0 %vm210_vm3, %v171_v30 }
  0x25   : > { %664 = vmatmul.mubr.msk.f32.vlgmr.msra.gmra.mrb[2].mxu1 %vm210_vm3, %v171_v30 }
  0x87   : > { %v208_v53 = vpop.permute.xlu0 %207 }
  0xef   : > { %v305_v54 = vpop.f32.mrb[0].mxu0 }
  0xf0   : > { %v306_v55 = vadd.f32 %v305_v54, %v208_v53  ;;  %v307_v56 = vpop.f32.mrb[1].mxu0  ;;  %v376_v57 = vpop.f32.mrb[0].mxu1 }
  0xf1   : > { %v308_v58 = vadd.f32 %v307_v56, %v208_v53  ;;  %v377_v59 = vadd.f32 %v376_v57, %v208_v53  ;;  %v378_v60 = vpop.f32.mrb[1].mxu1 }
  0xf2   : > { %v379_v63 = vadd.f32 %v378_v60, %v208_v53 }
  0xf3   : > { %v523_v61 = vadd.f32 %v308_v58, %v306_v55 }
  0xf5   : > { %v524_v62 = vadd.f32 %v523_v61, %v377_v59 }
  0xf7   : > { %v525_v0 = vadd.f32 %v524_v62, %v379_v63  ;;  %v447_v1 = vpop.f32.mrb[2].mxu0 }
  0xf8   : > { %v448_v2 = vadd.f32 %v447_v1, %v208_v53  ;;  %v518_v3 = vpop.f32.mrb[2].mxu1  ;;  %v449_v4 = vpop.f32.mrb[3].mxu0 }
  0xf9   : > { %v450_v5 = vadd.f32 %v449_v4, %v208_v53  ;;  %v520_v6 = vpop.f32.mrb[3].mxu1  ;;  %v519_v9 = vadd.f32 %v518_v3, %v208_v53 }
  0xfa   : > { %v526_v7 = vadd.f32 %v525_v0, %v448_v2  ;;  %v521_v8 = vadd.f32 %v520_v6, %v208_v53 }
  0xfc   : > { %v527_v10 = vadd.f32 %v526_v7, %v450_v5  ;;  %v530_v12 = vsel %vm529_vm4, %v521_v8, 0.0 }
  0xfe   : > { %v528_v11 = vadd.f32 %v527_v10, %v519_v9 }
 0x100   : > { %v531_v13 = vadd.f32 %v530_v12, %v528_v11 }
 0x102   : > { %532 = vadd.xlane.f32.xlu0 %v531_v13 }
 0x18f   : > { %v533_v14 = vpop.xlane.xlu0 %532 }
 0x190   : > { %v535_v15 = vmul.f32 0.0011111111, %v533_v14 }
 0x192   : > { %v536_v16 = vsub.f32 %v306_v55, %v535_v15  ;;  %v537_v17 = vsub.f32 %v308_v58, %v535_v15  ;;  %v538_v18 = vsub.f32 %v377_v59, %v535_v15  ;;  %v539_v19 = vsub.f32 %v379_v63, %v535_v15 }
 0x193   : > { %v540_v22 = vsub.f32 %v448_v2, %v535_v15  ;;  %v541_v25 = vsub.f32 %v450_v5, %v535_v15  ;;  %v543_v28 = vsub.f32 %v521_v8, %v535_v15  ;;  %v542_v29 = vsub.f32 %v519_v9, %v535_v15 }
 0x194   : > { %v544_v20 = vmul.f32 %v536_v16, %v536_v16  ;;  %v545_v21 = vmul.f32 %v537_v17, %v537_v17  ;;  %v546_v23 = vmul.f32 %v538_v18, %v538_v18  ;;  %v547_v26 = vmul.f32 %v539_v19, %v539_v19 }
 0x195   : > { %v548_v30 = vmul.f32 %v540_v22, %v540_v22  ;;  %v549_v32 = vmul.f32 %v541_v25, %v541_v25  ;;  %v551_v34 = vmul.f32 %v543_v28, %v543_v28  ;;  %v550_v35 = vmul.f32 %v542_v29, %v542_v29 }
 0x196   : > { %v552_v24 = vadd.f32 %v545_v21, %v544_v20 }
 0x197   : > { %v558_v38 = vsel %vm529_vm4, %v551_v34, 0.0 }
 0x198   : > { %v553_v27 = vadd.f32 %v552_v24, %v546_v23 }
 0x19a   : > { %v554_v31 = vadd.f32 %v553_v27, %v547_v26 }
 0x19c   : > { %v555_v33 = vadd.f32 %v554_v31, %v548_v30 }
 0x19e   : > { %v556_v36 = vadd.f32 %v555_v33, %v549_v32 }
 0x1a0   : > { %v557_v37 = vadd.f32 %v556_v36, %v550_v35 }
 0x1a2   : > { %v559_v39 = vadd.f32 %v558_v38, %v557_v37 }
 0x1a4   : > { %560 = vadd.xlane.f32.xlu1 %v559_v39 }
 0x231   : > { %v561_v40 = vpop.xlane.xlu1 %560 }
 0x232   : > { %v562_v41 = vmul.f32 0.0011111111, %v561_v40 }
 0x234   : > { %v563_v42 = vadd.f32 1e-05, %v562_v41 }
 0x236   : > { %721 = vrsqrt.f32 %v563_v42 }
 0x240   : > { %v722_v43 = vpop.eup %721 }
 0x241   : > { %v565_v44 = vmul.f32 %v722_v43, %v536_v16  ;;  %v566_v45 = vmul.f32 %v722_v43, %v537_v17  ;;  %v567_v46 = vmul.f32 %v722_v43, %v538_v18  ;;  %v568_v47 = vmul.f32 %v722_v43, %v539_v19 }
 0x242   : > { %v569_v48 = vmul.f32 %v722_v43, %v540_v22  ;;  %v570_v49 = vmul.f32 %v722_v43, %v541_v25  ;;  %v571_v50 = vmul.f32 %v722_v43, %v542_v29  ;;  %v572_v51 = vmul.f32 %v722_v43, %v543_v28 }
 0x243   : > { %v573_v52 = vmax.f32 %v565_v44, 0.0  ;;  %v574_v53 = vmax.f32 %v566_v45, 0.0  ;;  %v575_v54 = vmax.f32 %v567_v46, 0.0  ;;  %v576_v55 = vmax.f32 %v568_v47, 0.0 }
 0x244   : > { %v577_v56 = vmax.f32 %v569_v48, 0.0  ;;  %v578_v57 = vmax.f32 %v570_v49, 0.0  ;;  %v579_v58 = vmax.f32 %v571_v50, 0.0  ;;  %v580_v59 = vmax.f32 %v572_v51, 0.0 }
 0x245   : > { %581 = vst [vmem:[%s170_s25] sm:$0xff] %v573_v52  ;;  %582 = vst [vmem:[%s170_s25 + $0x8] sm:$0xff] %v574_v53 }
 0x246   : > { %583 = vst [vmem:[%s170_s25 + $0x10] sm:$0xff] %v575_v54  ;;  %584 = vst [vmem:[%s170_s25 + $0x18] sm:$0xff] %v576_v55 }
 0x247   : > { %585 = vst [vmem:[%s170_s25 + $0x20] sm:$0xff] %v577_v56  ;;  %586 = vst [vmem:[%s170_s25 + $0x28] sm:$0xff] %v578_v57 }
 0x248   : > { %587 = vst [vmem:[%s170_s25 + $0x30] sm:$0xff] %v579_v58  ;;  %588 = vst.msk [vmem:[%s170_s25 + $0x38] sm:$0xff] %vm529_vm4, %v580_v59 }
 0x249 PF: > { %s13_s12 = sadd.s32 1, %s729_s12  }
 0x24a   : > { %p10_p4 = scmp.ge.s32.totalorder %s13_s12, 4  }
 0x24c   :  { %12 = sbr.rel (!%p10_p4) target bundleno = 1 (0x1), region = 62 }

// kernel: _generator_forward.15
= control target key start
LH: loop header
LB: loop body
LE: loop exit
PB: predicated region body
PF: predicated region fallthrough
CT: control target
= control target key end

     0   :  { %s473_s12 = smov 0   ;;  %s532_s0 = inlined_call_operand.vmem [shape: f32[2,72,196], index: 0, kind: input, shape index: {}]   ;;  %s533_s1 = inlined_call_operand.vmem [shape: f32[16,72], index: 1, kind: input, shape index: {}]   ;;  %s534_s2 = inlined_call_operand.vmem [shape: f32[16,1], index: 2, kind: input, shape index: {}]   ;;  %s535_s3 = inlined_call_operand.vmem [shape: f32[2,16,196], index: 3, kind: output, shape index: {}]  }
   0x1 LB: > { %s388_s13 = sadd.s32 4294967295, %s449_s12   ;;  %p392_p0 = scmp.ge.s32.totalorder %s449_s12, 1  ;;  %s449_s12 = sphi %s473_s12, %s13_s12  }
   0x2   : > { %p137_p1 = scmp.lt.s32.totalorder %s449_s12, 3 }
   0x4   : > { %p138_p2 = pnand %p392_p0, %p137_p1 }
   0x5   : > { %p161_p3 = scmp.lt.s32.totalorder (!%p138_p2), %s388_s13, 1  ;;  %v451_v0 = vmov (!%p138_p2), 0.0   ;;  %v191_v1 = vld [vmem:[%s534_s2] sm:$0xff] (!%p138_p2)  ;;  %v452_v2 = vmov (!%p138_p2), 0   ;;  %v192_v3 = vld [vmem:[%s534_s2 + $0x8] sm:$0xff] (!%p138_p2)  ;;  %vm203_vm0 = vcmask (!%p138_p2), 588800  }
   0x6   : > { %141 = sbr.rel (%p138_p2) target bundleno = 573 (0x23d), region = 32  ;;  %274 = vmatprep.mubr.f32.mxu0 (!%p138_p2), %v451_v0  ;;  %280 = vmatprep.mubr.f32.mxu1 (!%p138_p2), %v451_v0  ;;  %v171_v30 = vld [vmem:[%s533_s1] sm:$0xff] (!%p138_p2)  ;;  %v172_v31 = vld [vmem:[%s533_s1 + $0x8] sm:$0xff] (!%p138_p2)  ;;  %vm287_vm1 = vcmask (!%p138_p2), 556032  }
   0x7   : > { %438 = vset.pattern.permute.xlu0 (!%p138_p2), %v452_v2 }
   0x8   : > { %195 = vperm.xlu0 (!%p138_p2), %438, %v191_v1  }
   0xc   : > { %200 = vperm.xlu0 (!%p138_p2), %438, %v192_v3  }
   0xd   : > { %s537_s13 = smov (!%p161_p3, %s388_s13), 1 }
   0xe   : > { %s427_s16 = smul.u32 144, %s537_s13  ;;  %s400_s26 = sshll.u32 %s537_s13, 5 }
   0xf   : > { %s170_s29 = scalar_lea.vmem %s535_s3, %s400_s26 }
  0x10   : > { %s493_s21 = scalar_lea.vmem %s532_s0, %s427_s16 }
  0x11   : > { %v174_v4 = vld [vmem:[%s493_s21 + $0x8] sm:$0xff]  ;;  %v176_v5 = vld [vmem:[%s493_s21 + $0x18] sm:$0xff]  ;;  %v173_v6 = vld [vmem:[%s493_s21] sm:$0xff] }
  0x12   : > { %v401_v7 = vpack.c.bf16 %v176_v5, %v174_v4  ;;  %v175_v8 = vld [vmem:[%s493_s21 + $0x10] sm:$0xff]  ;;  %v178_v9 = vld [vmem:[%s493_s21 + $0x28] sm:$0xff]  ;;  %v180_v10 = vld [vmem:[%s493_s21 + $0x38] sm:$0xff] }
  0x13   : > { %v403_v11 = vpack.c.bf16 %v175_v8, %v173_v6  ;;  %v405_v12 = vpack.c.bf16 %v180_v10, %v178_v9  ;;  %v177_v13 = vld [vmem:[%s493_s21 + $0x20] sm:$0xff]  ;;  %v179_v14 = vld [vmem:[%s493_s21 + $0x30] sm:$0xff]  ;;  %v182_v15 = vld [vmem:[%s493_s21 + $0x48] sm:$0xff] }
  0x14   : > { %402 = vmatprep.subr.bf16.mxu0 %v401_v7  ;;  %417 = vmatprep.subr.bf16.mxu1 %v401_v7  ;;  %v184_v16 = vld [vmem:[%s493_s21 + $0x58] sm:$0xff]  ;;  %v407_v17 = vpack.c.bf16 %v179_v14, %v177_v13  ;;  %v181_v19 = vld [vmem:[%s493_s21 + $0x40] sm:$0xff]  ;;  %v183_v20 = vld [vmem:[%s493_s21 + $0x50] sm:$0xff] }
  0x15   : > { %404 = vmatpush1.bf16.msra.mxu0 %v403_v11  ;;  %422 = vmatpush1.bf16.msra.mxu1 %v403_v11  ;;  %v409_v18 = vpack.c.bf16 %v184_v16, %v182_v15  ;;  %v186_v21 = vld [vmem:[%s493_s21 + $0x68] sm:$0xff]  ;;  %v188_v22 = vld [vmem:[%s493_s21 + $0x78] sm:$0xff]  ;;  %v411_v23 = vpack.c.bf16 %v183_v20, %v181_v19  ;;  %v185_v25 = vld [vmem:[%s493_s21 + $0x60] sm:$0xff] }
  0x16   : > { %406 = vmatprep.subr.bf16.mxu0 %v405_v12  ;;  %418 = vmatprep.subr.bf16.mxu1 %v405_v12  ;;  %v413_v24 = vpack.c.bf16 %v188_v22, %v186_v21  ;;  %v187_v26 = vld [vmem:[%s493_s21 + $0x70] sm:$0xff]  ;;  %v190_v28 = vld [vmem:[%s493_s21 + $0x88] sm:$0xff]  ;;  %v189_v29 = vld [vmem:[%s493_s21 + $0x80] sm:$0xff] }
  0x17   : > { %v415_v27 = vpack.c.bf16 %v187_v26, %v185_v25 }
  0x19   : > { %408 = vmatpush1.bf16.msra.mxu0 %v407_v17  ;;  %423 = vmatpush1.bf16.msra.mxu1 %v407_v17 }
  0x1a   : > { %410 = vmatprep.subr.bf16.mxu0 %v409_v18  ;;  %419 = vmatprep.subr.bf16.mxu1 %v409_v18 }
  0x1d   : > { %412 = vmatpush1.bf16.msra.mxu0 %v411_v23  ;;  %424 = vmatpush1.bf16.msra.mxu1 %v411_v23 }
  0x1e   : > { %414 = vmatprep.subr.bf16.mxu0 %v413_v24  ;;  %420 = vmatprep.subr.bf16.mxu1 %v413_v24 }
  0x21   : > { %416 = vmatpush1.bf16.msra.mxu0 %v415_v27  ;;  %425 = vmatpush1.bf16.msra.mxu1 %v415_v27 }
  0x22   : > { %226 = vmatprep.subr.mxu0 %v190_v28  ;;  %421 = vmatprep.subr.mxu1 %v190_v28 }
  0x25   : > { %227 = vmatpush1.msra.mxu0 %v189_v29  ;;  %426 = vmatpush1.msra.mxu1 %v189_v29 }
  0x26   : > { %396 = vmatmul.mubr.msk.f32.vlgmr.msra.gmra.mrb[0].mxu0 %vm203_vm0, %v171_v30  ;;  %397 = vmatmul.mubr.msk.f32.vlgmr.msra.gmra.mrb[0].mxu1 %vm203_vm0, %v172_v31 }
  0x87   : > { %v196_v32 = vpop.permute.xlu0 %195 }
  0x8b   : > { %v201_v33 = vpop.permute.xlu0 %200 }
  0xf9   : > { %v276_v34 = vpop.f32.mrb[0].mxu0  ;;  %v282_v35 = vpop.f32.mrb[0].mxu1 }
  0xfa   : > { %v278_v36 = vpop.f32.mrb[1].mxu0  ;;  %v284_v37 = vpop.f32.mrb[1].mxu1  ;;  %v277_v40 = vadd.f32 %v276_v34, %v196_v32  ;;  %v283_v42 = vadd.f32 %v282_v35, %v201_v33 }
  0xfb   : > { %v279_v38 = vadd.f32 %v278_v36, %v196_v32  ;;  %v285_v39 = vadd.f32 %v284_v37, %v201_v33 }
  0xfd   : > { %v288_v41 = vsel %vm287_vm1, %v279_v38, 0.0  ;;  %v292_v44 = vsel %vm287_vm1, %v285_v39, 0.0 }
  0xfe   : > { %v289_v43 = vadd.f32 %v288_v41, %v277_v40  ;;  %v293_v45 = vadd.f32 %v292_v44, %v283_v42 }
 0x100   : > { %290 = vadd.xlane.f32.xlu1 %v289_v43 }
 0x104   : > { %294 = vadd.xlane.f32.xlu1 %v293_v45 }
 0x18d   : > { %v291_v46 = vpop.xlane.xlu1 %290 }
 0x18e   : > { %v297_v47 = vmul.f32 0.0051020407, %v291_v46 }
 0x190   : > { %v299_v48 = vsub.f32 %v277_v40, %v297_v47  ;;  %v300_v49 = vsub.f32 %v279_v38, %v297_v47 }
 0x191   : > { %v295_v50 = vpop.xlane.xlu1 %294 }
 0x192   : > { %v298_v51 = vmul.f32 0.0051020407, %v295_v50  ;;  %v303_v52 = vmul.f32 %v299_v48, %v299_v48  ;;  %v304_v53 = vmul.f32 %v300_v49, %v300_v49 }
 0x194   : > { %v301_v54 = vsub.f32 %v283_v42, %v298_v51  ;;  %v302_v55 = vsub.f32 %v285_v39, %v298_v51  ;;  %v307_v56 = vsel %vm287_vm1, %v304_v53, 0.0 }
 0x195   : > { %v308_v57 = vadd.f32 %v307_v56, %v303_v52 }
 0x196   : > { %v305_v58 = vmul.f32 %v301_v54, %v301_v54  ;;  %v306_v59 = vmul.f32 %v302_v55, %v302_v55 }
 0x197   : > { %309 = vadd.xlane.f32.xlu0 %v308_v57 }
 0x198   : > { %v311_v60 = vsel %vm287_vm1, %v306_v59, 0.0 }
 0x199   : > { %v312_v61 = vadd.f32 %v311_v60, %v305_v58 }
 0x19b   : > { %313 = vadd.xlane.f32.xlu1 %v312_v61 }
 0x224   : > { %v310_v62 = vpop.xlane.xlu0 %309 }
 0x225   : > { %v315_v63 = vmul.f32 0.0051020407, %v310_v62 }
 0x227   : > { %v317_v0 = vadd.f32 1e-05, %v315_v63 }
 0x228   : > { %v314_v1 = vpop.xlane.xlu1 %313 }
 0x229   : > { %439 = vrsqrt.f32 %v317_v0  ;;  %v316_v2 = vmul.f32 0.0051020407, %v314_v1 }
 0x22b   : > { %v318_v3 = vadd.f32 1e-05, %v316_v2 }
 0x22d   : > { %441 = vrsqrt.f32 %v318_v3 }
 0x233   : > { %v440_v4 = vpop.eup %439 }
 0x234   : > { %v321_v5 = vmul.f32 %v440_v4, %v299_v48  ;;  %v322_v6 = vmul.f32 %v440_v4, %v300_v49 }
 0x236   : > { %v325_v7 = vmax.f32 %v321_v5, 0.0  ;;  %v326_v8 = vmax.f32 %v322_v6, 0.0 }
 0x237   : > { %v442_v9 = vpop.eup %441 }
 0x238   : > { %329 = vst [vmem:[%s170_s29] sm:$0xff] %v325_v7  ;;  %330 = vst.msk [vmem:[%s170_s29 + $0x8] sm:$0xff] %vm287_vm1, %v326_v8  ;;  %v323_v10 = vmul.f32 %v442_v9, %v301_v54  ;;  %v324_v11 = vmul.f32 %v442_v9, %v302_v55 }
 0x23a   : > { %v327_v12 = vmax.f32 %v323_v10, 0.0  ;;  %v328_v13 = vmax.f32 %v324_v11, 0.0 }
 0x23c   : > { %331 = vst [vmem:[%s170_s29 + $0x10] sm:$0xff] %v327_v12  ;;  %332 = vst.msk [vmem:[%s170_s29 + $0x18] sm:$0xff] %vm287_vm1, %v328_v13 }
 0x23d PF: > { %s13_s12 = sadd.s32 1, %s449_s12  }
 0x23e   : > { %p10_p4 = scmp.ge.s32.totalorder %s13_s12, 4  }
 0x240   :  { %12 = sbr.rel (!%p10_p4) target bundleno = 1 (0x1), region = 62 }

// kernel: _generator_forward.16
= control target key start
LH: loop header
LB: loop body
LE: loop exit
PB: predicated region body
PF: predicated region fallthrough
CT: control target
= control target key end

     0   :  { %s547_s12 = smov 0   ;;  %s658_s0 = inlined_call_operand.vmem [shape: f32[2,144,36], index: 0, kind: input, shape index: {}]   ;;  %s659_s1 = inlined_call_operand.vmem [shape: f32[32,144], index: 1, kind: input, shape index: {}]   ;;  %s660_s2 = inlined_call_operand.vmem [shape: f32[32,1], index: 2, kind: input, shape index: {}]   ;;  %s661_s3 = inlined_call_operand.vmem [shape: f32[2,32,36], index: 3, kind: output, shape index: {}]  }
   0x1 LB: > { %s436_s13 = sadd.s32 4294967295, %s523_s12   ;;  %p440_p0 = scmp.ge.s32.totalorder %s523_s12, 1  ;;  %s523_s12 = sphi %s547_s12, %s13_s12  }
   0x2   : > { %p137_p1 = scmp.lt.s32.totalorder %s523_s12, 3 }
   0x4   : > { %p138_p2 = pnand %p440_p0, %p137_p1 }
   0x5   : > { %p161_p3 = scmp.lt.s32.totalorder (!%p138_p2), %s436_s13, 1  ;;  %v172_v0 = vld [vmem:[%s659_s1 + $0x8] sm:$0xff] (!%p138_p2)  ;;  %vm221_vm0 = vcmask (!%p138_p2), 130048   ;;  %v525_v2 = vmov (!%p138_p2), 0.0|0.0   ;;  %v197_v3 = vld [vmem:[%s660_s2] sm:$0xff] (!%p138_p2)  ;;  %v526_v4 = vmov (!%p138_p2), 0  }
   0x6   : > { %141 = sbr.rel (%p138_p2) target bundleno = 589 (0x24d), region = 32  ;;  %v176_v1 = vld [vmem:[%s659_s1 + $0x28] sm:$0xff] (!%p138_p2)  ;;  %451 = vmatprep.subr.bf16.mxu0 (!%p138_p2), %v525_v2  ;;  %478 = vmatprep.subr.bf16.mxu1 (!%p138_p2), %v525_v2  ;;  %v199_v5 = vld [vmem:[%s660_s2 + $0x10] sm:$0xff] (!%p138_p2)  ;;  %v200_v7 = vld [vmem:[%s660_s2 + $0x18] sm:$0xff] (!%p138_p2)  ;;  %vm319_vm1 = vcmask (!%p138_p2), 293888  }
   0x7   : > { %444 = vmatprep.mubr.msk.f32.mxu0 (!%p138_p2), %vm221_vm0, %v172_v0  ;;  %446 = vmatprep.mubr.msk.f32.mxu1 (!%p138_p2), %vm221_vm0, %v176_v1  ;;  %v198_v6 = vld [vmem:[%s660_s2 + $0x8] sm:$0xff] (!%p138_p2)  ;;  %v171_v35 = vld [vmem:[%s659_s1] sm:$0xff] (!%p138_p2)  ;;  %v174_v37 = vld [vmem:[%s659_s1 + $0x18] sm:$0xff] (!%p138_p2) }
   0x8   : > { %507 = vset.pattern.permute.xlu0 (!%p138_p2), %v526_v4  ;;  %508 = vset.pattern.permute.xlu1 (!%p138_p2), %v526_v4  ;;  %v175_v36 = vld [vmem:[%s659_s1 + $0x20] sm:$0xff] (!%p138_p2)  ;;  %v178_v38 = vld [vmem:[%s659_s1 + $0x38] sm:$0xff] (!%p138_p2)  ;;  %v173_v39 = vld [vmem:[%s659_s1 + $0x10] sm:$0xff] (!%p138_p2) }
   0x9   : > { %203 = vperm.xlu0 (!%p138_p2), %507, %v197_v3   ;;  %213 = vperm.xlu1 (!%p138_p2), %508, %v199_v5   ;;  %v177_v40 = vld [vmem:[%s659_s1 + $0x30] sm:$0xff] (!%p138_p2) }
   0xd   : > { %s663_s13 = smov (!%p161_p3, %s436_s13), 1  ;;  %208 = vperm.xlu0 %507, %v198_v6   ;;  %218 = vperm.xlu1 %508, %v200_v7  }
   0xe   : > { %s496_s22 = smul.u32 144, %s663_s13  ;;  %s450_s17 = sshll.u32 %s663_s13, 5 }
   0xf   : > { %s170_s20 = scalar_lea.vmem %s661_s3, %s450_s17 }
  0x10   : > { %s583_s29 = scalar_lea.vmem %s658_s0, %s496_s22 }
  0x11   : > { %v179_v8 = vld [vmem:[%s583_s29] sm:$0xff]  ;;  %v180_v9 = vld [vmem:[%s583_s29 + $0x8] sm:$0xff]  ;;  %v181_v10 = vld [vmem:[%s583_s29 + $0x10] sm:$0xff] }
  0x12   : > { %v452_v11 = vpack.c.bf16 %v180_v9, %v179_v8  ;;  %v182_v12 = vld [vmem:[%s583_s29 + $0x18] sm:$0xff]  ;;  %v183_v14 = vld [vmem:[%s583_s29 + $0x20] sm:$0xff]  ;;  %v184_v15 = vld [vmem:[%s583_s29 + $0x28] sm:$0xff] }
  0x13   : > { %v455_v13 = vpack.c.bf16 %v182_v12, %v181_v10  ;;  %v458_v16 = vpack.c.bf16 %v184_v15, %v183_v14  ;;  %v185_v17 = vld [vmem:[%s583_s29 + $0x30] sm:$0xff]  ;;  %v186_v18 = vld [vmem:[%s583_s29 + $0x38] sm:$0xff]  ;;  %v187_v20 = vld [vmem:[%s583_s29 + $0x40] sm:$0xff] }
  0x14   : > { %453 = vmatpush1.bf16.msra.mxu0 %v452_v11  ;;  %487 = vmatpush1.bf16.msra.mxu1 %v452_v11  ;;  %v461_v19 = vpack.c.bf16 %v186_v18, %v185_v17  ;;  %v188_v21 = vld [vmem:[%s583_s29 + $0x48] sm:$0xff]  ;;  %v189_v23 = vld [vmem:[%s583_s29 + $0x50] sm:$0xff]  ;;  %v190_v24 = vld [vmem:[%s583_s29 + $0x58] sm:$0xff] }
  0x15   : > { %454 = vmatprep.subr.bf16.mxu0 %v525_v2  ;;  %479 = vmatprep.subr.bf16.mxu1 %v525_v2  ;;  %v464_v22 = vpack.c.bf16 %v188_v21, %v187_v20  ;;  %v467_v25 = vpack.c.bf16 %v190_v24, %v189_v23  ;;  %v191_v26 = vld [vmem:[%s583_s29 + $0x60] sm:$0xff]  ;;  %v192_v27 = vld [vmem:[%s583_s29 + $0x68] sm:$0xff]  ;;  %v193_v29 = vld [vmem:[%s583_s29 + $0x70] sm:$0xff] }
  0x16   : > { %v470_v28 = vpack.c.bf16 %v192_v27, %v191_v26  ;;  %v194_v30 = vld [vmem:[%s583_s29 + $0x78] sm:$0xff]  ;;  %v195_v32 = vld [vmem:[%s583_s29 + $0x80] sm:$0xff]  ;;  %v196_v33 = vld [vmem:[%s583_s29 + $0x88] sm:$0xff] }
  0x17   : > { %v473_v31 = vpack.c.bf16 %v194_v30, %v193_v29  ;;  %v476_v34 = vpack.c.bf16 %v196_v33, %v195_v32 }
  0x18   : > { %456 = vmatpush1.bf16.msra.mxu0 %v455_v13  ;;  %488 = vmatpush1.bf16.msra.mxu1 %v455_v13 }
  0x19   : > { %457 = vmatprep.subr.bf16.mxu0 %v525_v2  ;;  %480 = vmatprep.subr.bf16.mxu1 %v525_v2 }
  0x1c   : > { %459 = vmatpush1.bf16.msra.mxu0 %v458_v16  ;;  %489 = vmatpush1.bf16.msra.mxu1 %v458_v16 }
  0x1d   : > { %460 = vmatprep.subr.bf16.mxu0 %v525_v2  ;;  %481 = vmatprep.subr.bf16.mxu1 %v525_v2 }
  0x20   : > { %462 = vmatpush1.bf16.msra.mxu0 %v461_v19  ;;  %490 = vmatpush1.bf16.msra.mxu1 %v461_v19 }
  0x21   : > { %463 = vmatprep.subr.bf16.mxu0 %v525_v2  ;;  %482 = vmatprep.subr.bf16.mxu1 %v525_v2 }
  0x24   : > { %465 = vmatpush1.bf16.msra.mxu0 %v464_v22  ;;  %491 = vmatpush1.bf16.msra.mxu1 %v464_v22 }
  0x25   : > { %466 = vmatprep.subr.bf16.mxu0 %v525_v2  ;;  %483 = vmatprep.subr.bf16.mxu1 %v525_v2 }
  0x28   : > { %468 = vmatpush1.bf16.msra.mxu0 %v467_v25  ;;  %492 = vmatpush1.bf16.msra.mxu1 %v467_v25 }
  0x29   : > { %469 = vmatprep.subr.bf16.mxu0 %v525_v2  ;;  %484 = vmatprep.subr.bf16.mxu1 %v525_v2 }
  0x2c   : > { %471 = vmatpush1.bf16.msra.mxu0 %v470_v28  ;;  %493 = vmatpush1.bf16.msra.mxu1 %v470_v28 }
  0x2d   : > { %472 = vmatprep.subr.bf16.mxu0 %v525_v2  ;;  %485 = vmatprep.subr.bf16.mxu1 %v525_v2 }
  0x30   : > { %474 = vmatpush1.bf16.msra.mxu0 %v473_v31  ;;  %494 = vmatpush1.bf16.msra.mxu1 %v473_v31 }
  0x31   : > { %475 = vmatprep.subr.bf16.mxu0 %v525_v2  ;;  %486 = vmatprep.subr.bf16.mxu1 %v525_v2 }
  0x34   : > { %477 = vmatpush1.bf16.msra.mxu0 %v476_v34  ;;  %495 = vmatpush1.bf16.msra.mxu1 %v476_v34 }
  0x37   : > { %299 = vmatmul.mubr.f32.vlgmr.msra.gmra.mrb[0].mxu0 %v171_v35  ;;  %309 = vmatmul.mubr.f32.vlgmr.msra.gmra.mrb[0].mxu1 %v175_v36 }
  0x38   : > { %445 = vmatprep.mubr.msk.f32.mxu0 %vm221_vm0, %v174_v37  ;;  %447 = vmatprep.mubr.msk.f32.mxu1 %vm221_vm0, %v178_v38 }
  0x3b   : > { %304 = vmatmul.mubr.f32.gmra.mrb[2].mxu0 %v173_v39  ;;  %314 = vmatmul.mubr.f32.gmra.mrb[2].mxu1 %v177_v40 }
  0x88   : > { %v204_v41 = vpop.permute.xlu0 %203  ;;  %v214_v42 = vpop.permute.xlu1 %213 }
  0x8c   : > { %v209_v49 = vpop.permute.xlu0 %208  ;;  %v219_v50 = vpop.permute.xlu1 %218 }
 0x10a   : > { %v300_v43 = vpop.f32.mrb[0].mxu0  ;;  %v310_v44 = vpop.f32.mrb[0].mxu1 }
 0x10b   : > { %v301_v45 = vadd.f32 %v300_v43, %v204_v41  ;;  %v302_v46 = vpop.f32.mrb[1].mxu0  ;;  %v311_v47 = vadd.f32 %v310_v44, %v214_v42  ;;  %v312_v48 = vpop.f32.mrb[1].mxu1 }
 0x10d   : > { %v320_v51 = vsel %vm319_vm1, %v301_v45, 0.0  ;;  %v326_v57 = vsel %vm319_vm1, %v311_v47, 0.0 }
 0x10e   : > { %v305_v52 = vpop.f32.mrb[2].mxu0  ;;  %v315_v53 = vpop.f32.mrb[2].mxu1  ;;  %321 = vadd.xlane.f32.xlu0 %v320_v51 }
 0x10f   : > { %v306_v54 = vadd.f32 %v305_v52, %v209_v49  ;;  %v307_v55 = vpop.f32.mrb[3].mxu0  ;;  %v317_v56 = vpop.f32.mrb[3].mxu1  ;;  %v316_v58 = vadd.f32 %v315_v53, %v219_v50 }
 0x111   : > { %v323_v59 = vsel %vm319_vm1, %v306_v54, 0.0  ;;  %v329_v60 = vsel %vm319_vm1, %v316_v58, 0.0 }
 0x112   : > { %324 = vadd.xlane.f32.xlu1 %v323_v59  ;;  %327 = vadd.xlane.f32.xlu0 %v326_v57 }
 0x116   : > { %330 = vadd.xlane.f32.xlu0 %v329_v60 }
 0x19b   : > { %v322_v61 = vpop.xlane.xlu0 %321 }
 0x19c   : > { %v333_v62 = vmul.f32 0.027777778, %v322_v61 }
 0x19e   : > { %v337_v63 = vsub.f32 %v301_v45, %v333_v62 }
 0x19f   : > { %v325_v0 = vpop.xlane.xlu1 %324  ;;  %v328_v1 = vpop.xlane.xlu0 %327 }
 0x1a0   : > { %v334_v2 = vmul.f32 0.027777778, %v325_v0  ;;  %v335_v3 = vmul.f32 0.027777778, %v328_v1  ;;  %v341_v4 = vmul.f32 %v337_v63, %v337_v63 }
 0x1a2   : > { %v338_v5 = vsub.f32 %v306_v54, %v334_v2  ;;  %v339_v6 = vsub.f32 %v311_v47, %v335_v3  ;;  %v345_v7 = vsel %vm319_vm1, %v341_v4, 0.0 }
 0x1a3   : > { %346 = vadd.xlane.f32.xlu1 %v345_v7  ;;  %v331_v8 = vpop.xlane.xlu0 %330 }
 0x1a4   : > { %v336_v9 = vmul.f32 0.027777778, %v331_v8  ;;  %v342_v10 = vmul.f32 %v338_v5, %v338_v5  ;;  %v343_v11 = vmul.f32 %v339_v6, %v339_v6 }
 0x1a6   : > { %v340_v12 = vsub.f32 %v316_v58, %v336_v9  ;;  %v348_v13 = vsel %vm319_vm1, %v342_v10, 0.0  ;;  %v351_v14 = vsel %vm319_vm1, %v343_v11, 0.0 }
 0x1a7   : > { %349 = vadd.xlane.f32.xlu0 %v348_v13  ;;  %352 = vadd.xlane.f32.xlu1 %v351_v14 }
 0x1a8   : > { %v344_v15 = vmul.f32 %v340_v12, %v340_v12 }
 0x1aa   : > { %v354_v16 = vsel %vm319_vm1, %v344_v15, 0.0 }
 0x1ab   : > { %355 = vadd.xlane.f32.xlu0 %v354_v16 }
 0x230   : > { %v347_v17 = vpop.xlane.xlu1 %346 }
 0x231   : > { %v357_v18 = vmul.f32 0.027777778, %v347_v17 }
 0x233   : > { %v361_v19 = vadd.f32 1e-05, %v357_v18 }
 0x234   : > { %v353_v20 = vpop.xlane.xlu1 %352  ;;  %v350_v21 = vpop.xlane.xlu0 %349 }
 0x235   : > { %509 = vrsqrt.f32 %v361_v19  ;;  %v359_v22 = vmul.f32 0.027777778, %v353_v20  ;;  %v358_v23 = vmul.f32 0.027777778, %v350_v21 }
 0x237   : > { %v363_v24 = vadd.f32 1e-05, %v359_v22  ;;  %v362_v25 = vadd.f32 1e-05, %v358_v23 }
 0x238   : > { %v356_v26 = vpop.xlane.xlu0 %355 }
 0x239   : > { %511 = vrsqrt.f32 %v363_v24  ;;  %v360_v27 = vmul.f32 0.027777778, %v356_v26 }
 0x23a   : > { %513 = vrsqrt.f32 %v362_v25 }
 0x23b   : > { %v364_v28 = vadd.f32 1e-05, %v360_v27 }
 0x23d   : > { %515 = vrsqrt.f32 %v364_v28 }
 0x23f   : > { %v510_v29 = vpop.eup %509 }
 0x240   : > { %v369_v30 = vmul.f32 %v510_v29, %v337_v63 }
 0x242   : > { %v373_v31 = vmax.f32 %v369_v30, 0.0 }
 0x243   : > { %v512_v32 = vpop.eup %511 }
 0x244   : > { %v514_v33 = vpop.eup %513  ;;  %377 = vst.msk [vmem:[%s170_s20] sm:$0xff] %vm319_vm1, %v373_v31  ;;  %v371_v34 = vmul.f32 %v512_v32, %v339_v6 }
 0x245   : > { %v370_v35 = vmul.f32 %v514_v33, %v338_v5 }
 0x246   : > { %v375_v36 = vmax.f32 %v371_v34, 0.0 }
 0x247   : > { %v516_v37 = vpop.eup %515  ;;  %v374_v38 = vmax.f32 %v370_v35, 0.0 }
 0x248   : > { %379 = vst.msk [vmem:[%s170_s20 + $0x10] sm:$0xff] %vm319_vm1, %v375_v36  ;;  %v372_v39 = vmul.f32 %v516_v37, %v340_v12 }
 0x249   : > { %378 = vst.msk [vmem:[%s170_s20 + $0x8] sm:$0xff] %vm319_vm1, %v374_v38 }
 0x24a   : > { %v376_v40 = vmax.f32 %v372_v39, 0.0 }
 0x24c   : > { %380 = vst.msk [vmem:[%s170_s20 + $0x18] sm:$0xff] %vm319_vm1, %v376_v40 }
 0x24d PF: > { %s13_s12 = sadd.s32 1, %s523_s12  }
 0x24e   : > { %p10_p4 = scmp.ge.s32.totalorder %s13_s12, 4  }
 0x250   :  { %12 = sbr.rel (!%p10_p4) target bundleno = 1 (0x1), region = 62 }

// kernel: _generator_forward.17
= control target key start
LH: loop header
LB: loop body
LE: loop exit
PB: predicated region body
PF: predicated region fallthrough
CT: control target
= control target key end

     0   :  { %s716_s15 = smov 0   ;;  %s843_s0 = inlined_call_operand.vmem [shape: f32[2,288,36], index: 0, kind: input, shape index: {}]   ;;  %s844_s1 = inlined_call_operand.vmem [shape: f32[32,288], index: 1, kind: input, shape index: {}]   ;;  %s845_s2 = inlined_call_operand.vmem [shape: f32[32,1], index: 2, kind: input, shape index: {}]   ;;  %s846_s3 = inlined_call_operand.vmem [shape: f32[32,1], index: 3, kind: input, shape index: {}]   ;;  %s847_s4 = inlined_call_operand.vmem [shape: f32[2,32,36], index: 4, kind: output, shape index: {}]  }
   0x1 LB: > { %s549_s16 = sadd.s32 4294967295, %s688_s15   ;;  %p553_p0 = scmp.ge.s32.totalorder %s688_s15, 1  ;;  %s688_s15 = sphi %s716_s15, %s14_s15  }
   0x2   : > { %p162_p1 = scmp.lt.s32.totalorder %s688_s15, 3 }
   0x4   : > { %p163_p2 = pnand %p553_p0, %p162_p1 }
   0x5   : > { %p188_p3 = scmp.lt.s32.totalorder (!%p163_p2), %s549_s16, 1  ;;  %v199_v0 = vld [vmem:[%s844_s1 + $0x8] sm:$0xff] (!%p163_p2)  ;;  %v200_v1 = vld [vmem:[%s844_s1 + $0x10] sm:$0xff] (!%p163_p2)  ;;  %vm246_vm0 = vcmask (!%p163_p2), 261120   ;;  %v690_v2 = vmov (!%p163_p2), 0   ;;  %v429_v4 = vld [vmem:[%s845_s2] sm:$0xff] (!%p163_p2) }
   0x6   : > { %166 = sbr.rel (%p163_p2) target bundleno = 288 (0x120), region = 36  ;;  %323 = vmatprep.mubr.f32.mxu0 (!%p163_p2), %v199_v0  ;;  %624 = vmatprep.mubr.msk.f32.mxu1 (!%p163_p2), %vm246_vm0, %v200_v1  ;;  %v431_v3 = vld [vmem:[%s845_s2 + $0x10] sm:$0xff] (!%p163_p2)  ;;  %v432_v5 = vld [vmem:[%s845_s2 + $0x18] sm:$0xff] (!%p163_p2)  ;;  %v430_v6 = vld [vmem:[%s845_s2 + $0x8] sm:$0xff] (!%p163_p2)  ;;  %vm489_vm1 = vcmask (!%p163_p2), 293888  }
   0x7   : > { %681 = vset.pattern.permute.xlu1 (!%p163_p2), %v690_v2  ;;  %680 = vset.pattern.permute.xlu0 (!%p163_p2), %v690_v2  ;;  %v458_v20 = vld [vmem:[%s846_s3 + $0x8] sm:$0xff] (!%p163_p2)  ;;  %v457_v21 = vld [vmem:[%s846_s3] sm:$0xff] (!%p163_p2)  ;;  %v460_v28 = vld [vmem:[%s846_s3 + $0x18] sm:$0xff] (!%p163_p2) }
   0x8   : > { %445 = vperm.xlu1 (!%p163_p2), %681, %v431_v3   ;;  %435 = vperm.xlu0 (!%p163_p2), %680, %v429_v4   ;;  %v459_v29 = vld [vmem:[%s846_s3 + $0x10] sm:$0xff] (!%p163_p2)  ;;  %v203_v52 = vld [vmem:[%s844_s1 + $0x28] sm:$0xff] (!%p163_p2)  ;;  %v206_v55 = vld [vmem:[%s844_s1 + $0x40] sm:$0xff] (!%p163_p2) }
   0x9   : > { %v209_v60 = vld [vmem:[%s844_s1 + $0x58] sm:$0xff] (!%p163_p2)  ;;  %v198_v4 = vld [vmem:[%s844_s1] sm:$0xff] (!%p163_p2) }
   0xc   : > { %450 = vperm.xlu1 (!%p163_p2), %681, %v432_v5   ;;  %440 = vperm.xlu0 (!%p163_p2), %680, %v430_v6   ;;  %v202_v5 = vld [vmem:[%s844_s1 + $0x20] sm:$0xff] (!%p163_p2)  ;;  %v201_v6 = vld [vmem:[%s844_s1 + $0x18] sm:$0xff] (!%p163_p2) }
   0xd   : > { %s849_s16 = smov (!%p188_p3, %s549_s16), 1 }
   0xe   : > { %s670_s21 = smul.u32 288, %s849_s16  ;;  %s563_s11 = sshll.u32 %s849_s16, 5 }
   0xf   : > { %s197_s14 = scalar_lea.vmem %s847_s4, %s563_s11 }
  0x10   : > { %s743_s28 = scalar_lea.vmem %s843_s0, %s670_s21  ;;  %468 = vperm.xlu1 %681, %v458_v20   ;;  %463 = vperm.xlu0 %680, %v457_v21  }
  0x11   : > { %v226_v7 = vld [vmem:[%s743_s28 + $0x80] sm:$0xff]  ;;  %v227_v8 = vld [vmem:[%s743_s28 + $0x88] sm:$0xff]  ;;  %v228_v12 = vld [vmem:[%s743_s28 + $0x90] sm:$0xff] }
  0x12   : > { %v210_v9 = vld [vmem:[%s743_s28] sm:$0xff]  ;;  %v630_v10 = vpack.c.bf16 %v227_v8, %v226_v7  ;;  %v211_v11 = vld [vmem:[%s743_s28 + $0x8] sm:$0xff]  ;;  %v229_v13 = vld [vmem:[%s743_s28 + $0x98] sm:$0xff] }
  0x13   : > { %v632_v14 = vpack.c.bf16 %v211_v11, %v210_v9  ;;  %v634_v15 = vpack.c.bf16 %v229_v13, %v228_v12  ;;  %v212_v16 = vld [vmem:[%s743_s28 + $0x10] sm:$0xff]  ;;  %v213_v17 = vld [vmem:[%s743_s28 + $0x18] sm:$0xff]  ;;  %v230_v18 = vld [vmem:[%s743_s28 + $0xa0] sm:$0xff] }
  0x14   : > { %631 = vmatprep.subr.bf16.mxu0 %v630_v10  ;;  %v231_v19 = vld [vmem:[%s743_s28 + $0xa8] sm:$0xff]  ;;  %v636_v22 = vpack.c.bf16 %v213_v17, %v212_v16  ;;  %v214_v24 = vld [vmem:[%s743_s28 + $0x20] sm:$0xff]  ;;  %v232_v26 = vld [vmem:[%s743_s28 + $0xb0] sm:$0xff]  ;;  %478 = vperm.xlu1 %681, %v460_v28  }
  0x15   : > { %633 = vmatpush3.bf16.msra.mxu0 %v632_v14  ;;  %v638_v23 = vpack.c.bf16 %v231_v19, %v230_v18  ;;  %v215_v25 = vld [vmem:[%s743_s28 + $0x28] sm:$0xff]  ;;  %v233_v27 = vld [vmem:[%s743_s28 + $0xb8] sm:$0xff]  ;;  %v216_v31 = vld [vmem:[%s743_s28 + $0x30] sm:$0xff]  ;;  %473 = vperm.xlu0 %680, %v459_v29  }
  0x16   : > { %635 = vmatprep.subr.bf16.mxu0 %v634_v15  ;;  %v640_v30 = vpack.c.bf16 %v215_v25, %v214_v24  ;;  %v642_v32 = vpack.c.bf16 %v233_v27, %v232_v26  ;;  %v217_v33 = vld [vmem:[%s743_s28 + $0x38] sm:$0xff]  ;;  %v242_v34 = vld [vmem:[%s743_s28 + $0x100] sm:$0xff]  ;;  %v243_v35 = vld [vmem:[%s743_s28 + $0x108] sm:$0xff] }
  0x17   : > { %v234_v36 = vld [vmem:[%s743_s28 + $0xc0] sm:$0xff]  ;;  %v235_v37 = vld [vmem:[%s743_s28 + $0xc8] sm:$0xff]  ;;  %v662_v38 = vpack.c.bf16 %v243_v35, %v242_v34  ;;  %v244_v39 = vld [vmem:[%s743_s28 + $0x110] sm:$0xff]  ;;  %v644_v41 = vpack.c.bf16 %v217_v33, %v216_v31 }
  0x18   : > { %v245_v40 = vld [vmem:[%s743_s28 + $0x118] sm:$0xff]  ;;  %v646_v43 = vpack.c.bf16 %v235_v37, %v234_v36  ;;  %v218_v44 = vld [vmem:[%s743_s28 + $0x40] sm:$0xff]  ;;  %v219_v45 = vld [vmem:[%s743_s28 + $0x48] sm:$0xff] }
  0x19   : > { %637 = vmatpush3.bf16.msra.mxu0 %v636_v22  ;;  %663 = vmatprep.subr.bf16.mxu1 %v662_v38  ;;  %v666_v42 = vpack.c.bf16 %v245_v40, %v244_v39  ;;  %v236_v46 = vld [vmem:[%s743_s28 + $0xd0] sm:$0xff]  ;;  %v237_v47 = vld [vmem:[%s743_s28 + $0xd8] sm:$0xff]  ;;  %v648_v48 = vpack.c.bf16 %v219_v45, %v218_v44  ;;  %v238_v53 = vld [vmem:[%s743_s28 + $0xe0] sm:$0xff] }
  0x1a   : > { %639 = vmatprep.subr.bf16.mxu0 %v638_v23  ;;  %665 = vmatpush3.bf16.msra.mxu1 %v662_v38  ;;  %v650_v49 = vpack.c.bf16 %v237_v47, %v236_v46  ;;  %v220_v50 = vld [vmem:[%s743_s28 + $0x50] sm:$0xff]  ;;  %v221_v51 = vld [vmem:[%s743_s28 + $0x58] sm:$0xff]  ;;  %v239_v54 = vld [vmem:[%s743_s28 + $0xe8] sm:$0xff] }
  0x1b   : > { %667 = vmatprep.subr.bf16.mxu1 %v666_v42  ;;  %v652_v56 = vpack.c.bf16 %v221_v51, %v220_v50  ;;  %v654_v57 = vpack.c.bf16 %v239_v54, %v238_v53  ;;  %v222_v58 = vld [vmem:[%s743_s28 + $0x60] sm:$0xff]  ;;  %v223_v59 = vld [vmem:[%s743_s28 + $0x68] sm:$0xff]  ;;  %v240_v61 = vld [vmem:[%s743_s28 + $0xf0] sm:$0xff] }
  0x1c   : > { %v241_v62 = vld [vmem:[%s743_s28 + $0xf8] sm:$0xff]  ;;  %v656_v63 = vpack.c.bf16 %v223_v59, %v222_v58  ;;  %v224_v1 = vld [vmem:[%s743_s28 + $0x70] sm:$0xff]  ;;  %v207_v10 = vld [vmem:[%s844_s1 + $0x48] sm:$0xff] }
  0x1d   : > { %641 = vmatpush3.bf16.msra.mxu0 %v640_v30  ;;  %v658_v0 = vpack.c.bf16 %v241_v62, %v240_v61  ;;  %v225_v2 = vld [vmem:[%s743_s28 + $0x78] sm:$0xff]  ;;  %v204_v8 = vld [vmem:[%s844_s1 + $0x30] sm:$0xff] }
  0x1e   : > { %643 = vmatprep.subr.bf16.mxu0 %v642_v32  ;;  %669 = vmatpush3.bf16.msra.mxu1 %v666_v42  ;;  %v660_v3 = vpack.c.bf16 %v225_v2, %v224_v1  ;;  %v205_v7 = vld [vmem:[%s844_s1 + $0x38] sm:$0xff]  ;;  %v208_v9 = vld [vmem:[%s844_s1 + $0x50] sm:$0xff] }
  0x21   : > { %645 = vmatpush3.bf16.msra.mxu0 %v644_v41  ;;  %625 = vmatmul.mubr.msk.f32.vlgmr.msra.gmra.mrb[0].mxu1 %vm246_vm0, %v203_v52 }
  0x22   : > { %647 = vmatprep.subr.bf16.mxu0 %v646_v43  ;;  %627 = vmatprep.mubr.msk.f32.mxu1 %vm246_vm0, %v206_v55 }
  0x25   : > { %649 = vmatpush3.bf16.msra.mxu0 %v648_v48  ;;  %628 = vmatmul.mubr.msk.f32.gmra.mrb[2].mxu1 %vm246_vm0, %v209_v60 }
  0x26   : > { %651 = vmatprep.subr.bf16.mxu0 %v650_v49 }
  0x29   : > { %653 = vmatpush3.bf16.msra.mxu0 %v652_v56 }
  0x2a   : > { %655 = vmatprep.subr.bf16.mxu0 %v654_v57 }
  0x2d   : > { %657 = vmatpush3.bf16.msra.mxu0 %v656_v63 }
  0x2e   : > { %659 = vmatprep.subr.bf16.mxu0 %v658_v0 }
  0x31   : > { %661 = vmatpush3.bf16.msra.mxu0 %v660_v3 }
  0x34   : > { %324 = vmatmul.mubr.f32.vlgmr.msra.gmra.mrb[0].mxu0 %v198_v4 }
  0x35   : > { %328 = vmatprep.mubr.f32.mxu0 %v202_v5 }
  0x38   : > { %329 = vmatmul.mubr.f32.gmra.mrb[2].mxu0 %v201_v6 }
  0x39   : > { %333 = vmatprep.mubr.f32.mxu0 %v205_v7 }
  0x3c   : > { %334 = vmatmul.mubr.f32.gmra.mrb[4].mxu0 %v204_v8 }
  0x3d   : > { %338 = vmatprep.mubr.f32.mxu0 %v208_v9 }
  0x40   : > { %339 = vmatmul.mubr.f32.gmra.mrb[6].mxu0 %v207_v10 }
  0x87   : > { %v436_v15 = vpop.permute.xlu0 %435  ;;  %v446_v16 = vpop.permute.xlu1 %445 }
  0x8b   : > { %v441_v18 = vpop.permute.xlu0 %440  ;;  %v451_v23 = vpop.permute.xlu1 %450 }
  0x8f   : > { %v464_v27 = vpop.permute.xlu0 %463  ;;  %v469_v35 = vpop.permute.xlu1 %468 }
  0x93   : > { %v479_v48 = vpop.permute.xlu1 %478 }
  0x94   : > { %v474_v43 = vpop.permute.xlu0 %473 }
  0xf4   : > { %v626_v11 = vpop.f32.mrb[0].mxu1 }
  0xf5   : > { %v410_v12 = vpop.f32.mrb[1].mxu1 }
  0xf8   : > { %v629_v13 = vpop.f32.mrb[2].mxu1 }
  0xf9   : > { %v420_v14 = vpop.f32.mrb[3].mxu1 }
 0x107   : > { %v596_v17 = vpop.f32.mrb[0].mxu0 }
 0x108   : > { %v597_v19 = vpop.f32.mrb[1].mxu0 }
 0x109   : > { %v598_v20 = vadd.f32 %v597_v19, %v596_v17 }
 0x10b   : > { %v411_v21 = vadd.f32 %v598_v20, %v410_v12  ;;  %v599_v22 = vpop.f32.mrb[2].mxu0 }
 0x10c   : > { %v600_v24 = vpop.f32.mrb[3].mxu0 }
 0x10d   : > { %v453_v25 = vmul.f32 %v436_v15, %v411_v21  ;;  %v601_v26 = vadd.f32 %v600_v24, %v599_v22 }
 0x10f   : > { %v481_v28 = vadd.f32 %v464_v27, %v453_v25  ;;  %v416_v29 = vadd.f32 %v626_v11, %v601_v26  ;;  %v602_v30 = vpop.f32.mrb[4].mxu0 }
 0x110   : > { %v603_v31 = vpop.f32.mrb[5].mxu0 }
 0x111   : > { %v485_v32 = vmax.f32 %v481_v28, 0.0  ;;  %v454_v33 = vmul.f32 %v441_v18, %v416_v29  ;;  %v604_v34 = vadd.f32 %v603_v31, %v602_v30 }
 0x113   : > { %490 = vst.msk [vmem:[%s197_s14] sm:$0xff] %vm489_vm1, %v485_v32  ;;  %v482_v36 = vadd.f32 %v469_v35, %v454_v33  ;;  %v421_v37 = vadd.f32 %v604_v34, %v420_v14  ;;  %v605_v38 = vpop.f32.mrb[6].mxu0 }
 0x114   : > { %v606_v39 = vpop.f32.mrb[7].mxu0 }
 0x115   : > { %v486_v40 = vmax.f32 %v482_v36, 0.0  ;;  %v455_v41 = vmul.f32 %v446_v16, %v421_v37  ;;  %v607_v42 = vadd.f32 %v606_v39, %v605_v38 }
 0x117   : > { %491 = vst.msk [vmem:[%s197_s14 + $0x8] sm:$0xff] %vm489_vm1, %v486_v40  ;;  %v483_v44 = vadd.f32 %v474_v43, %v455_v41  ;;  %v426_v45 = vadd.f32 %v629_v13, %v607_v42 }
 0x119   : > { %v487_v46 = vmax.f32 %v483_v44, 0.0  ;;  %v456_v47 = vmul.f32 %v451_v23, %v426_v45 }
 0x11b   : > { %492 = vst.msk [vmem:[%s197_s14 + $0x10] sm:$0xff] %vm489_vm1, %v487_v46  ;;  %v484_v49 = vadd.f32 %v479_v48, %v456_v47 }
 0x11d   : > { %v488_v50 = vmax.f32 %v484_v49, 0.0 }
 0x11f   : > { %493 = vst.msk [vmem:[%s197_s14 + $0x18] sm:$0xff] %vm489_vm1, %v488_v50 }
 0x120 PF: > { %s14_s15 = sadd.s32 1, %s688_s15  }
 0x121   : > { %p11_p4 = scmp.ge.s32.totalorder %s14_s15, 4  }
 0x123   :  { %13 = sbr.rel (!%p11_p4) target bundleno = 1 (0x1), region = 66 }

// kernel: _generator_forward.18
= control target key start
LH: loop header
LB: loop body
LE: loop exit
PB: predicated region body
PF: predicated region fallthrough
CT: control target
= control target key end

     0   :  { %s787_s18 = smov 0   ;;  %s923_s0 = inlined_call_operand.vmem [shape: f32[2,288,36], index: 0, kind: input, shape index: {}]   ;;  %s924_s1 = inlined_call_operand.vmem [shape: f32[32,288], index: 1, kind: input, shape index: {}]   ;;  %s925_s2 = inlined_call_operand.vmem [shape: f32[32,1], index: 2, kind: input, shape index: {}]   ;;  %s926_s3 = inlined_call_operand.vmem [shape: f32[32,1], index: 3, kind: input, shape index: {}]   ;;  %s927_s4 = inlined_call_operand.vmem [shape: f32[2,32,36], index: 4, kind: input, shape index: {}]   ;;  %s928_s5 = inlined_call_operand.vmem [shape: f32[2,32,36], index: 5, kind: output, shape index: {}]  }
   0x1 LB: > { %s612_s19 = sadd.s32 4294967295, %s754_s18   ;;  %p616_p0 = scmp.ge.s32.totalorder %s754_s18, 1  ;;  %s754_s18 = sphi %s787_s18, %s15_s18  }
   0x2   : > { %p197_p1 = scmp.lt.s32.totalorder %s754_s18, 3 }
   0x4   : > { %p198_p2 = pnand %p616_p0, %p197_p1 }
   0x5   : > { %p230_p3 = scmp.lt.s32.totalorder (!%p198_p2), %s612_s19, 1  ;;  %v246_v0 = vld [vmem:[%s924_s1 + $0x8] sm:$0xff] (!%p198_p2)  ;;  %v247_v1 = vld [vmem:[%s924_s1 + $0x10] sm:$0xff] (!%p198_p2)  ;;  %vm293_vm0 = vcmask (!%p198_p2), 261120   ;;  %v756_v2 = vmov (!%p198_p2), 0   ;;  %v476_v4 = vld [vmem:[%s925_s2] sm:$0xff] (!%p198_p2) }
   0x6   : > { %201 = sbr.rel (%p198_p2) target bundleno = 288 (0x120), region = 40  ;;  %370 = vmatprep.mubr.f32.mxu0 (!%p198_p2), %v246_v0  ;;  %690 = vmatprep.mubr.msk.f32.mxu1 (!%p198_p2), %vm293_vm0, %v247_v1  ;;  %v478_v3 = vld [vmem:[%s925_s2 + $0x10] sm:$0xff] (!%p198_p2)  ;;  %v479_v5 = vld [vmem:[%s925_s2 + $0x18] sm:$0xff] (!%p198_p2)  ;;  %v477_v6 = vld [vmem:[%s925_s2 + $0x8] sm:$0xff] (!%p198_p2)  ;;  %vm540_vm1 = vcmask (!%p198_p2), 293888  }
   0x7   : > { %747 = vset.pattern.permute.xlu1 (!%p198_p2), %v756_v2  ;;  %746 = vset.pattern.permute.xlu0 (!%p198_p2), %v756_v2  ;;  %v505_v20 = vld [vmem:[%s926_s3 + $0x8] sm:$0xff] (!%p198_p2)  ;;  %v504_v21 = vld [vmem:[%s926_s3] sm:$0xff] (!%p198_p2)  ;;  %v507_v28 = vld [vmem:[%s926_s3 + $0x18] sm:$0xff] (!%p198_p2) }
   0x8   : > { %492 = vperm.xlu1 (!%p198_p2), %747, %v478_v3   ;;  %482 = vperm.xlu0 (!%p198_p2), %746, %v476_v4   ;;  %v506_v29 = vld [vmem:[%s926_s3 + $0x10] sm:$0xff] (!%p198_p2)  ;;  %v250_v52 = vld [vmem:[%s924_s1 + $0x28] sm:$0xff] (!%p198_p2)  ;;  %v253_v55 = vld [vmem:[%s924_s1 + $0x40] sm:$0xff] (!%p198_p2) }
   0x9   : > { %v256_v60 = vld [vmem:[%s924_s1 + $0x58] sm:$0xff] (!%p198_p2)  ;;  %v245_v4 = vld [vmem:[%s924_s1] sm:$0xff] (!%p198_p2) }
   0xc   : > { %497 = vperm.xlu1 (!%p198_p2), %747, %v479_v5   ;;  %487 = vperm.xlu0 (!%p198_p2), %746, %v477_v6   ;;  %v249_v5 = vld [vmem:[%s924_s1 + $0x20] sm:$0xff] (!%p198_p2)  ;;  %v248_v6 = vld [vmem:[%s924_s1 + $0x18] sm:$0xff] (!%p198_p2) }
   0xd   : > { %s930_s19 = smov (!%p230_p3, %s612_s19), 1 }
   0xe   : > { %s736_s24 = smul.u32 288, %s930_s19  ;;  %s628_s16 = sshll.u32 %s930_s19, 5 }
   0xf   : > { %s907_s21 = scalar_lea.vmem %s927_s4, %s628_s16  ;;  %s244_s23 = scalar_lea.vmem %s928_s5, %s628_s16 }
  0x10   : > { %s814_s6 = scalar_lea.vmem %s923_s0, %s736_s24  ;;  %515 = vperm.xlu1 %747, %v505_v20   ;;  %510 = vperm.xlu0 %746, %v504_v21  }
  0x11   : > { %v273_v7 = vld [vmem:[%s814_s6 + $0x80] sm:$0xff]  ;;  %v274_v8 = vld [vmem:[%s814_s6 + $0x88] sm:$0xff]  ;;  %v275_v12 = vld [vmem:[%s814_s6 + $0x90] sm:$0xff] }
  0x12   : > { %v257_v9 = vld [vmem:[%s814_s6] sm:$0xff]  ;;  %v696_v10 = vpack.c.bf16 %v274_v8, %v273_v7  ;;  %v258_v11 = vld [vmem:[%s814_s6 + $0x8] sm:$0xff]  ;;  %v276_v13 = vld [vmem:[%s814_s6 + $0x98] sm:$0xff] }
  0x13   : > { %v698_v14 = vpack.c.bf16 %v258_v11, %v257_v9  ;;  %v700_v15 = vpack.c.bf16 %v276_v13, %v275_v12  ;;  %v259_v16 = vld [vmem:[%s814_s6 + $0x10] sm:$0xff]  ;;  %v260_v17 = vld [vmem:[%s814_s6 + $0x18] sm:$0xff]  ;;  %v277_v18 = vld [vmem:[%s814_s6 + $0xa0] sm:$0xff] }
  0x14   : > { %697 = vmatprep.subr.bf16.mxu0 %v696_v10  ;;  %v278_v19 = vld [vmem:[%s814_s6 + $0xa8] sm:$0xff]  ;;  %v702_v22 = vpack.c.bf16 %v260_v17, %v259_v16  ;;  %v261_v24 = vld [vmem:[%s814_s6 + $0x20] sm:$0xff]  ;;  %v279_v26 = vld [vmem:[%s814_s6 + $0xb0] sm:$0xff]  ;;  %525 = vperm.xlu1 %747, %v507_v28  }
  0x15   : > { %699 = vmatpush3.bf16.msra.mxu0 %v698_v14  ;;  %v704_v23 = vpack.c.bf16 %v278_v19, %v277_v18  ;;  %v262_v25 = vld [vmem:[%s814_s6 + $0x28] sm:$0xff]  ;;  %v280_v27 = vld [vmem:[%s814_s6 + $0xb8] sm:$0xff]  ;;  %v263_v31 = vld [vmem:[%s814_s6 + $0x30] sm:$0xff]  ;;  %520 = vperm.xlu0 %746, %v506_v29  }
  0x16   : > { %701 = vmatprep.subr.bf16.mxu0 %v700_v15  ;;  %v706_v30 = vpack.c.bf16 %v262_v25, %v261_v24  ;;  %v708_v32 = vpack.c.bf16 %v280_v27, %v279_v26  ;;  %v264_v33 = vld [vmem:[%s814_s6 + $0x38] sm:$0xff]  ;;  %v289_v34 = vld [vmem:[%s814_s6 + $0x100] sm:$0xff]  ;;  %v290_v35 = vld [vmem:[%s814_s6 + $0x108] sm:$0xff] }
  0x17   : > { %v281_v36 = vld [vmem:[%s814_s6 + $0xc0] sm:$0xff]  ;;  %v282_v37 = vld [vmem:[%s814_s6 + $0xc8] sm:$0xff]  ;;  %v728_v38 = vpack.c.bf16 %v290_v35, %v289_v34  ;;  %v291_v39 = vld [vmem:[%s814_s6 + $0x110] sm:$0xff]  ;;  %v710_v41 = vpack.c.bf16 %v264_v33, %v263_v31 }
  0x18   : > { %v292_v40 = vld [vmem:[%s814_s6 + $0x118] sm:$0xff]  ;;  %v712_v43 = vpack.c.bf16 %v282_v37, %v281_v36  ;;  %v265_v44 = vld [vmem:[%s814_s6 + $0x40] sm:$0xff]  ;;  %v266_v45 = vld [vmem:[%s814_s6 + $0x48] sm:$0xff] }
  0x19   : > { %703 = vmatpush3.bf16.msra.mxu0 %v702_v22  ;;  %729 = vmatprep.subr.bf16.mxu1 %v728_v38  ;;  %v732_v42 = vpack.c.bf16 %v292_v40, %v291_v39  ;;  %v283_v46 = vld [vmem:[%s814_s6 + $0xd0] sm:$0xff]  ;;  %v284_v47 = vld [vmem:[%s814_s6 + $0xd8] sm:$0xff]  ;;  %v714_v48 = vpack.c.bf16 %v266_v45, %v265_v44  ;;  %v285_v53 = vld [vmem:[%s814_s6 + $0xe0] sm:$0xff] }
  0x1a   : > { %705 = vmatprep.subr.bf16.mxu0 %v704_v23  ;;  %731 = vmatpush3.bf16.msra.mxu1 %v728_v38  ;;  %v716_v49 = vpack.c.bf16 %v284_v47, %v283_v46  ;;  %v267_v50 = vld [vmem:[%s814_s6 + $0x50] sm:$0xff]  ;;  %v268_v51 = vld [vmem:[%s814_s6 + $0x58] sm:$0xff]  ;;  %v286_v54 = vld [vmem:[%s814_s6 + $0xe8] sm:$0xff] }
  0x1b   : > { %733 = vmatprep.subr.bf16.mxu1 %v732_v42  ;;  %v718_v56 = vpack.c.bf16 %v268_v51, %v267_v50  ;;  %v720_v57 = vpack.c.bf16 %v286_v54, %v285_v53  ;;  %v269_v58 = vld [vmem:[%s814_s6 + $0x60] sm:$0xff]  ;;  %v270_v59 = vld [vmem:[%s814_s6 + $0x68] sm:$0xff]  ;;  %v287_v61 = vld [vmem:[%s814_s6 + $0xf0] sm:$0xff] }
  0x1c   : > { %v288_v62 = vld [vmem:[%s814_s6 + $0xf8] sm:$0xff]  ;;  %v722_v63 = vpack.c.bf16 %v270_v59, %v269_v58  ;;  %v271_v1 = vld [vmem:[%s814_s6 + $0x70] sm:$0xff]  ;;  %v254_v10 = vld [vmem:[%s924_s1 + $0x48] sm:$0xff] }
  0x1d   : > { %707 = vmatpush3.bf16.msra.mxu0 %v706_v30  ;;  %v724_v0 = vpack.c.bf16 %v288_v62, %v287_v61  ;;  %v272_v2 = vld [vmem:[%s814_s6 + $0x78] sm:$0xff]  ;;  %v251_v8 = vld [vmem:[%s924_s1 + $0x30] sm:$0xff]  ;;  %v532_v28 = vld [vmem:[%s907_s21] sm:$0xff] }
  0x1e   : > { %709 = vmatprep.subr.bf16.mxu0 %v708_v32  ;;  %735 = vmatpush3.bf16.msra.mxu1 %v732_v42  ;;  %v726_v3 = vpack.c.bf16 %v272_v2, %v271_v1  ;;  %v252_v7 = vld [vmem:[%s924_s1 + $0x38] sm:$0xff]  ;;  %v255_v9 = vld [vmem:[%s924_s1 + $0x50] sm:$0xff]  ;;  %v533_v37 = vld [vmem:[%s907_s21 + $0x8] sm:$0xff] }
  0x1f   : > { %v534_v46 = vld [vmem:[%s907_s21 + $0x10] sm:$0xff] }
  0x21   : > { %711 = vmatpush3.bf16.msra.mxu0 %v710_v41  ;;  %691 = vmatmul.mubr.msk.f32.vlgmr.msra.gmra.mrb[0].mxu1 %vm293_vm0, %v250_v52  ;;  %v535_v52 = vld [vmem:[%s907_s21 + $0x18] sm:$0xff] }
  0x22   : > { %713 = vmatprep.subr.bf16.mxu0 %v712_v43  ;;  %693 = vmatprep.mubr.msk.f32.mxu1 %vm293_vm0, %v253_v55 }
  0x25   : > { %715 = vmatpush3.bf16.msra.mxu0 %v714_v48  ;;  %694 = vmatmul.mubr.msk.f32.gmra.mrb[2].mxu1 %vm293_vm0, %v256_v60 }
  0x26   : > { %717 = vmatprep.subr.bf16.mxu0 %v716_v49 }
  0x29   : > { %719 = vmatpush3.bf16.msra.mxu0 %v718_v56 }
  0x2a   : > { %721 = vmatprep.subr.bf16.mxu0 %v720_v57 }
  0x2d   : > { %723 = vmatpush3.bf16.msra.mxu0 %v722_v63 }
  0x2e   : > { %725 = vmatprep.subr.bf16.mxu0 %v724_v0 }
  0x31   : > { %727 = vmatpush3.bf16.msra.mxu0 %v726_v3 }
  0x34   : > { %371 = vmatmul.mubr.f32.vlgmr.msra.gmra.mrb[0].mxu0 %v245_v4 }
  0x35   : > { %375 = vmatprep.mubr.f32.mxu0 %v249_v5 }
  0x38   : > { %376 = vmatmul.mubr.f32.gmra.mrb[2].mxu0 %v248_v6 }
  0x39   : > { %380 = vmatprep.mubr.f32.mxu0 %v252_v7 }
  0x3c   : > { %381 = vmatmul.mubr.f32.gmra.mrb[4].mxu0 %v251_v8 }
  0x3d   : > { %385 = vmatprep.mubr.f32.mxu0 %v255_v9 }
  0x40   : > { %386 = vmatmul.mubr.f32.gmra.mrb[6].mxu0 %v254_v10 }
  0x87   : > { %v483_v15 = vpop.permute.xlu0 %482  ;;  %v493_v16 = vpop.permute.xlu1 %492 }
  0x8b   : > { %v488_v18 = vpop.permute.xlu0 %487  ;;  %v498_v23 = vpop.permute.xlu1 %497 }
  0x8f   : > { %v511_v27 = vpop.permute.xlu0 %510  ;;  %v516_v36 = vpop.permute.xlu1 %515 }
  0x93   : > { %v526_v51 = vpop.permute.xlu1 %525 }
  0x94   : > { %v521_v45 = vpop.permute.xlu0 %520 }
  0xf4   : > { %v692_v11 = vpop.f32.mrb[0].mxu1 }
  0xf5   : > { %v457_v12 = vpop.f32.mrb[1].mxu1 }
  0xf8   : > { %v695_v13 = vpop.f32.mrb[2].mxu1 }
  0xf9   : > { %v467_v14 = vpop.f32.mrb[3].mxu1 }
 0x107   : > { %v662_v17 = vpop.f32.mrb[0].mxu0 }
 0x108   : > { %v663_v19 = vpop.f32.mrb[1].mxu0 }
 0x109   : > { %v664_v20 = vadd.f32 %v663_v19, %v662_v17 }
 0x10b   : > { %v458_v21 = vadd.f32 %v664_v20, %v457_v12  ;;  %v665_v22 = vpop.f32.mrb[2].mxu0 }
 0x10c   : > { %v666_v24 = vpop.f32.mrb[3].mxu0 }
 0x10d   : > { %v500_v25 = vmul.f32 %v483_v15, %v458_v21  ;;  %v667_v26 = vadd.f32 %v666_v24, %v665_v22 }
 0x10f   : > { %v528_v29 = vadd.f32 %v511_v27, %v500_v25  ;;  %v463_v30 = vadd.f32 %v692_v11, %v667_v26  ;;  %v668_v31 = vpop.f32.mrb[4].mxu0 }
 0x110   : > { %v669_v32 = vpop.f32.mrb[5].mxu0 }
 0x111   : > { %v536_v33 = vadd.f32 %v532_v28, %v528_v29  ;;  %v501_v34 = vmul.f32 %v488_v18, %v463_v30  ;;  %v670_v35 = vadd.f32 %v669_v32, %v668_v31 }
 0x113   : > { %541 = vst.msk [vmem:[%s244_s23] sm:$0xff] %vm540_vm1, %v536_v33  ;;  %v529_v38 = vadd.f32 %v516_v36, %v501_v34  ;;  %v468_v39 = vadd.f32 %v670_v35, %v467_v14  ;;  %v671_v40 = vpop.f32.mrb[6].mxu0 }
 0x114   : > { %v672_v41 = vpop.f32.mrb[7].mxu0 }
 0x115   : > { %v537_v42 = vadd.f32 %v533_v37, %v529_v38  ;;  %v502_v43 = vmul.f32 %v493_v16, %v468_v39  ;;  %v673_v44 = vadd.f32 %v672_v41, %v671_v40 }
 0x117   : > { %542 = vst.msk [vmem:[%s244_s23 + $0x8] sm:$0xff] %vm540_vm1, %v537_v42  ;;  %v530_v47 = vadd.f32 %v521_v45, %v502_v43  ;;  %v473_v48 = vadd.f32 %v695_v13, %v673_v44 }
 0x119   : > { %v538_v49 = vadd.f32 %v534_v46, %v530_v47  ;;  %v503_v50 = vmul.f32 %v498_v23, %v473_v48 }
 0x11b   : > { %543 = vst.msk [vmem:[%s244_s23 + $0x10] sm:$0xff] %vm540_vm1, %v538_v49  ;;  %v531_v53 = vadd.f32 %v526_v51, %v503_v50 }
 0x11d   : > { %v539_v54 = vadd.f32 %v535_v52, %v531_v53 }
 0x11f   : > { %544 = vst.msk [vmem:[%s244_s23 + $0x18] sm:$0xff] %vm540_vm1, %v539_v54 }
 0x120 PF: > { %s15_s18 = sadd.s32 1, %s754_s18  }
 0x121   : > { %p12_p4 = scmp.ge.s32.totalorder %s15_s18, 4  }
 0x123   :  { %14 = sbr.rel (!%p12_p4) target bundleno = 1 (0x1), region = 73 }

// kernel: _generator_forward.25
= control target key start
LH: loop header
LB: loop body
LE: loop exit
PB: predicated region body
PF: predicated region fallthrough
CT: control target
= control target key end

     0   :  { %s611_s9 = smov 0   ;;  %s734_s0 = inlined_call_operand.vmem [shape: f32[2,288,169], index: 0, kind: input, shape index: {}]   ;;  %s735_s1 = inlined_call_operand.vmem [shape: f32[16,288], index: 1, kind: input, shape index: {}]   ;;  %s736_s2 = inlined_call_operand.vmem [shape: f32[2,16,169], index: 2, kind: output, shape index: {}]  }
   0x1 LB: > { %s484_s10 = sadd.s32 4294967295, %s593_s9   ;;  %p488_p0 = scmp.ge.s32.totalorder %s593_s9, 1  ;;  %s593_s9 = sphi %s611_s9, %s12_s9  }
   0x2   : > { %p112_p1 = scmp.lt.s32.totalorder %s593_s9, 3 }
   0x4   : > { %p113_p2 = pnand %p488_p0, %p112_p1 }
   0x5   : > { %p134_p3 = scmp.lt.s32.totalorder (!%p113_p2), %s484_s10, 1  ;;  %v145_v0 = vld [vmem:[%s735_s1 + $0x8] sm:$0xff] (!%p113_p2)  ;;  %v595_v1 = vmov (!%p113_p2), 0.0   ;;  %v146_v63 = vld [vmem:[%s735_s1 + $0x10] sm:$0xff] (!%p113_p2)  ;;  %vm222_vm0 = vcmask (!%p113_p2), 261120   ;;  %vm383_vm1 = vcmask (!%p113_p2), 334848  }
   0x6   : > { %116 = sbr.rel (%p113_p2) target bundleno = 619 (0x26b), region = 28  ;;  %370 = vmatprep.mubr.f32.mxu0 (!%p113_p2), %v595_v1  ;;  %293 = vmatprep.mubr.f32.mxu1 (!%p113_p2), %v145_v0 }
   0xd   : > { %s738_s10 = smov (!%p134_p3, %s484_s10), 1 }
   0xe   : > { %s573_s13 = smul.u32 576, %s738_s10  ;;  %s496_s27 = sshll.u32 %s738_s10, 5 }
   0xf   : > { %s143_s30 = scalar_lea.vmem %s736_s2, %s496_s27 }
  0x10   : > { %s629_s16 = scalar_lea.vmem %s734_s0, %s573_s13 }
  0x11   : > { %v151_v2 = vld [vmem:[%s629_s16 + $0x8] sm:$0xff]  ;;  %v153_v3 = vld [vmem:[%s629_s16 + $0x18] sm:$0xff]  ;;  %v150_v4 = vld [vmem:[%s629_s16] sm:$0xff] }
  0x12   : > { %v497_v5 = vpack.c.bf16 %v153_v3, %v151_v2  ;;  %v152_v6 = vld [vmem:[%s629_s16 + $0x10] sm:$0xff]  ;;  %v155_v7 = vld [vmem:[%s629_s16 + $0x28] sm:$0xff]  ;;  %v157_v8 = vld [vmem:[%s629_s16 + $0x38] sm:$0xff] }
  0x13   : > { %v499_v9 = vpack.c.bf16 %v152_v6, %v150_v4  ;;  %v501_v10 = vpack.c.bf16 %v157_v8, %v155_v7  ;;  %v154_v11 = vld [vmem:[%s629_s16 + $0x20] sm:$0xff]  ;;  %v156_v12 = vld [vmem:[%s629_s16 + $0x30] sm:$0xff]  ;;  %v159_v13 = vld [vmem:[%s629_s16 + $0x48] sm:$0xff] }
  0x14   : > { %498 = vmatprep.subr.bf16.mxu1 %v497_v5  ;;  %v161_v14 = vld [vmem:[%s629_s16 + $0x58] sm:$0xff]  ;;  %v503_v15 = vpack.c.bf16 %v156_v12, %v154_v11  ;;  %v158_v17 = vld [vmem:[%s629_s16 + $0x40] sm:$0xff]  ;;  %v160_v18 = vld [vmem:[%s629_s16 + $0x50] sm:$0xff] }
  0x15   : > { %500 = vmatpush1.bf16.msra.mxu1 %v499_v9  ;;  %v505_v16 = vpack.c.bf16 %v161_v14, %v159_v13  ;;  %v163_v19 = vld [vmem:[%s629_s16 + $0x68] sm:$0xff]  ;;  %v165_v20 = vld [vmem:[%s629_s16 + $0x78] sm:$0xff]  ;;  %v507_v21 = vpack.c.bf16 %v160_v18, %v158_v17  ;;  %v162_v23 = vld [vmem:[%s629_s16 + $0x60] sm:$0xff] }
  0x16   : > { %502 = vmatprep.subr.bf16.mxu1 %v501_v10  ;;  %v509_v22 = vpack.c.bf16 %v165_v20, %v163_v19  ;;  %v164_v24 = vld [vmem:[%s629_s16 + $0x70] sm:$0xff]  ;;  %v167_v25 = vld [vmem:[%s629_s16 + $0x88] sm:$0xff]  ;;  %v169_v26 = vld [vmem:[%s629_s16 + $0x98] sm:$0xff] }
  0x17   : > { %v511_v27 = vpack.c.bf16 %v164_v24, %v162_v23  ;;  %v513_v28 = vpack.c.bf16 %v169_v26, %v167_v25  ;;  %v166_v29 = vld [vmem:[%s629_s16 + $0x80] sm:$0xff]  ;;  %v168_v30 = vld [vmem:[%s629_s16 + $0x90] sm:$0xff]  ;;  %v171_v31 = vld [vmem:[%s629_s16 + $0xa8] sm:$0xff] }
  0x18   : > { %v173_v32 = vld [vmem:[%s629_s16 + $0xb8] sm:$0xff]  ;;  %v515_v33 = vpack.c.bf16 %v168_v30, %v166_v29  ;;  %v170_v35 = vld [vmem:[%s629_s16 + $0xa0] sm:$0xff]  ;;  %v172_v36 = vld [vmem:[%s629_s16 + $0xb0] sm:$0xff] }
  0x19   : > { %504 = vmatpush1.bf16.msra.mxu1 %v503_v15  ;;  %v517_v34 = vpack.c.bf16 %v173_v32, %v171_v31  ;;  %v175_v37 = vld [vmem:[%s629_s16 + $0xc8] sm:$0xff]  ;;  %v177_v38 = vld [vmem:[%s629_s16 + $0xd8] sm:$0xff]  ;;  %v519_v41 = vpack.c.bf16 %v172_v36, %v170_v35  ;;  %v174_v42 = vld [vmem:[%s629_s16 + $0xc0] sm:$0xff] }
  0x1a   : > { %506 = vmatprep.subr.bf16.mxu1 %v505_v16  ;;  %v215_v39 = vld [vmem:[%s629_s16 + $0x208] sm:$0xff]  ;;  %v217_v40 = vld [vmem:[%s629_s16 + $0x218] sm:$0xff]  ;;  %v214_v44 = vld [vmem:[%s629_s16 + $0x200] sm:$0xff]  ;;  %v521_v46 = vpack.c.bf16 %v177_v38, %v175_v37 }
  0x1b   : > { %v561_v43 = vpack.c.bf16 %v217_v40, %v215_v39  ;;  %v216_v45 = vld [vmem:[%s629_s16 + $0x210] sm:$0xff]  ;;  %v219_v49 = vld [vmem:[%s629_s16 + $0x228] sm:$0xff]  ;;  %v221_v50 = vld [vmem:[%s629_s16 + $0x238] sm:$0xff] }
  0x1c   : > { %v176_v47 = vld [vmem:[%s629_s16 + $0xd0] sm:$0xff]  ;;  %v563_v48 = vpack.c.bf16 %v216_v45, %v214_v44  ;;  %v179_v51 = vld [vmem:[%s629_s16 + $0xe8] sm:$0xff]  ;;  %v181_v52 = vld [vmem:[%s629_s16 + $0xf8] sm:$0xff]  ;;  %v565_v53 = vpack.c.bf16 %v221_v50, %v219_v49 }
  0x1d   : > { %508 = vmatpush1.bf16.msra.mxu1 %v507_v21  ;;  %562 = vmatprep.subr.bf16.mxu0 %v561_v43  ;;  %v218_v54 = vld [vmem:[%s629_s16 + $0x220] sm:$0xff]  ;;  %v220_v55 = vld [vmem:[%s629_s16 + $0x230] sm:$0xff]  ;;  %v523_v56 = vpack.c.bf16 %v176_v47, %v174_v42  ;;  %v525_v58 = vpack.c.bf16 %v181_v52, %v179_v51  ;;  %v183_v61 = vld [vmem:[%s629_s16 + $0x108] sm:$0xff] }
  0x1e   : > { %510 = vmatprep.subr.bf16.mxu1 %v509_v22  ;;  %564 = vmatpush1.bf16.msra.mxu0 %v563_v48  ;;  %v567_v57 = vpack.c.bf16 %v220_v55, %v218_v54  ;;  %v178_v59 = vld [vmem:[%s629_s16 + $0xe0] sm:$0xff]  ;;  %v180_v60 = vld [vmem:[%s629_s16 + $0xf0] sm:$0xff]  ;;  %v185_v62 = vld [vmem:[%s629_s16 + $0x118] sm:$0xff] }
  0x1f   : > { %566 = vmatprep.subr.bf16.mxu0 %v565_v53  ;;  %v527_v0 = vpack.c.bf16 %v180_v60, %v178_v59  ;;  %v529_v2 = vpack.c.bf16 %v185_v62, %v183_v61  ;;  %v182_v3 = vld [vmem:[%s629_s16 + $0x100] sm:$0xff]  ;;  %v184_v4 = vld [vmem:[%s629_s16 + $0x110] sm:$0xff]  ;;  %v187_v5 = vld [vmem:[%s629_s16 + $0x128] sm:$0xff] }
  0x20   : > { %v189_v6 = vld [vmem:[%s629_s16 + $0x138] sm:$0xff]  ;;  %v149_v7 = vld [vmem:[%s735_s1 + $0x28] sm:$0xff]  ;;  %v531_v8 = vpack.c.bf16 %v184_v4, %v182_v3  ;;  %v186_v10 = vld [vmem:[%s629_s16 + $0x120] sm:$0xff] }
  0x21   : > { %512 = vmatpush1.bf16.msra.mxu1 %v511_v27  ;;  %v533_v9 = vpack.c.bf16 %v189_v6, %v187_v5  ;;  %v188_v11 = vld [vmem:[%s629_s16 + $0x130] sm:$0xff]  ;;  %v191_v12 = vld [vmem:[%s629_s16 + $0x148] sm:$0xff]  ;;  %v193_v13 = vld [vmem:[%s629_s16 + $0x158] sm:$0xff] }
  0x22   : > { %514 = vmatprep.subr.bf16.mxu1 %v513_v28  ;;  %568 = vmatpush1.bf16.msra.mxu0 %v567_v57  ;;  %v537_v14 = vpack.c.bf16 %v193_v13, %v191_v12  ;;  %v190_v15 = vld [vmem:[%s629_s16 + $0x140] sm:$0xff]  ;;  %v192_v16 = vld [vmem:[%s629_s16 + $0x150] sm:$0xff]  ;;  %v195_v17 = vld [vmem:[%s629_s16 + $0x168] sm:$0xff] }
  0x23   : > { %v197_v18 = vld [vmem:[%s629_s16 + $0x178] sm:$0xff]  ;;  %v539_v19 = vpack.c.bf16 %v192_v16, %v190_v15  ;;  %v194_v21 = vld [vmem:[%s629_s16 + $0x160] sm:$0xff]  ;;  %v196_v22 = vld [vmem:[%s629_s16 + $0x170] sm:$0xff] }
  0x24   : > { %v541_v20 = vpack.c.bf16 %v197_v18, %v195_v17  ;;  %v199_v23 = vld [vmem:[%s629_s16 + $0x188] sm:$0xff]  ;;  %v201_v24 = vld [vmem:[%s629_s16 + $0x198] sm:$0xff]  ;;  %v543_v25 = vpack.c.bf16 %v196_v22, %v194_v21  ;;  %v198_v27 = vld [vmem:[%s629_s16 + $0x180] sm:$0xff] }
  0x25   : > { %516 = vmatpush1.bf16.msra.mxu1 %v515_v33  ;;  %492 = vmatmul.mubr.msk.f32.vlgmr.msra.gmra.mrb[0].mxu0 %vm222_vm0, %v146_v63  ;;  %v545_v26 = vpack.c.bf16 %v201_v24, %v199_v23  ;;  %v200_v28 = vld [vmem:[%s629_s16 + $0x190] sm:$0xff]  ;;  %v203_v29 = vld [vmem:[%s629_s16 + $0x1a8] sm:$0xff]  ;;  %v205_v30 = vld [vmem:[%s629_s16 + $0x1b8] sm:$0xff] }
  0x26   : > { %518 = vmatprep.subr.bf16.mxu1 %v517_v34  ;;  %376 = vmatprep.mubr.f32.mxu0 %v595_v1  ;;  %v535_v1 = vpack.c.bf16 %v188_v11, %v186_v10  ;;  %v547_v31 = vpack.c.bf16 %v200_v28, %v198_v27  ;;  %v549_v32 = vpack.c.bf16 %v205_v30, %v203_v29  ;;  %v202_v33 = vld [vmem:[%s629_s16 + $0x1a0] sm:$0xff]  ;;  %v204_v34 = vld [vmem:[%s629_s16 + $0x1b0] sm:$0xff]  ;;  %v207_v35 = vld [vmem:[%s629_s16 + $0x1c8] sm:$0xff] }
  0x27   : > { %v209_v36 = vld [vmem:[%s629_s16 + $0x1d8] sm:$0xff]  ;;  %v551_v37 = vpack.c.bf16 %v204_v34, %v202_v33  ;;  %v206_v39 = vld [vmem:[%s629_s16 + $0x1c0] sm:$0xff]  ;;  %v208_v40 = vld [vmem:[%s629_s16 + $0x1d0] sm:$0xff] }
  0x28   : > { %v553_v38 = vpack.c.bf16 %v209_v36, %v207_v35  ;;  %v213_v42 = vld [vmem:[%s629_s16 + $0x1f8] sm:$0xff]  ;;  %v555_v43 = vpack.c.bf16 %v208_v40, %v206_v39  ;;  %v210_v45 = vld [vmem:[%s629_s16 + $0x1e0] sm:$0xff] }
  0x29   : > { %520 = vmatpush1.bf16.msra.mxu1 %v519_v41  ;;  %493 = vmatmul.mubr.msk.f32.gmra.mrb[2].mxu0 %vm222_vm0, %v149_v7  ;;  %v211_v41 = vld [vmem:[%s629_s16 + $0x1e8] sm:$0xff]  ;;  %v144_v48 = vld [vmem:[%s735_s1] sm:$0xff]  ;;  %v147_v50 = vld [vmem:[%s735_s1 + $0x18] sm:$0xff] }
  0x2a   : > { %522 = vmatprep.subr.bf16.mxu1 %v521_v46  ;;  %v557_v44 = vpack.c.bf16 %v213_v42, %v211_v41  ;;  %v212_v46 = vld [vmem:[%s629_s16 + $0x1f0] sm:$0xff]  ;;  %v148_v49 = vld [vmem:[%s735_s1 + $0x20] sm:$0xff] }
  0x2b   : > { %v559_v47 = vpack.c.bf16 %v212_v46, %v210_v45 }
  0x2d   : > { %524 = vmatpush1.bf16.msra.mxu1 %v523_v56 }
  0x2e   : > { %526 = vmatprep.subr.bf16.mxu1 %v525_v58 }
  0x31   : > { %528 = vmatpush1.bf16.msra.mxu1 %v527_v0 }
  0x32   : > { %530 = vmatprep.subr.bf16.mxu1 %v529_v2 }
  0x35   : > { %532 = vmatpush1.bf16.msra.mxu1 %v531_v8 }
  0x36   : > { %534 = vmatprep.subr.bf16.mxu1 %v533_v9 }
  0x39   : > { %536 = vmatpush1.bf16.msra.mxu1 %v535_v1 }
  0x3a   : > { %538 = vmatprep.subr.bf16.mxu1 %v537_v14 }
  0x3d   : > { %540 = vmatpush1.bf16.msra.mxu1 %v539_v19 }
  0x3e   : > { %542 = vmatprep.subr.bf16.mxu1 %v541_v20 }
  0x41   : > { %544 = vmatpush1.bf16.msra.mxu1 %v543_v25 }
  0x42   : > { %546 = vmatprep.subr.bf16.mxu1 %v545_v26 }
  0x45   : > { %548 = vmatpush1.bf16.msra.mxu1 %v547_v31 }
  0x46   : > { %550 = vmatprep.subr.bf16.mxu1 %v549_v32 }
  0x49   : > { %552 = vmatpush1.bf16.msra.mxu1 %v551_v37 }
  0x4a   : > { %554 = vmatprep.subr.bf16.mxu1 %v553_v38 }
  0x4d   : > { %556 = vmatpush1.bf16.msra.mxu1 %v555_v43 }
  0x4e   : > { %558 = vmatprep.subr.bf16.mxu1 %v557_v44 }
  0x51   : > { %560 = vmatpush1.bf16.msra.mxu1 %v559_v47 }
  0x54   : > { %294 = vmatmul.mubr.f32.vlgmr.msra.gmra.mrb[0].mxu1 %v144_v48 }
  0x55   : > { %299 = vmatprep.mubr.f32.mxu1 %v148_v49 }
  0x58   : > { %300 = vmatmul.mubr.f32.gmra.mrb[2].mxu1 %v147_v50 }
  0xf8   : > { %v372_v51 = vpop.f32.mrb[0].mxu0 }
  0xf9   : > { %v374_v52 = vpop.f32.mrb[1].mxu0 }
  0xfc   : > { %v378_v53 = vpop.f32.mrb[2].mxu0 }
  0xfd   : > { %v380_v54 = vpop.f32.mrb[3].mxu0 }
 0x127   : > { %v295_v55 = vpop.f32.mrb[0].mxu1 }
 0x128   : > { %v373_v56 = vadd.f32 %v372_v51, %v295_v55  ;;  %v297_v57 = vpop.f32.mrb[1].mxu1 }
 0x129   : > { %v375_v58 = vadd.f32 %v374_v52, %v297_v57 }
 0x12b   : > { %v301_v59 = vpop.f32.mrb[2].mxu1  ;;  %v384_v60 = vsel %vm383_vm1, %v375_v58, 0.0 }
 0x12c   : > { %v379_v61 = vadd.f32 %v378_v53, %v301_v59  ;;  %v303_v62 = vpop.f32.mrb[3].mxu1  ;;  %v385_v63 = vadd.f32 %v384_v60, %v373_v56 }
 0x12d   : > { %v381_v0 = vadd.f32 %v380_v54, %v303_v62 }
 0x12e   : > { %386 = vadd.xlane.f32.xlu0 %v385_v63 }
 0x12f   : > { %v388_v2 = vsel %vm383_vm1, %v381_v0, 0.0 }
 0x130   : > { %v389_v3 = vadd.f32 %v388_v2, %v379_v61 }
 0x132   : > { %390 = vadd.xlane.f32.xlu0 %v389_v3 }
 0x1bb   : > { %v387_v4 = vpop.xlane.xlu0 %386 }
 0x1bc   : > { %v393_v5 = vmul.f32 0.00591716, %v387_v4 }
 0x1be   : > { %v395_v6 = vsub.f32 %v373_v56, %v393_v5  ;;  %v396_v7 = vsub.f32 %v375_v58, %v393_v5 }
 0x1bf   : > { %v391_v8 = vpop.xlane.xlu0 %390 }
 0x1c0   : > { %v394_v9 = vmul.f32 0.00591716, %v391_v8  ;;  %v399_v10 = vmul.f32 %v395_v6, %v395_v6  ;;  %v400_v11 = vmul.f32 %v396_v7, %v396_v7 }
 0x1c2   : > { %v397_v12 = vsub.f32 %v379_v61, %v394_v9  ;;  %v398_v13 = vsub.f32 %v381_v0, %v394_v9  ;;  %v403_v1 = vsel %vm383_vm1, %v400_v11, 0.0 }
 0x1c3   : > { %v404_v14 = vadd.f32 %v403_v1, %v399_v10 }
 0x1c4   : > { %v402_v15 = vmul.f32 %v398_v13, %v398_v13  ;;  %v401_v16 = vmul.f32 %v397_v12, %v397_v12 }
 0x1c5   : > { %405 = vadd.xlane.f32.xlu1 %v404_v14 }
 0x1c6   : > { %v407_v17 = vsel %vm383_vm1, %v402_v15, 0.0 }
 0x1c7   : > { %v408_v18 = vadd.f32 %v407_v17, %v401_v16 }
 0x1c9   : > { %409 = vadd.xlane.f32.xlu1 %v408_v18 }
 0x252   : > { %v406_v19 = vpop.xlane.xlu1 %405 }
 0x253   : > { %v411_v20 = vmul.f32 0.00591716, %v406_v19 }
 0x255   : > { %v413_v21 = vadd.f32 1e-05, %v411_v20 }
 0x256   : > { %v410_v22 = vpop.xlane.xlu1 %409 }
 0x257   : > { %583 = vrsqrt.f32 %v413_v21  ;;  %v412_v23 = vmul.f32 0.00591716, %v410_v22 }
 0x259   : > { %v414_v24 = vadd.f32 1e-05, %v412_v23 }
 0x25b   : > { %585 = vrsqrt.f32 %v414_v24 }
 0x261   : > { %v584_v25 = vpop.eup %583 }
 0x262   : > { %v417_v26 = vmul.f32 %v584_v25, %v395_v6  ;;  %v418_v27 = vmul.f32 %v584_v25, %v396_v7 }
 0x264   : > { %v421_v28 = vmax.f32 %v417_v26, 0.0  ;;  %v422_v29 = vmax.f32 %v418_v27, 0.0 }
 0x265   : > { %v586_v30 = vpop.eup %585 }
 0x266   : > { %425 = vst [vmem:[%s143_s30] sm:$0xff] %v421_v28  ;;  %426 = vst.msk [vmem:[%s143_s30 + $0x8] sm:$0xff] %vm383_vm1, %v422_v29  ;;  %v419_v31 = vmul.f32 %v586_v30, %v397_v12  ;;  %v420_v32 = vmul.f32 %v586_v30, %v398_v13 }
 0x268   : > { %v423_v33 = vmax.f32 %v419_v31, 0.0  ;;  %v424_v34 = vmax.f32 %v420_v32, 0.0 }
 0x26a   : > { %427 = vst [vmem:[%s143_s30 + $0x10] sm:$0xff] %v423_v33  ;;  %428 = vst.msk [vmem:[%s143_s30 + $0x18] sm:$0xff] %vm383_vm1, %v424_v34 }
 0x26b PF: > { %s12_s9 = sadd.s32 1, %s593_s9  }
 0x26c   : > { %p9_p4 = scmp.ge.s32.totalorder %s12_s9, 4  }
 0x26e   :  { %11 = sbr.rel (!%p9_p4) target bundleno = 1 (0x1), region = 58 }

// kernel: _generator_forward.26
= control target key start
LH: loop header
LB: loop body
LE: loop exit
PB: predicated region body
PF: predicated region fallthrough
CT: control target
= control target key end

     0   :  { %s733_s9 = smov 0   ;;  %s886_s0 = inlined_call_operand.vmem [shape: f32[2,144,729], index: 0, kind: input, shape index: {}]   ;;  %s887_s1 = inlined_call_operand.vmem [shape: f32[8,144], index: 1, kind: input, shape index: {}]   ;;  %s888_s2 = inlined_call_operand.vmem [shape: f32[2,8,729], index: 2, kind: output, shape index: {}]  }
   0x1 LB: > { %s578_s10 = sadd.s32 4294967295, %s716_s9   ;;  %p582_p0 = scmp.ge.s32.totalorder %s716_s9, 1  ;;  %s716_s9 = sphi %s733_s9, %s12_s9  }
   0x2   : > { %p112_p1 = scmp.lt.s32.totalorder %s716_s9, 3 }
   0x4   : > { %p113_p2 = pnand %p582_p0, %p112_p1 }
   0x5   : > { %p134_p3 = scmp.lt.s32.totalorder (!%p113_p2), %s578_s10, 1  ;;  %v744_v0 = vld [vmem:[%s887_s1 + $0x8] sm:$0xff] (!%p113_p2)  ;;  %vm254_vm0 = vcmask (!%p113_p2), 130048   ;;  %vm475_vm1 = vcmask (!%p113_p2), 728064  }
   0x6   : > { %116 = sbr.rel (%p113_p2) target bundleno = 630 (0x276), region = 28  ;;  %585 = vmatprep.mubr.msk.f32.mxu0 (!%p113_p2), %vm254_vm0, %v744_v0  ;;  %586 = vmatprep.mubr.msk.f32.mxu1 (!%p113_p2), %vm254_vm0, %v744_v0 }
   0xd   : > { %s890_s10 = smov (!%p134_p3, %s578_s10), 1 }
   0xe   : > { %s698_s13 = smul.u32 864, %s890_s10 }
   0xf   : > { %s699_s19 = smul.u32 48, %s890_s10 }
  0x10   : > { %s756_s16 = scalar_lea.vmem %s886_s0, %s698_s13 }
  0x11   : > { %v147_v1 = vld [vmem:[%s756_s16 + $0x8] sm:$0xff]  ;;  %v153_v2 = vld [vmem:[%s756_s16 + $0x38] sm:$0xff]  ;;  %v146_v3 = vld [vmem:[%s756_s16] sm:$0xff]  ;;  %s143_s22 = scalar_lea.vmem %s888_s2, %s699_s19 }
  0x12   : > { %v590_v4 = vpack.c.bf16 %v153_v2, %v147_v1  ;;  %v152_v5 = vld [vmem:[%s756_s16 + $0x30] sm:$0xff]  ;;  %v149_v6 = vld [vmem:[%s756_s16 + $0x18] sm:$0xff]  ;;  %v155_v7 = vld [vmem:[%s756_s16 + $0x48] sm:$0xff] }
  0x13   : > { %v592_v8 = vpack.c.bf16 %v152_v5, %v146_v3  ;;  %v626_v9 = vpack.c.bf16 %v155_v7, %v149_v6  ;;  %v159_v10 = vld [vmem:[%s756_s16 + $0x68] sm:$0xff]  ;;  %v165_v11 = vld [vmem:[%s756_s16 + $0x98] sm:$0xff]  ;;  %v148_v12 = vld [vmem:[%s756_s16 + $0x10] sm:$0xff] }
  0x14   : > { %591 = vmatprep.subr.bf16.mxu0 %v590_v4  ;;  %v594_v13 = vpack.c.bf16 %v165_v11, %v159_v10  ;;  %v154_v14 = vld [vmem:[%s756_s16 + $0x40] sm:$0xff]  ;;  %v164_v16 = vld [vmem:[%s756_s16 + $0x90] sm:$0xff]  ;;  %v161_v19 = vld [vmem:[%s756_s16 + $0x78] sm:$0xff] }
  0x15   : > { %v158_v15 = vld [vmem:[%s756_s16 + $0x60] sm:$0xff]  ;;  %593 = vmatpush1.bf16.msra.mxu0 %v592_v8  ;;  %627 = vmatprep.subr.bf16.mxu1 %v626_v9  ;;  %v628_v17 = vpack.c.bf16 %v154_v14, %v148_v12  ;;  %v167_v20 = vld [vmem:[%s756_s16 + $0xa8] sm:$0xff]  ;;  %v177_v23 = vld [vmem:[%s756_s16 + $0xf8] sm:$0xff] }
  0x16   : > { %v596_v18 = vpack.c.bf16 %v164_v16, %v158_v15  ;;  %v171_v21 = vld [vmem:[%s756_s16 + $0xc8] sm:$0xff]  ;;  %595 = vmatprep.subr.bf16.mxu0 %v594_v13  ;;  %v630_v22 = vpack.c.bf16 %v167_v20, %v161_v19  ;;  %v160_v24 = vld [vmem:[%s756_s16 + $0x70] sm:$0xff]  ;;  %v166_v25 = vld [vmem:[%s756_s16 + $0xa0] sm:$0xff] }
  0x17   : > { %629 = vmatpush1.bf16.msra.mxu1 %v628_v17  ;;  %v598_v26 = vpack.c.bf16 %v177_v23, %v171_v21  ;;  %v632_v27 = vpack.c.bf16 %v166_v25, %v160_v24  ;;  %v170_v28 = vld [vmem:[%s756_s16 + $0xc0] sm:$0xff]  ;;  %v176_v29 = vld [vmem:[%s756_s16 + $0xf0] sm:$0xff]  ;;  %v173_v30 = vld [vmem:[%s756_s16 + $0xd8] sm:$0xff] }
  0x18   : > { %631 = vmatprep.subr.bf16.mxu1 %v630_v22  ;;  %v179_v31 = vld [vmem:[%s756_s16 + $0x108] sm:$0xff]  ;;  %v189_v33 = vld [vmem:[%s756_s16 + $0x158] sm:$0xff]  ;;  %v600_v34 = vpack.c.bf16 %v176_v29, %v170_v28  ;;  %v172_v36 = vld [vmem:[%s756_s16 + $0xd0] sm:$0xff] }
  0x19   : > { %v183_v32 = vld [vmem:[%s756_s16 + $0x128] sm:$0xff]  ;;  %597 = vmatpush1.bf16.msra.mxu0 %v596_v18  ;;  %v634_v35 = vpack.c.bf16 %v179_v31, %v173_v30  ;;  %v178_v37 = vld [vmem:[%s756_s16 + $0x100] sm:$0xff]  ;;  %v188_v40 = vld [vmem:[%s756_s16 + $0x150] sm:$0xff] }
  0x1a   : > { %v182_v38 = vld [vmem:[%s756_s16 + $0x120] sm:$0xff]  ;;  %599 = vmatprep.subr.bf16.mxu0 %v598_v26  ;;  %v602_v39 = vpack.c.bf16 %v189_v33, %v183_v32  ;;  %v185_v41 = vld [vmem:[%s756_s16 + $0x138] sm:$0xff]  ;;  %v191_v42 = vld [vmem:[%s756_s16 + $0x168] sm:$0xff]  ;;  %v636_v43 = vpack.c.bf16 %v178_v37, %v172_v36 }
  0x1b   : > { %633 = vmatpush1.bf16.msra.mxu1 %v632_v27  ;;  %v195_v44 = vld [vmem:[%s756_s16 + $0x188] sm:$0xff]  ;;  %v201_v45 = vld [vmem:[%s756_s16 + $0x1b8] sm:$0xff]  ;;  %v638_v46 = vpack.c.bf16 %v191_v42, %v185_v41  ;;  %v184_v47 = vld [vmem:[%s756_s16 + $0x130] sm:$0xff]  ;;  %v604_v49 = vpack.c.bf16 %v188_v40, %v182_v38 }
  0x1c   : > { %635 = vmatprep.subr.bf16.mxu1 %v634_v35  ;;  %v190_v48 = vld [vmem:[%s756_s16 + $0x160] sm:$0xff]  ;;  %v197_v50 = vld [vmem:[%s756_s16 + $0x198] sm:$0xff]  ;;  %v203_v51 = vld [vmem:[%s756_s16 + $0x1c8] sm:$0xff]  ;;  %v606_v52 = vpack.c.bf16 %v201_v45, %v195_v44 }
  0x1d   : > { %601 = vmatpush1.bf16.msra.mxu0 %v600_v34  ;;  %v194_v53 = vld [vmem:[%s756_s16 + $0x180] sm:$0xff]  ;;  %v200_v54 = vld [vmem:[%s756_s16 + $0x1b0] sm:$0xff]  ;;  %v640_v55 = vpack.c.bf16 %v190_v48, %v184_v47  ;;  %v207_v56 = vld [vmem:[%s756_s16 + $0x1e8] sm:$0xff]  ;;  %v642_v58 = vpack.c.bf16 %v203_v51, %v197_v50 }
  0x1e   : > { %603 = vmatprep.subr.bf16.mxu0 %v602_v39  ;;  %v213_v57 = vld [vmem:[%s756_s16 + $0x218] sm:$0xff]  ;;  %v196_v59 = vld [vmem:[%s756_s16 + $0x190] sm:$0xff]  ;;  %v202_v60 = vld [vmem:[%s756_s16 + $0x1c0] sm:$0xff]  ;;  %v608_v61 = vpack.c.bf16 %v200_v54, %v194_v53 }
  0x1f   : > { %637 = vmatpush1.bf16.msra.mxu1 %v636_v43  ;;  %v209_v62 = vld [vmem:[%s756_s16 + $0x1f8] sm:$0xff]  ;;  %v215_v63 = vld [vmem:[%s756_s16 + $0x228] sm:$0xff]  ;;  %v610_v1 = vpack.c.bf16 %v213_v57, %v207_v56  ;;  %v206_v2 = vld [vmem:[%s756_s16 + $0x1e0] sm:$0xff]  ;;  %v644_v4 = vpack.c.bf16 %v202_v60, %v196_v59 }
  0x20   : > { %639 = vmatprep.subr.bf16.mxu1 %v638_v46  ;;  %v212_v3 = vld [vmem:[%s756_s16 + $0x210] sm:$0xff]  ;;  %v219_v5 = vld [vmem:[%s756_s16 + $0x248] sm:$0xff]  ;;  %v225_v6 = vld [vmem:[%s756_s16 + $0x278] sm:$0xff]  ;;  %v646_v7 = vpack.c.bf16 %v215_v63, %v209_v62 }
  0x21   : > { %605 = vmatpush1.bf16.msra.mxu0 %v604_v49  ;;  %v208_v8 = vld [vmem:[%s756_s16 + $0x1f0] sm:$0xff]  ;;  %v214_v9 = vld [vmem:[%s756_s16 + $0x220] sm:$0xff]  ;;  %v612_v10 = vpack.c.bf16 %v212_v3, %v206_v2  ;;  %v221_v11 = vld [vmem:[%s756_s16 + $0x258] sm:$0xff]  ;;  %v614_v13 = vpack.c.bf16 %v225_v6, %v219_v5 }
  0x22   : > { %607 = vmatprep.subr.bf16.mxu0 %v606_v52  ;;  %v227_v12 = vld [vmem:[%s756_s16 + $0x288] sm:$0xff]  ;;  %v218_v14 = vld [vmem:[%s756_s16 + $0x240] sm:$0xff]  ;;  %v224_v15 = vld [vmem:[%s756_s16 + $0x270] sm:$0xff]  ;;  %v648_v16 = vpack.c.bf16 %v214_v9, %v208_v8 }
  0x23   : > { %641 = vmatpush1.bf16.msra.mxu1 %v640_v55  ;;  %v231_v17 = vld [vmem:[%s756_s16 + $0x2a8] sm:$0xff]  ;;  %v237_v18 = vld [vmem:[%s756_s16 + $0x2d8] sm:$0xff]  ;;  %v650_v19 = vpack.c.bf16 %v227_v12, %v221_v11  ;;  %v220_v20 = vld [vmem:[%s756_s16 + $0x250] sm:$0xff]  ;;  %v616_v22 = vpack.c.bf16 %v224_v15, %v218_v14 }
  0x24   : > { %643 = vmatprep.subr.bf16.mxu1 %v642_v58  ;;  %v226_v21 = vld [vmem:[%s756_s16 + $0x280] sm:$0xff]  ;;  %v233_v23 = vld [vmem:[%s756_s16 + $0x2b8] sm:$0xff]  ;;  %v239_v24 = vld [vmem:[%s756_s16 + $0x2e8] sm:$0xff]  ;;  %v618_v25 = vpack.c.bf16 %v237_v18, %v231_v17 }
  0x25   : > { %609 = vmatpush1.bf16.msra.mxu0 %v608_v61  ;;  %v230_v26 = vld [vmem:[%s756_s16 + $0x2a0] sm:$0xff]  ;;  %v236_v27 = vld [vmem:[%s756_s16 + $0x2d0] sm:$0xff]  ;;  %v652_v28 = vpack.c.bf16 %v226_v21, %v220_v20  ;;  %v243_v29 = vld [vmem:[%s756_s16 + $0x308] sm:$0xff]  ;;  %v654_v31 = vpack.c.bf16 %v239_v24, %v233_v23 }
  0x26   : > { %611 = vmatprep.subr.bf16.mxu0 %v610_v1  ;;  %v249_v30 = vld [vmem:[%s756_s16 + $0x338] sm:$0xff]  ;;  %v232_v32 = vld [vmem:[%s756_s16 + $0x2b0] sm:$0xff]  ;;  %v238_v33 = vld [vmem:[%s756_s16 + $0x2e0] sm:$0xff]  ;;  %v620_v34 = vpack.c.bf16 %v236_v27, %v230_v26 }
  0x27   : > { %645 = vmatpush1.bf16.msra.mxu1 %v644_v4  ;;  %v245_v35 = vld [vmem:[%s756_s16 + $0x318] sm:$0xff]  ;;  %v251_v36 = vld [vmem:[%s756_s16 + $0x348] sm:$0xff]  ;;  %v622_v37 = vpack.c.bf16 %v249_v30, %v243_v29  ;;  %v242_v38 = vld [vmem:[%s756_s16 + $0x300] sm:$0xff]  ;;  %v656_v40 = vpack.c.bf16 %v238_v33, %v232_v32 }
  0x28   : > { %647 = vmatprep.subr.bf16.mxu1 %v646_v7  ;;  %v248_v39 = vld [vmem:[%s756_s16 + $0x330] sm:$0xff]  ;;  %v151_v41 = vld [vmem:[%s756_s16 + $0x28] sm:$0xff]  ;;  %v157_v42 = vld [vmem:[%s756_s16 + $0x58] sm:$0xff]  ;;  %v658_v43 = vpack.c.bf16 %v251_v36, %v245_v35 }
  0x29   : > { %613 = vmatpush1.bf16.msra.mxu0 %v612_v10  ;;  %v244_v44 = vld [vmem:[%s756_s16 + $0x310] sm:$0xff]  ;;  %v250_v45 = vld [vmem:[%s756_s16 + $0x340] sm:$0xff]  ;;  %v624_v46 = vpack.c.bf16 %v248_v39, %v242_v38  ;;  %v662_v47 = vpack.c.bf16 %v157_v42, %v151_v41  ;;  %v163_v51 = vld [vmem:[%s756_s16 + $0x88] sm:$0xff] }
  0x2a   : > { %615 = vmatprep.subr.bf16.mxu0 %v614_v13  ;;  %v150_v48 = vld [vmem:[%s756_s16 + $0x20] sm:$0xff]  ;;  %v156_v49 = vld [vmem:[%s756_s16 + $0x50] sm:$0xff]  ;;  %v660_v50 = vpack.c.bf16 %v250_v45, %v244_v44  ;;  %v169_v52 = vld [vmem:[%s756_s16 + $0xb8] sm:$0xff] }
  0x2b   : > { %649 = vmatpush1.bf16.msra.mxu1 %v648_v16  ;;  %v839_v53 = vld [vmem:[%s887_s1] sm:$0xff]  ;;  %v664_v54 = vpack.c.bf16 %v156_v49, %v150_v48  ;;  %v666_v55 = vpack.c.bf16 %v169_v52, %v163_v51  ;;  %v168_v57 = vld [vmem:[%s756_s16 + $0xb0] sm:$0xff]  ;;  %v175_v58 = vld [vmem:[%s756_s16 + $0xe8] sm:$0xff] }
  0x2c   : > { %651 = vmatprep.subr.bf16.mxu1 %v650_v19  ;;  %v162_v56 = vld [vmem:[%s756_s16 + $0x80] sm:$0xff]  ;;  %v181_v59 = vld [vmem:[%s756_s16 + $0x118] sm:$0xff]  ;;  %v180_v63 = vld [vmem:[%s756_s16 + $0x110] sm:$0xff] }
  0x2d   : > { %617 = vmatpush1.bf16.msra.mxu0 %v616_v22  ;;  %v668_v60 = vpack.c.bf16 %v168_v57, %v162_v56  ;;  %v670_v61 = vpack.c.bf16 %v181_v59, %v175_v58  ;;  %v174_v62 = vld [vmem:[%s756_s16 + $0xe0] sm:$0xff]  ;;  %v187_v1 = vld [vmem:[%s756_s16 + $0x148] sm:$0xff]  ;;  %v193_v2 = vld [vmem:[%s756_s16 + $0x178] sm:$0xff] }
  0x2e   : > { %619 = vmatprep.subr.bf16.mxu0 %v618_v25  ;;  %v672_v3 = vpack.c.bf16 %v180_v63, %v174_v62  ;;  %v674_v4 = vpack.c.bf16 %v193_v2, %v187_v1  ;;  %v186_v5 = vld [vmem:[%s756_s16 + $0x140] sm:$0xff]  ;;  %v192_v6 = vld [vmem:[%s756_s16 + $0x170] sm:$0xff]  ;;  %v205_v7 = vld [vmem:[%s756_s16 + $0x1d8] sm:$0xff] }
  0x2f   : > { %653 = vmatpush1.bf16.msra.mxu1 %v652_v28  ;;  %v676_v8 = vpack.c.bf16 %v192_v6, %v186_v5  ;;  %v198_v10 = vld [vmem:[%s756_s16 + $0x1a0] sm:$0xff]  ;;  %v204_v11 = vld [vmem:[%s756_s16 + $0x1d0] sm:$0xff]  ;;  %v211_v12 = vld [vmem:[%s756_s16 + $0x208] sm:$0xff] }
  0x30   : > { %655 = vmatprep.subr.bf16.mxu1 %v654_v31  ;;  %v217_v13 = vld [vmem:[%s756_s16 + $0x238] sm:$0xff]  ;;  %v680_v14 = vpack.c.bf16 %v204_v11, %v198_v10  ;;  %v210_v16 = vld [vmem:[%s756_s16 + $0x200] sm:$0xff]  ;;  %v216_v17 = vld [vmem:[%s756_s16 + $0x230] sm:$0xff] }
  0x31   : > { %621 = vmatpush1.bf16.msra.mxu0 %v620_v34  ;;  %v682_v15 = vpack.c.bf16 %v217_v13, %v211_v12  ;;  %v223_v18 = vld [vmem:[%s756_s16 + $0x268] sm:$0xff]  ;;  %v229_v19 = vld [vmem:[%s756_s16 + $0x298] sm:$0xff]  ;;  %v684_v20 = vpack.c.bf16 %v216_v17, %v210_v16  ;;  %v222_v22 = vld [vmem:[%s756_s16 + $0x260] sm:$0xff] }
  0x32   : > { %623 = vmatprep.subr.bf16.mxu0 %v622_v37  ;;  %v686_v21 = vpack.c.bf16 %v229_v19, %v223_v18  ;;  %v228_v23 = vld [vmem:[%s756_s16 + $0x290] sm:$0xff]  ;;  %v235_v24 = vld [vmem:[%s756_s16 + $0x2c8] sm:$0xff]  ;;  %v241_v25 = vld [vmem:[%s756_s16 + $0x2f8] sm:$0xff] }
  0x33   : > { %657 = vmatpush1.bf16.msra.mxu1 %v656_v40  ;;  %v688_v26 = vpack.c.bf16 %v228_v23, %v222_v22  ;;  %v690_v27 = vpack.c.bf16 %v241_v25, %v235_v24  ;;  %v234_v28 = vld [vmem:[%s756_s16 + $0x2c0] sm:$0xff]  ;;  %v240_v29 = vld [vmem:[%s756_s16 + $0x2f0] sm:$0xff]  ;;  %v247_v30 = vld [vmem:[%s756_s16 + $0x328] sm:$0xff] }
  0x34   : > { %659 = vmatprep.subr.bf16.mxu1 %v658_v43  ;;  %v253_v31 = vld [vmem:[%s756_s16 + $0x358] sm:$0xff]  ;;  %v692_v32 = vpack.c.bf16 %v240_v29, %v234_v28  ;;  %v246_v34 = vld [vmem:[%s756_s16 + $0x320] sm:$0xff]  ;;  %v252_v35 = vld [vmem:[%s756_s16 + $0x350] sm:$0xff] }
  0x35   : > { %625 = vmatpush1.bf16.msra.mxu0 %v624_v46  ;;  %v694_v33 = vpack.c.bf16 %v253_v31, %v247_v30  ;;  %v696_v36 = vpack.c.bf16 %v252_v35, %v246_v34 }
  0x36   : > { %663 = vmatprep.subr.bf16.mxu0 %v662_v47 }
  0x37   : > { %661 = vmatpush1.bf16.msra.mxu1 %v660_v50 }
  0x38   : > { %323 = vmatmul.mubr.f32.vlgmr.msra.gmra.mrb[0].mxu0 %v839_v53 }
  0x39   : > { %665 = vmatpush1.bf16.msra.mxu0 %v664_v54  ;;  %587 = vmatprep.mubr.msk.f32.mxu0 %vm254_vm0, %v744_v0  ;;  %v199_v0 = vld [vmem:[%s756_s16 + $0x1a8] sm:$0xff] }
  0x3a   : > { %394 = vmatmul.mubr.f32.vlgmr.msra.gmra.mrb[0].mxu1 %v839_v53  ;;  %667 = vmatprep.subr.bf16.mxu0 %v666_v55  ;;  %v678_v9 = vpack.c.bf16 %v205_v7, %v199_v0 }
  0x3d   : > { %669 = vmatpush1.bf16.msra.mxu0 %v668_v60 }
  0x3e   : > { %671 = vmatprep.subr.bf16.mxu0 %v670_v61 }
  0x41   : > { %673 = vmatpush1.bf16.msra.mxu0 %v672_v3 }
  0x42   : > { %675 = vmatprep.subr.bf16.mxu0 %v674_v4 }
  0x45   : > { %677 = vmatpush1.bf16.msra.mxu0 %v676_v8 }
  0x46   : > { %679 = vmatprep.subr.bf16.mxu0 %v678_v9 }
  0x49   : > { %681 = vmatpush1.bf16.msra.mxu0 %v680_v14 }
  0x4a   : > { %683 = vmatprep.subr.bf16.mxu0 %v682_v15 }
  0x4d   : > { %685 = vmatpush1.bf16.msra.mxu0 %v684_v20 }
  0x4e   : > { %687 = vmatprep.subr.bf16.mxu0 %v686_v21 }
  0x51   : > { %689 = vmatpush1.bf16.msra.mxu0 %v688_v26 }
  0x52   : > { %691 = vmatprep.subr.bf16.mxu0 %v690_v27 }
  0x55   : > { %693 = vmatpush1.bf16.msra.mxu0 %v692_v32 }
  0x56   : > { %695 = vmatprep.subr.bf16.mxu0 %v694_v33 }
  0x59   : > { %697 = vmatpush1.bf16.msra.mxu0 %v696_v36 }
  0x5c   : > { %465 = vmatmul.mubr.f32.vlgmr.msra.gmra.mrb[2].mxu0 %v839_v53 }
 0x10b   : > { %v324_v37 = vpop.f32.mrb[0].mxu0 }
 0x10c   : > { %v326_v38 = vpop.f32.mrb[1].mxu0 }
 0x10d   : > { %v471_v39 = vadd.f32 %v326_v38, %v324_v37  ;;  %v395_v40 = vpop.f32.mrb[0].mxu1 }
 0x10e   : > { %v397_v41 = vpop.f32.mrb[1].mxu1 }
 0x10f   : > { %v472_v42 = vadd.f32 %v471_v39, %v395_v40 }
 0x111   : > { %v473_v43 = vadd.f32 %v472_v42, %v397_v41 }
 0x12f   : > { %v466_v44 = vpop.f32.mrb[2].mxu0 }
 0x130   : > { %v474_v45 = vadd.f32 %v473_v43, %v466_v44  ;;  %v468_v46 = vpop.f32.mrb[3].mxu0 }
 0x131   : > { %v476_v47 = vsel %vm475_vm1, %v468_v46, 0.0 }
 0x132   : > { %v477_v48 = vadd.f32 %v476_v47, %v474_v45 }
 0x134   : > { %478 = vadd.xlane.f32.xlu0 %v477_v48 }
 0x1c1   : > { %v479_v49 = vpop.xlane.xlu0 %478 }
 0x1c2   : > { %v481_v50 = vmul.f32 0.0013717421, %v479_v49 }
 0x1c4   : > { %v482_v51 = vsub.f32 %v324_v37, %v481_v50  ;;  %v483_v52 = vsub.f32 %v326_v38, %v481_v50  ;;  %v484_v53 = vsub.f32 %v395_v40, %v481_v50  ;;  %v485_v54 = vsub.f32 %v397_v41, %v481_v50 }
 0x1c5   : > { %v487_v57 = vsub.f32 %v468_v46, %v481_v50  ;;  %v486_v58 = vsub.f32 %v466_v44, %v481_v50 }
 0x1c6   : > { %v488_v55 = vmul.f32 %v482_v51, %v482_v51  ;;  %v489_v56 = vmul.f32 %v483_v52, %v483_v52  ;;  %v490_v59 = vmul.f32 %v484_v53, %v484_v53  ;;  %v491_v61 = vmul.f32 %v485_v54, %v485_v54 }
 0x1c7   : > { %v493_v63 = vmul.f32 %v487_v57, %v487_v57  ;;  %v492_v1 = vmul.f32 %v486_v58, %v486_v58 }
 0x1c8   : > { %v494_v60 = vadd.f32 %v489_v56, %v488_v55 }
 0x1c9   : > { %v498_v4 = vsel %vm475_vm1, %v493_v63, 0.0 }
 0x1ca   : > { %v495_v62 = vadd.f32 %v494_v60, %v490_v59 }
 0x1cc   : > { %v496_v2 = vadd.f32 %v495_v62, %v491_v61 }
 0x1ce   : > { %v497_v3 = vadd.f32 %v496_v2, %v492_v1 }
 0x1d0   : > { %v499_v5 = vadd.f32 %v498_v4, %v497_v3 }
 0x1d2   : > { %500 = vadd.xlane.f32.xlu0 %v499_v5 }
 0x25f   : > { %v501_v6 = vpop.xlane.xlu0 %500 }
 0x260   : > { %v502_v0 = vmul.f32 0.0013717421, %v501_v6 }
 0x262   : > { %v503_v7 = vadd.f32 1e-05, %v502_v0 }
 0x264   : > { %708 = vrsqrt.f32 %v503_v7 }
 0x26e   : > { %v709_v8 = vpop.eup %708 }
 0x26f   : > { %v505_v9 = vmul.f32 %v709_v8, %v482_v51  ;;  %v506_v10 = vmul.f32 %v709_v8, %v483_v52  ;;  %v507_v11 = vmul.f32 %v709_v8, %v484_v53  ;;  %v508_v12 = vmul.f32 %v709_v8, %v485_v54 }
 0x270   : > { %v509_v13 = vmul.f32 %v709_v8, %v486_v58  ;;  %v510_v14 = vmul.f32 %v709_v8, %v487_v57 }
 0x271   : > { %v511_v15 = vmax.f32 %v505_v9, 0.0  ;;  %v512_v16 = vmax.f32 %v506_v10, 0.0  ;;  %v513_v17 = vmax.f32 %v507_v11, 0.0  ;;  %v514_v18 = vmax.f32 %v508_v12, 0.0 }
 0x272   : > { %v515_v19 = vmax.f32 %v509_v13, 0.0  ;;  %v516_v20 = vmax.f32 %v510_v14, 0.0 }
 0x273   : > { %517 = vst [vmem:[%s143_s22] sm:$0xff] %v511_v15  ;;  %518 = vst [vmem:[%s143_s22 + $0x8] sm:$0xff] %v512_v16 }
 0x274   : > { %519 = vst [vmem:[%s143_s22 + $0x10] sm:$0xff] %v513_v17  ;;  %520 = vst [vmem:[%s143_s22 + $0x18] sm:$0xff] %v514_v18 }
 0x275   : > { %521 = vst [vmem:[%s143_s22 + $0x20] sm:$0xff] %v515_v19  ;;  %522 = vst.msk [vmem:[%s143_s22 + $0x28] sm:$0xff] %vm475_vm1, %v516_v20 }
 0x276 PF: > { %s12_s9 = sadd.s32 1, %s716_s9  }
 0x277   : > { %p9_p4 = scmp.ge.s32.totalorder %s12_s9, 4  }
 0x279   :  { %11 = sbr.rel (!%p9_p4) target bundleno = 1 (0x1), region = 58 }

// kernel: _generator_forward.27
= control target key start
LH: loop header
LB: loop body
LE: loop exit
PB: predicated region body
PF: predicated region fallthrough
CT: control target
= control target key end

     0   :  { %s1455_s9 = smov 0   ;;  %s1801_s0 = inlined_call_operand.vmem [shape: f32[2,288,1024], index: 0, kind: input, shape index: {}]   ;;  %s1802_s1 = inlined_call_operand.vmem [shape: f32[3,288], index: 1, kind: input, shape index: {}]   ;;  %s1803_s2 = inlined_call_operand.vmem [shape: f32[2,3,1024], index: 2, kind: output, shape index: {}]  }
   0x1 LB: > { %s1092_s10 = sadd.s32 4294967295, %s1437_s9   ;;  %p1096_p0 = scmp.ge.s32.totalorder %s1437_s9, 1  ;;  %s1437_s9 = sphi %s1455_s9, %s12_s9  }
   0x2   : > { %p112_p1 = scmp.lt.s32.totalorder %s1437_s9, 3 }
   0x4   : > { %p113_p2 = pnand %p1096_p0, %p112_p1 }
   0x5   : > { %p134_p3 = scmp.lt.s32.totalorder (!%p113_p2), %s1092_s10, 1  ;;  %v1466_v0 = vld [vmem:[%s1802_s1] sm:$0x77] (!%p113_p2)  ;;  %vm438_vm0 = vcmask (!%p113_p2), 261120  }
   0x6   : > { %116 = sbr.rel (%p113_p2) target bundleno = 394 (0x18a), region = 28  ;;  %v1470_v1 = vcombine.high (!%p113_p2), %v1466_v0, %v1466_v0 }
   0x8   : > { %505 = vmatprep.mubr.f32.mxu0 (!%p113_p2), %v1470_v1  ;;  %647 = vmatprep.mubr.f32.mxu1 (!%p113_p2), %v1470_v1 }
   0xd   : > { %s1805_s10 = smov (!%p134_p3, %s1092_s10), 1 }
   0xe   : > { %s1403_s13 = smul.u32 2304, %s1805_s10  ;;  %s1106_s21 = sshll.u32 %s1805_s10, 5 }
   0xf   : > { %s143_s24 = scalar_lea.vmem %s1803_s2, %s1106_s21 }
  0x10   : > { %s1480_s16 = scalar_lea.vmem %s1801_s0, %s1403_s13 }
  0x11   : > { %v147_v2 = vld [vmem:[%s1480_s16 + $0x8] sm:$0xff]  ;;  %v149_v4 = vld [vmem:[%s1480_s16 + $0x18] sm:$0xff]  ;;  %v146_v7 = vld [vmem:[%s1480_s16] sm:$0xff] }
  0x12   : > { %v155_v3 = vld [vmem:[%s1480_s16 + $0x48] sm:$0xff]  ;;  %v157_v6 = vld [vmem:[%s1480_s16 + $0x58] sm:$0xff]  ;;  %v154_v8 = vld [vmem:[%s1480_s16 + $0x40] sm:$0xff] }
  0x13   : > { %v1107_v5 = vpack.c.bf16 %v155_v3, %v147_v2  ;;  %v1179_v9 = vpack.c.bf16 %v157_v6, %v149_v4  ;;  %v1109_v10 = vpack.c.bf16 %v154_v8, %v146_v7  ;;  %v148_v11 = vld [vmem:[%s1480_s16 + $0x10] sm:$0xff]  ;;  %v163_v13 = vld [vmem:[%s1480_s16 + $0x88] sm:$0xff]  ;;  %v165_v16 = vld [vmem:[%s1480_s16 + $0x98] sm:$0xff] }
  0x14   : > { %v156_v12 = vld [vmem:[%s1480_s16 + $0x50] sm:$0xff]  ;;  %v171_v15 = vld [vmem:[%s1480_s16 + $0xc8] sm:$0xff]  ;;  %v173_v17 = vld [vmem:[%s1480_s16 + $0xd8] sm:$0xff] }
  0x15   : > { %1108 = vmatprep.subr.bf16.mxu0 %v1107_v5  ;;  %v1181_v14 = vpack.c.bf16 %v156_v12, %v148_v11  ;;  %1180 = vmatprep.subr.bf16.mxu1 %v1179_v9  ;;  %v1111_v18 = vpack.c.bf16 %v171_v15, %v163_v13  ;;  %v1183_v19 = vpack.c.bf16 %v173_v17, %v165_v16  ;;  %v162_v20 = vld [vmem:[%s1480_s16 + $0x80] sm:$0xff]  ;;  %v164_v22 = vld [vmem:[%s1480_s16 + $0x90] sm:$0xff]  ;;  %v179_v25 = vld [vmem:[%s1480_s16 + $0x108] sm:$0xff] }
  0x16   : > { %1110 = vmatpush1.bf16.msra.mxu0 %v1109_v10  ;;  %v170_v21 = vld [vmem:[%s1480_s16 + $0xc0] sm:$0xff]  ;;  %v172_v24 = vld [vmem:[%s1480_s16 + $0xd0] sm:$0xff]  ;;  %v187_v26 = vld [vmem:[%s1480_s16 + $0x148] sm:$0xff] }
  0x17   : > { %1182 = vmatpush1.bf16.msra.mxu1 %v1181_v14  ;;  %v1113_v23 = vpack.c.bf16 %v170_v21, %v162_v20  ;;  %1112 = vmatprep.subr.bf16.mxu0 %v1111_v18  ;;  %v1185_v27 = vpack.c.bf16 %v172_v24, %v164_v22  ;;  %v1115_v28 = vpack.c.bf16 %v187_v26, %v179_v25  ;;  %v181_v29 = vld [vmem:[%s1480_s16 + $0x118] sm:$0xff]  ;;  %v178_v31 = vld [vmem:[%s1480_s16 + $0x100] sm:$0xff]  ;;  %v180_v34 = vld [vmem:[%s1480_s16 + $0x110] sm:$0xff] }
  0x18   : > { %1184 = vmatprep.subr.bf16.mxu1 %v1183_v19  ;;  %v189_v30 = vld [vmem:[%s1480_s16 + $0x158] sm:$0xff]  ;;  %v186_v33 = vld [vmem:[%s1480_s16 + $0x140] sm:$0xff]  ;;  %v188_v35 = vld [vmem:[%s1480_s16 + $0x150] sm:$0xff] }
  0x19   : > { %v1187_v32 = vpack.c.bf16 %v189_v30, %v181_v29  ;;  %v1117_v36 = vpack.c.bf16 %v186_v33, %v178_v31  ;;  %v195_v37 = vld [vmem:[%s1480_s16 + $0x188] sm:$0xff]  ;;  %v197_v39 = vld [vmem:[%s1480_s16 + $0x198] sm:$0xff]  ;;  %v1189_v40 = vpack.c.bf16 %v188_v35, %v180_v34  ;;  %v194_v43 = vld [vmem:[%s1480_s16 + $0x180] sm:$0xff] }
  0x1a   : > { %1114 = vmatpush1.bf16.msra.mxu0 %v1113_v23  ;;  %v203_v38 = vld [vmem:[%s1480_s16 + $0x1c8] sm:$0xff]  ;;  %v205_v42 = vld [vmem:[%s1480_s16 + $0x1d8] sm:$0xff]  ;;  %v202_v44 = vld [vmem:[%s1480_s16 + $0x1c0] sm:$0xff] }
  0x1b   : > { %1186 = vmatpush1.bf16.msra.mxu1 %v1185_v27  ;;  %1116 = vmatprep.subr.bf16.mxu0 %v1115_v28  ;;  %v1119_v41 = vpack.c.bf16 %v203_v38, %v195_v37  ;;  %v1191_v45 = vpack.c.bf16 %v205_v42, %v197_v39  ;;  %v196_v46 = vld [vmem:[%s1480_s16 + $0x190] sm:$0xff]  ;;  %v211_v48 = vld [vmem:[%s1480_s16 + $0x208] sm:$0xff]  ;;  %v213_v50 = vld [vmem:[%s1480_s16 + $0x218] sm:$0xff]  ;;  %v1121_v52 = vpack.c.bf16 %v202_v44, %v194_v43 }
  0x1c   : > { %1188 = vmatprep.subr.bf16.mxu1 %v1187_v32  ;;  %v204_v47 = vld [vmem:[%s1480_s16 + $0x1d0] sm:$0xff]  ;;  %v219_v49 = vld [vmem:[%s1480_s16 + $0x248] sm:$0xff]  ;;  %v221_v51 = vld [vmem:[%s1480_s16 + $0x258] sm:$0xff] }
  0x1d   : > { %v1193_v53 = vpack.c.bf16 %v204_v47, %v196_v46  ;;  %v1123_v54 = vpack.c.bf16 %v219_v49, %v211_v48  ;;  %v210_v55 = vld [vmem:[%s1480_s16 + $0x200] sm:$0xff]  ;;  %v212_v57 = vld [vmem:[%s1480_s16 + $0x210] sm:$0xff]  ;;  %v1195_v58 = vpack.c.bf16 %v221_v51, %v213_v50  ;;  %v227_v60 = vld [vmem:[%s1480_s16 + $0x288] sm:$0xff] }
  0x1e   : > { %1118 = vmatpush1.bf16.msra.mxu0 %v1117_v36  ;;  %v218_v56 = vld [vmem:[%s1480_s16 + $0x240] sm:$0xff]  ;;  %v220_v59 = vld [vmem:[%s1480_s16 + $0x250] sm:$0xff]  ;;  %v235_v61 = vld [vmem:[%s1480_s16 + $0x2c8] sm:$0xff] }
  0x1f   : > { %1190 = vmatpush1.bf16.msra.mxu1 %v1189_v40  ;;  %1120 = vmatprep.subr.bf16.mxu0 %v1119_v41  ;;  %v229_v62 = vld [vmem:[%s1480_s16 + $0x298] sm:$0xff]  ;;  %v1125_v2 = vpack.c.bf16 %v218_v56, %v210_v55  ;;  %v1197_v3 = vpack.c.bf16 %v220_v59, %v212_v57  ;;  %v1127_v4 = vpack.c.bf16 %v235_v61, %v227_v60  ;;  %v226_v5 = vld [vmem:[%s1480_s16 + $0x280] sm:$0xff]  ;;  %v228_v7 = vld [vmem:[%s1480_s16 + $0x290] sm:$0xff] }
  0x20   : > { %1192 = vmatprep.subr.bf16.mxu1 %v1191_v45  ;;  %v237_v63 = vld [vmem:[%s1480_s16 + $0x2d8] sm:$0xff]  ;;  %v234_v6 = vld [vmem:[%s1480_s16 + $0x2c0] sm:$0xff]  ;;  %v236_v9 = vld [vmem:[%s1480_s16 + $0x2d0] sm:$0xff] }
  0x21   : > { %v1199_v8 = vpack.c.bf16 %v237_v63, %v229_v62  ;;  %v243_v10 = vld [vmem:[%s1480_s16 + $0x308] sm:$0xff]  ;;  %v245_v12 = vld [vmem:[%s1480_s16 + $0x318] sm:$0xff]  ;;  %v1129_v14 = vpack.c.bf16 %v234_v6, %v226_v5  ;;  %v1201_v15 = vpack.c.bf16 %v236_v9, %v228_v7  ;;  %v242_v17 = vld [vmem:[%s1480_s16 + $0x300] sm:$0xff] }
  0x22   : > { %1122 = vmatpush1.bf16.msra.mxu0 %v1121_v52  ;;  %v251_v11 = vld [vmem:[%s1480_s16 + $0x348] sm:$0xff]  ;;  %v253_v13 = vld [vmem:[%s1480_s16 + $0x358] sm:$0xff]  ;;  %v250_v18 = vld [vmem:[%s1480_s16 + $0x340] sm:$0xff] }
  0x23   : > { %1194 = vmatpush1.bf16.msra.mxu1 %v1193_v53  ;;  %1124 = vmatprep.subr.bf16.mxu0 %v1123_v54  ;;  %v1131_v16 = vpack.c.bf16 %v251_v11, %v243_v10  ;;  %v244_v19 = vld [vmem:[%s1480_s16 + $0x310] sm:$0xff]  ;;  %v1203_v20 = vpack.c.bf16 %v253_v13, %v245_v12  ;;  %v259_v22 = vld [vmem:[%s1480_s16 + $0x388] sm:$0xff]  ;;  %v261_v24 = vld [vmem:[%s1480_s16 + $0x398] sm:$0xff]  ;;  %v1133_v26 = vpack.c.bf16 %v250_v18, %v242_v17 }
  0x24   : > { %1196 = vmatprep.subr.bf16.mxu1 %v1195_v58  ;;  %v252_v21 = vld [vmem:[%s1480_s16 + $0x350] sm:$0xff]  ;;  %v267_v23 = vld [vmem:[%s1480_s16 + $0x3c8] sm:$0xff]  ;;  %v269_v25 = vld [vmem:[%s1480_s16 + $0x3d8] sm:$0xff] }
  0x25   : > { %v1205_v27 = vpack.c.bf16 %v252_v21, %v244_v19  ;;  %v1135_v28 = vpack.c.bf16 %v267_v23, %v259_v22  ;;  %v258_v29 = vld [vmem:[%s1480_s16 + $0x380] sm:$0xff]  ;;  %v260_v31 = vld [vmem:[%s1480_s16 + $0x390] sm:$0xff]  ;;  %v1207_v32 = vpack.c.bf16 %v269_v25, %v261_v24  ;;  %v275_v34 = vld [vmem:[%s1480_s16 + $0x408] sm:$0xff] }
  0x26   : > { %1126 = vmatpush1.bf16.msra.mxu0 %v1125_v2  ;;  %v266_v30 = vld [vmem:[%s1480_s16 + $0x3c0] sm:$0xff]  ;;  %v268_v33 = vld [vmem:[%s1480_s16 + $0x3d0] sm:$0xff]  ;;  %v283_v35 = vld [vmem:[%s1480_s16 + $0x448] sm:$0xff] }
  0x27   : > { %1198 = vmatpush1.bf16.msra.mxu1 %v1197_v3  ;;  %1128 = vmatprep.subr.bf16.mxu0 %v1127_v4  ;;  %v277_v36 = vld [vmem:[%s1480_s16 + $0x418] sm:$0xff]  ;;  %v1137_v38 = vpack.c.bf16 %v266_v30, %v258_v29  ;;  %v1209_v39 = vpack.c.bf16 %v268_v33, %v260_v31  ;;  %v1139_v40 = vpack.c.bf16 %v283_v35, %v275_v34  ;;  %v274_v41 = vld [vmem:[%s1480_s16 + $0x400] sm:$0xff]  ;;  %v276_v43 = vld [vmem:[%s1480_s16 + $0x410] sm:$0xff] }
  0x28   : > { %1200 = vmatprep.subr.bf16.mxu1 %v1199_v8  ;;  %v285_v37 = vld [vmem:[%s1480_s16 + $0x458] sm:$0xff]  ;;  %v282_v42 = vld [vmem:[%s1480_s16 + $0x440] sm:$0xff]  ;;  %v284_v45 = vld [vmem:[%s1480_s16 + $0x450] sm:$0xff] }
  0x29   : > { %v1211_v44 = vpack.c.bf16 %v285_v37, %v277_v36  ;;  %v291_v46 = vld [vmem:[%s1480_s16 + $0x488] sm:$0xff]  ;;  %v293_v48 = vld [vmem:[%s1480_s16 + $0x498] sm:$0xff]  ;;  %v1141_v50 = vpack.c.bf16 %v282_v42, %v274_v41  ;;  %v1213_v51 = vpack.c.bf16 %v284_v45, %v276_v43  ;;  %v290_v53 = vld [vmem:[%s1480_s16 + $0x480] sm:$0xff] }
  0x2a   : > { %1130 = vmatpush1.bf16.msra.mxu0 %v1129_v14  ;;  %v299_v47 = vld [vmem:[%s1480_s16 + $0x4c8] sm:$0xff]  ;;  %v301_v49 = vld [vmem:[%s1480_s16 + $0x4d8] sm:$0xff]  ;;  %v298_v54 = vld [vmem:[%s1480_s16 + $0x4c0] sm:$0xff] }
  0x2b   : > { %1202 = vmatpush1.bf16.msra.mxu1 %v1201_v15  ;;  %1132 = vmatprep.subr.bf16.mxu0 %v1131_v16  ;;  %v1143_v52 = vpack.c.bf16 %v299_v47, %v291_v46  ;;  %v292_v55 = vld [vmem:[%s1480_s16 + $0x490] sm:$0xff]  ;;  %v1215_v56 = vpack.c.bf16 %v301_v49, %v293_v48  ;;  %v307_v58 = vld [vmem:[%s1480_s16 + $0x508] sm:$0xff]  ;;  %v309_v60 = vld [vmem:[%s1480_s16 + $0x518] sm:$0xff]  ;;  %v1145_v62 = vpack.c.bf16 %v298_v54, %v290_v53 }
  0x2c   : > { %1204 = vmatprep.subr.bf16.mxu1 %v1203_v20  ;;  %v300_v57 = vld [vmem:[%s1480_s16 + $0x4d0] sm:$0xff]  ;;  %v315_v59 = vld [vmem:[%s1480_s16 + $0x548] sm:$0xff]  ;;  %v317_v61 = vld [vmem:[%s1480_s16 + $0x558] sm:$0xff] }
  0x2d   : > { %v1217_v63 = vpack.c.bf16 %v300_v57, %v292_v55  ;;  %v1147_v2 = vpack.c.bf16 %v315_v59, %v307_v58  ;;  %v306_v3 = vld [vmem:[%s1480_s16 + $0x500] sm:$0xff]  ;;  %v308_v5 = vld [vmem:[%s1480_s16 + $0x510] sm:$0xff]  ;;  %v1219_v6 = vpack.c.bf16 %v317_v61, %v309_v60  ;;  %v323_v8 = vld [vmem:[%s1480_s16 + $0x588] sm:$0xff] }
  0x2e   : > { %1134 = vmatpush1.bf16.msra.mxu0 %v1133_v26  ;;  %v314_v4 = vld [vmem:[%s1480_s16 + $0x540] sm:$0xff]  ;;  %v316_v7 = vld [vmem:[%s1480_s16 + $0x550] sm:$0xff]  ;;  %v331_v9 = vld [vmem:[%s1480_s16 + $0x5c8] sm:$0xff] }
  0x2f   : > { %1206 = vmatpush1.bf16.msra.mxu1 %v1205_v27  ;;  %1136 = vmatprep.subr.bf16.mxu0 %v1135_v28  ;;  %v325_v10 = vld [vmem:[%s1480_s16 + $0x598] sm:$0xff]  ;;  %v1149_v12 = vpack.c.bf16 %v314_v4, %v306_v3  ;;  %v1221_v13 = vpack.c.bf16 %v316_v7, %v308_v5  ;;  %v1151_v14 = vpack.c.bf16 %v331_v9, %v323_v8  ;;  %v322_v15 = vld [vmem:[%s1480_s16 + $0x580] sm:$0xff]  ;;  %v324_v17 = vld [vmem:[%s1480_s16 + $0x590] sm:$0xff] }
  0x30   : > { %1208 = vmatprep.subr.bf16.mxu1 %v1207_v32  ;;  %v333_v11 = vld [vmem:[%s1480_s16 + $0x5d8] sm:$0xff]  ;;  %v330_v16 = vld [vmem:[%s1480_s16 + $0x5c0] sm:$0xff]  ;;  %v332_v19 = vld [vmem:[%s1480_s16 + $0x5d0] sm:$0xff] }
  0x31   : > { %v1223_v18 = vpack.c.bf16 %v333_v11, %v325_v10  ;;  %v339_v20 = vld [vmem:[%s1480_s16 + $0x608] sm:$0xff]  ;;  %v341_v22 = vld [vmem:[%s1480_s16 + $0x618] sm:$0xff]  ;;  %v1153_v24 = vpack.c.bf16 %v330_v16, %v322_v15  ;;  %v1225_v25 = vpack.c.bf16 %v332_v19, %v324_v17  ;;  %v338_v27 = vld [vmem:[%s1480_s16 + $0x600] sm:$0xff] }
  0x32   : > { %1138 = vmatpush1.bf16.msra.mxu0 %v1137_v38  ;;  %v347_v21 = vld [vmem:[%s1480_s16 + $0x648] sm:$0xff]  ;;  %v349_v23 = vld [vmem:[%s1480_s16 + $0x658] sm:$0xff]  ;;  %v346_v28 = vld [vmem:[%s1480_s16 + $0x640] sm:$0xff] }
  0x33   : > { %1210 = vmatpush1.bf16.msra.mxu1 %v1209_v39  ;;  %1140 = vmatprep.subr.bf16.mxu0 %v1139_v40  ;;  %v1155_v26 = vpack.c.bf16 %v347_v21, %v339_v20  ;;  %v340_v29 = vld [vmem:[%s1480_s16 + $0x610] sm:$0xff]  ;;  %v1227_v30 = vpack.c.bf16 %v349_v23, %v341_v22  ;;  %v355_v32 = vld [vmem:[%s1480_s16 + $0x688] sm:$0xff]  ;;  %v357_v34 = vld [vmem:[%s1480_s16 + $0x698] sm:$0xff]  ;;  %v1157_v36 = vpack.c.bf16 %v346_v28, %v338_v27 }
  0x34   : > { %1212 = vmatprep.subr.bf16.mxu1 %v1211_v44  ;;  %v348_v31 = vld [vmem:[%s1480_s16 + $0x650] sm:$0xff]  ;;  %v363_v33 = vld [vmem:[%s1480_s16 + $0x6c8] sm:$0xff]  ;;  %v365_v35 = vld [vmem:[%s1480_s16 + $0x6d8] sm:$0xff] }
  0x35   : > { %v1229_v37 = vpack.c.bf16 %v348_v31, %v340_v29  ;;  %v1159_v38 = vpack.c.bf16 %v363_v33, %v355_v32  ;;  %v354_v39 = vld [vmem:[%s1480_s16 + $0x680] sm:$0xff]  ;;  %v356_v41 = vld [vmem:[%s1480_s16 + $0x690] sm:$0xff]  ;;  %v1231_v42 = vpack.c.bf16 %v365_v35, %v357_v34  ;;  %v371_v44 = vld [vmem:[%s1480_s16 + $0x708] sm:$0xff] }
  0x36   : > { %1142 = vmatpush1.bf16.msra.mxu0 %v1141_v50  ;;  %v362_v40 = vld [vmem:[%s1480_s16 + $0x6c0] sm:$0xff]  ;;  %v364_v43 = vld [vmem:[%s1480_s16 + $0x6d0] sm:$0xff]  ;;  %v379_v45 = vld [vmem:[%s1480_s16 + $0x748] sm:$0xff] }
  0x37   : > { %1214 = vmatpush1.bf16.msra.mxu1 %v1213_v51  ;;  %1144 = vmatprep.subr.bf16.mxu0 %v1143_v52  ;;  %v373_v46 = vld [vmem:[%s1480_s16 + $0x718] sm:$0xff]  ;;  %v1161_v48 = vpack.c.bf16 %v362_v40, %v354_v39  ;;  %v1233_v49 = vpack.c.bf16 %v364_v43, %v356_v41  ;;  %v1163_v50 = vpack.c.bf16 %v379_v45, %v371_v44  ;;  %v370_v51 = vld [vmem:[%s1480_s16 + $0x700] sm:$0xff]  ;;  %v372_v53 = vld [vmem:[%s1480_s16 + $0x710] sm:$0xff]  ;;  %v1439_v40 = vmov 0.0  }
  0x38   : > { %1216 = vmatprep.subr.bf16.mxu1 %v1215_v56  ;;  %v381_v47 = vld [vmem:[%s1480_s16 + $0x758] sm:$0xff]  ;;  %v378_v52 = vld [vmem:[%s1480_s16 + $0x740] sm:$0xff]  ;;  %v380_v55 = vld [vmem:[%s1480_s16 + $0x750] sm:$0xff] }
  0x39   : > { %v1235_v54 = vpack.c.bf16 %v381_v47, %v373_v46  ;;  %v387_v56 = vld [vmem:[%s1480_s16 + $0x788] sm:$0xff]  ;;  %v389_v58 = vld [vmem:[%s1480_s16 + $0x798] sm:$0xff]  ;;  %v1165_v60 = vpack.c.bf16 %v378_v52, %v370_v51  ;;  %v1237_v61 = vpack.c.bf16 %v380_v55, %v372_v53  ;;  %v388_v3 = vld [vmem:[%s1480_s16 + $0x790] sm:$0xff] }
  0x3a   : > { %1146 = vmatpush1.bf16.msra.mxu0 %v1145_v62  ;;  %v395_v57 = vld [vmem:[%s1480_s16 + $0x7c8] sm:$0xff]  ;;  %v397_v59 = vld [vmem:[%s1480_s16 + $0x7d8] sm:$0xff]  ;;  %v396_v5 = vld [vmem:[%s1480_s16 + $0x7d0] sm:$0xff] }
  0x3b   : > { %1218 = vmatpush1.bf16.msra.mxu1 %v1217_v63  ;;  %1148 = vmatprep.subr.bf16.mxu0 %v1147_v2  ;;  %v1167_v62 = vpack.c.bf16 %v395_v57, %v387_v56  ;;  %v386_v63 = vld [vmem:[%s1480_s16 + $0x780] sm:$0xff]  ;;  %v1239_v4 = vpack.c.bf16 %v397_v59, %v389_v58  ;;  %v411_v7 = vld [vmem:[%s1480_s16 + $0x848] sm:$0xff]  ;;  %v405_v8 = vld [vmem:[%s1480_s16 + $0x818] sm:$0xff]  ;;  %v1241_v11 = vpack.c.bf16 %v396_v5, %v388_v3 }
  0x3c   : > { %1220 = vmatprep.subr.bf16.mxu1 %v1219_v6  ;;  %v394_v2 = vld [vmem:[%s1480_s16 + $0x7c0] sm:$0xff]  ;;  %v403_v6 = vld [vmem:[%s1480_s16 + $0x808] sm:$0xff]  ;;  %v413_v9 = vld [vmem:[%s1480_s16 + $0x858] sm:$0xff] }
  0x3d   : > { %v1169_v10 = vpack.c.bf16 %v394_v2, %v386_v63  ;;  %v404_v15 = vld [vmem:[%s1480_s16 + $0x810] sm:$0xff]  ;;  %v1243_v16 = vpack.c.bf16 %v413_v9, %v405_v8  ;;  %v427_v19 = vld [vmem:[%s1480_s16 + $0x8c8] sm:$0xff]  ;;  %v421_v20 = vld [vmem:[%s1480_s16 + $0x898] sm:$0xff] }
  0x3e   : > { %1150 = vmatpush1.bf16.msra.mxu0 %v1149_v12  ;;  %v1171_v12 = vpack.c.bf16 %v411_v7, %v403_v6  ;;  %v412_v17 = vld [vmem:[%s1480_s16 + $0x850] sm:$0xff]  ;;  %v429_v21 = vld [vmem:[%s1480_s16 + $0x8d8] sm:$0xff]  ;;  %v159_v31 = vld [vmem:[%s1480_s16 + $0x68] sm:$0xff] }
  0x3f   : > { %1222 = vmatpush1.bf16.msra.mxu1 %v1221_v13  ;;  %1152 = vmatprep.subr.bf16.mxu0 %v1151_v14  ;;  %v402_v13 = vld [vmem:[%s1480_s16 + $0x800] sm:$0xff]  ;;  %v1245_v23 = vpack.c.bf16 %v412_v17, %v404_v15  ;;  %v420_v27 = vld [vmem:[%s1480_s16 + $0x890] sm:$0xff]  ;;  %v1247_v28 = vpack.c.bf16 %v429_v21, %v421_v20  ;;  %v153_v32 = vld [vmem:[%s1480_s16 + $0x38] sm:$0xff] }
  0x40   : > { %1224 = vmatprep.subr.bf16.mxu1 %v1223_v18  ;;  %v410_v14 = vld [vmem:[%s1480_s16 + $0x840] sm:$0xff]  ;;  %v419_v18 = vld [vmem:[%s1480_s16 + $0x888] sm:$0xff]  ;;  %v428_v29 = vld [vmem:[%s1480_s16 + $0x8d0] sm:$0xff] }
  0x41   : > { %v1173_v22 = vpack.c.bf16 %v410_v14, %v402_v13  ;;  %v161_v33 = vld [vmem:[%s1480_s16 + $0x78] sm:$0xff]  ;;  %v1249_v35 = vpack.c.bf16 %v428_v29, %v420_v27  ;;  %v152_v39 = vld [vmem:[%s1480_s16 + $0x30] sm:$0xff]  ;;  %v175_v43 = vld [vmem:[%s1480_s16 + $0xe8] sm:$0xff] }
  0x42   : > { %1154 = vmatpush1.bf16.msra.mxu0 %v1153_v24  ;;  %v1175_v24 = vpack.c.bf16 %v427_v19, %v419_v18  ;;  %v1323_v41 = vpack.c.bf16 %v161_v33, %v153_v32  ;;  %v169_v44 = vld [vmem:[%s1480_s16 + $0xb8] sm:$0xff]  ;;  %v1645_v46 = vld [vmem:[%s1802_s1 + $0x8] sm:$0x7]  ;;  %v174_v51 = vld [vmem:[%s1480_s16 + $0xe0] sm:$0xff] }
  0x43   : > { %1226 = vmatpush1.bf16.msra.mxu1 %v1225_v25  ;;  %1156 = vmatprep.subr.bf16.mxu0 %v1155_v26  ;;  %v418_v25 = vld [vmem:[%s1480_s16 + $0x880] sm:$0xff]  ;;  %v177_v45 = vld [vmem:[%s1480_s16 + $0xf8] sm:$0xff]  ;;  %v168_v52 = vld [vmem:[%s1480_s16 + $0xb0] sm:$0xff] }
  0x44   : > { %1228 = vmatprep.subr.bf16.mxu1 %v1227_v30  ;;  %v426_v26 = vld [vmem:[%s1480_s16 + $0x8c0] sm:$0xff]  ;;  %v151_v30 = vld [vmem:[%s1480_s16 + $0x28] sm:$0xff]  ;;  %v1327_v53 = vpack.c.bf16 %v177_v45, %v169_v44  ;;  %v185_v57 = vld [vmem:[%s1480_s16 + $0x138] sm:$0xff] }
  0x45   : > { %v1177_v34 = vpack.c.bf16 %v426_v26, %v418_v25  ;;  %v183_v55 = vld [vmem:[%s1480_s16 + $0x128] sm:$0xff]  ;;  %v193_v58 = vld [vmem:[%s1480_s16 + $0x178] sm:$0xff]  ;;  %v190_v63 = vld [vmem:[%s1480_s16 + $0x160] sm:$0xff] }
  0x46   : > { %1158 = vmatpush1.bf16.msra.mxu0 %v1157_v36  ;;  %v1251_v36 = vpack.c.bf16 %v159_v31, %v151_v30  ;;  %v191_v56 = vld [vmem:[%s1480_s16 + $0x168] sm:$0xff]  ;;  %v184_v2 = vld [vmem:[%s1480_s16 + $0x130] sm:$0xff]  ;;  %v1331_v3 = vpack.c.bf16 %v193_v58, %v185_v57  ;;  %v201_v7 = vld [vmem:[%s1480_s16 + $0x1b8] sm:$0xff] }
  0x47   : > { %1230 = vmatpush1.bf16.msra.mxu1 %v1229_v37  ;;  %1160 = vmatprep.subr.bf16.mxu0 %v1159_v38  ;;  %v150_v37 = vld [vmem:[%s1480_s16 + $0x20] sm:$0xff]  ;;  %v199_v5 = vld [vmem:[%s1480_s16 + $0x1a8] sm:$0xff]  ;;  %v209_v8 = vld [vmem:[%s1480_s16 + $0x1f8] sm:$0xff] }
  0x48   : > { %1232 = vmatprep.subr.bf16.mxu1 %v1231_v42  ;;  %v158_v38 = vld [vmem:[%s1480_s16 + $0x60] sm:$0xff]  ;;  %v167_v42 = vld [vmem:[%s1480_s16 + $0xa8] sm:$0xff]  ;;  %v200_v14 = vld [vmem:[%s1480_s16 + $0x1b0] sm:$0xff]  ;;  %v1335_v15 = vpack.c.bf16 %v209_v8, %v201_v7 }
  0x49   : > { %v1253_v47 = vpack.c.bf16 %v158_v38, %v150_v37  ;;  %v207_v6 = vld [vmem:[%s1480_s16 + $0x1e8] sm:$0xff]  ;;  %v206_v13 = vld [vmem:[%s1480_s16 + $0x1e0] sm:$0xff]  ;;  %v217_v18 = vld [vmem:[%s1480_s16 + $0x238] sm:$0xff] }
  0x4a   : > { %1162 = vmatpush1.bf16.msra.mxu0 %v1161_v48  ;;  %v215_v17 = vld [vmem:[%s1480_s16 + $0x228] sm:$0xff]  ;;  %v225_v19 = vld [vmem:[%s1480_s16 + $0x278] sm:$0xff]  ;;  %v216_v25 = vld [vmem:[%s1480_s16 + $0x230] sm:$0xff] }
  0x4b   : > { %1234 = vmatpush1.bf16.msra.mxu1 %v1233_v49  ;;  %1164 = vmatprep.subr.bf16.mxu0 %v1163_v50  ;;  %v1255_v49 = vpack.c.bf16 %v175_v43, %v167_v42  ;;  %v166_v50 = vld [vmem:[%s1480_s16 + $0xa0] sm:$0xff]  ;;  %v1339_v26 = vpack.c.bf16 %v225_v19, %v217_v18  ;;  %v224_v27 = vld [vmem:[%s1480_s16 + $0x270] sm:$0xff]  ;;  %v239_v29 = vld [vmem:[%s1480_s16 + $0x2e8] sm:$0xff] }
  0x4c   : > { %1236 = vmatprep.subr.bf16.mxu1 %v1235_v54  ;;  %v176_v54 = vld [vmem:[%s1480_s16 + $0xf0] sm:$0xff]  ;;  %v1257_v59 = vpack.c.bf16 %v174_v51, %v166_v50  ;;  %v233_v30 = vld [vmem:[%s1480_s16 + $0x2b8] sm:$0xff]  ;;  %v1341_v33 = vpack.c.bf16 %v224_v27, %v216_v25  ;;  %v319_v27 = vld [vmem:[%s1480_s16 + $0x568] sm:$0xff] }
  0x4d   : > { %v241_v31 = vld [vmem:[%s1480_s16 + $0x2f8] sm:$0xff]  ;;  %v232_v37 = vld [vmem:[%s1480_s16 + $0x2b0] sm:$0xff] }
  0x4e   : > { %1166 = vmatpush1.bf16.msra.mxu0 %v1165_v60  ;;  %v1329_v60 = vpack.c.bf16 %v176_v54, %v168_v52  ;;  %v1343_v38 = vpack.c.bf16 %v241_v31, %v233_v30  ;;  %v249_v42 = vld [vmem:[%s1480_s16 + $0x338] sm:$0xff]  ;;  %v248_v50 = vld [vmem:[%s1480_s16 + $0x330] sm:$0xff]  ;;  %v271_v54 = vld [vmem:[%s1480_s16 + $0x3e8] sm:$0xff] }
  0x4f   : > { %1238 = vmatpush1.bf16.msra.mxu1 %v1237_v61  ;;  %1168 = vmatprep.subr.bf16.mxu0 %v1167_v62  ;;  %v1259_v61 = vpack.c.bf16 %v191_v56, %v183_v55  ;;  %v182_v62 = vld [vmem:[%s1480_s16 + $0x120] sm:$0xff]  ;;  %v257_v43 = vld [vmem:[%s1480_s16 + $0x378] sm:$0xff]  ;;  %v256_v52 = vld [vmem:[%s1480_s16 + $0x370] sm:$0xff] }
  0x50   : > { %1240 = vmatprep.subr.bf16.mxu1 %v1239_v4  ;;  %v192_v4 = vld [vmem:[%s1480_s16 + $0x170] sm:$0xff]  ;;  %v1261_v9 = vpack.c.bf16 %v190_v63, %v182_v62  ;;  %v1347_v51 = vpack.c.bf16 %v257_v43, %v249_v42  ;;  %v265_v55 = vld [vmem:[%s1480_s16 + $0x3b8] sm:$0xff]  ;;  %v1349_v58 = vpack.c.bf16 %v256_v52, %v248_v50  ;;  %v351_v52 = vld [vmem:[%s1480_s16 + $0x668] sm:$0xff] }
  0x51   : > { %v273_v56 = vld [vmem:[%s1480_s16 + $0x3f8] sm:$0xff]  ;;  %v264_v62 = vld [vmem:[%s1480_s16 + $0x3b0] sm:$0xff] }
  0x52   : > { %1170 = vmatpush1.bf16.msra.mxu0 %v1169_v10  ;;  %v1333_v10 = vpack.c.bf16 %v192_v4, %v184_v2  ;;  %v1351_v63 = vpack.c.bf16 %v273_v56, %v265_v55  ;;  %v272_v2 = vld [vmem:[%s1480_s16 + $0x3f0] sm:$0xff]  ;;  %v287_v4 = vld [vmem:[%s1480_s16 + $0x468] sm:$0xff] }
  0x53   : > { %1242 = vmatpush1.bf16.msra.mxu1 %v1241_v11  ;;  %1172 = vmatprep.subr.bf16.mxu0 %v1171_v12  ;;  %v1263_v11 = vpack.c.bf16 %v207_v6, %v199_v5  ;;  %v198_v12 = vld [vmem:[%s1480_s16 + $0x1a0] sm:$0xff]  ;;  %v281_v5 = vld [vmem:[%s1480_s16 + $0x438] sm:$0xff]  ;;  %v1353_v8 = vpack.c.bf16 %v272_v2, %v264_v62  ;;  %v304_v25 = vld [vmem:[%s1480_s16 + $0x4f0] sm:$0xff] }
  0x54   : > { %1244 = vmatprep.subr.bf16.mxu1 %v1243_v16  ;;  %v208_v16 = vld [vmem:[%s1480_s16 + $0x1f0] sm:$0xff]  ;;  %v1265_v20 = vpack.c.bf16 %v206_v13, %v198_v12  ;;  %v289_v6 = vld [vmem:[%s1480_s16 + $0x478] sm:$0xff]  ;;  %v367_v2 = vld [vmem:[%s1480_s16 + $0x6e8] sm:$0xff] }
  0x55   : > { %506 = vmatmul.mubr.f32.vlgmr.msra.gmra.mrb[0].mxu0 %v1466_v0  ;;  %v1337_v21 = vpack.c.bf16 %v208_v16, %v200_v14  ;;  %v280_v12 = vld [vmem:[%s1480_s16 + $0x430] sm:$0xff]  ;;  %v1355_v13 = vpack.c.bf16 %v289_v6, %v281_v5  ;;  %v303_v16 = vld [vmem:[%s1480_s16 + $0x4e8] sm:$0xff] }
  0x56   : > { %648 = vmatmul.mubr.f32.vlgmr.msra.gmra.mrb[0].mxu1 %v1466_v0  ;;  %1174 = vmatpush1.bf16.msra.mxu0 %v1173_v22  ;;  %v160_v0 = vld [vmem:[%s1480_s16 + $0x70] sm:$0xff] }
  0x57   : > { %1246 = vmatpush1.bf16.msra.mxu1 %v1245_v23  ;;  %1176 = vmatprep.subr.bf16.mxu0 %v1175_v24  ;;  %v1325_v48 = vpack.c.bf16 %v160_v0, %v152_v39  ;;  %v214_v23 = vld [vmem:[%s1480_s16 + $0x220] sm:$0xff]  ;;  %v240_v39 = vld [vmem:[%s1480_s16 + $0x2f0] sm:$0xff]  ;;  %v255_v0 = vld [vmem:[%s1480_s16 + $0x368] sm:$0xff] }
  0x58   : > { %1248 = vmatprep.subr.bf16.mxu1 %v1247_v28  ;;  %576 = vmatprep.mubr.f32.mxu0 %v1439_v40  ;;  %v222_v24 = vld [vmem:[%s1480_s16 + $0x260] sm:$0xff]  ;;  %v231_v28 = vld [vmem:[%s1480_s16 + $0x2a8] sm:$0xff]  ;;  %v1345_v45 = vpack.c.bf16 %v240_v39, %v232_v37  ;;  %v288_v14 = vld [vmem:[%s1480_s16 + $0x470] sm:$0xff] }
  0x59   : > { %718 = vmatprep.mubr.f32.mxu1 %v1439_v40  ;;  %v1269_v32 = vpack.c.bf16 %v222_v24, %v214_v23  ;;  %v1357_v19 = vpack.c.bf16 %v288_v14, %v280_v12  ;;  %v296_v23 = vld [vmem:[%s1480_s16 + $0x4b0] sm:$0xff]  ;;  %v335_v39 = vld [vmem:[%s1480_s16 + $0x5e8] sm:$0xff] }
  0x5a   : > { %1178 = vmatpush1.bf16.msra.mxu0 %v1177_v34  ;;  %v1271_v34 = vpack.c.bf16 %v239_v29, %v231_v28  ;;  %v313_v28 = vld [vmem:[%s1480_s16 + $0x538] sm:$0xff]  ;;  %v1361_v31 = vpack.c.bf16 %v304_v25, %v296_v23  ;;  %v320_v37 = vld [vmem:[%s1480_s16 + $0x570] sm:$0xff]  ;;  %v383_v14 = vld [vmem:[%s1480_s16 + $0x768] sm:$0xff] }
  0x5b   : > { %1250 = vmatpush1.bf16.msra.mxu1 %v1249_v35  ;;  %1252 = vmatprep.subr.bf16.mxu0 %v1251_v36  ;;  %v230_v35 = vld [vmem:[%s1480_s16 + $0x2a0] sm:$0xff]  ;;  %v321_v29 = vld [vmem:[%s1480_s16 + $0x578] sm:$0xff]  ;;  %v336_v50 = vld [vmem:[%s1480_s16 + $0x5f0] sm:$0xff] }
  0x5c   : > { %1324 = vmatprep.subr.bf16.mxu1 %v1323_v41  ;;  %v238_v36 = vld [vmem:[%s1480_s16 + $0x2e0] sm:$0xff]  ;;  %v247_v41 = vld [vmem:[%s1480_s16 + $0x328] sm:$0xff]  ;;  %v352_v62 = vld [vmem:[%s1480_s16 + $0x670] sm:$0xff] }
  0x5d   : > { %1100 = vmatmul.mubr.msk.f32.vlgmr.msra.gmra.mrb[0].mxu0 %vm438_vm0, %v1645_v46  ;;  %v1273_v44 = vpack.c.bf16 %v238_v36, %v230_v35  ;;  %v312_v35 = vld [vmem:[%s1480_s16 + $0x530] sm:$0xff]  ;;  %v1363_v36 = vpack.c.bf16 %v321_v29, %v313_v28  ;;  %v399_v25 = vld [vmem:[%s1480_s16 + $0x7e8] sm:$0xff] }
  0x5e   : > { %1101 = vmatmul.mubr.msk.f32.vlgmr.msra.gmra.mrb[0].mxu1 %vm438_vm0, %v1645_v46  ;;  %1254 = vmatpush1.bf16.msra.mxu0 %v1253_v47  ;;  %v1275_v47 = vpack.c.bf16 %v255_v0, %v247_v41  ;;  %v329_v41 = vld [vmem:[%s1480_s16 + $0x5b8] sm:$0xff]  ;;  %v1365_v43 = vpack.c.bf16 %v320_v37, %v312_v35  ;;  %v368_v12 = vld [vmem:[%s1480_s16 + $0x6f0] sm:$0xff]  ;;  %v415_v37 = vld [vmem:[%s1480_s16 + $0x868] sm:$0xff] }
  0x5f   : > { %1326 = vmatpush1.bf16.msra.mxu1 %v1325_v48  ;;  %1256 = vmatprep.subr.bf16.mxu0 %v1255_v49  ;;  %v246_v48 = vld [vmem:[%s1480_s16 + $0x320] sm:$0xff]  ;;  %v337_v0 = vld [vmem:[%s1480_s16 + $0x5f8] sm:$0xff]  ;;  %v384_v23 = vld [vmem:[%s1480_s16 + $0x770] sm:$0xff] }
  0x60   : > { %1328 = vmatprep.subr.bf16.mxu1 %v1327_v53  ;;  %789 = vmatprep.mubr.f32.mxu0 %v1470_v1  ;;  %v254_v49 = vld [vmem:[%s1480_s16 + $0x360] sm:$0xff]  ;;  %v263_v53 = vld [vmem:[%s1480_s16 + $0x3a8] sm:$0xff]  ;;  %v400_v35 = vld [vmem:[%s1480_s16 + $0x7f0] sm:$0xff] }
  0x61   : > { %931 = vmatprep.mubr.f32.mxu1 %v1470_v1  ;;  %v223_v1 = vld [vmem:[%s1480_s16 + $0x268] sm:$0xff]  ;;  %v1277_v57 = vpack.c.bf16 %v254_v49, %v246_v48  ;;  %v328_v48 = vld [vmem:[%s1480_s16 + $0x5b0] sm:$0xff]  ;;  %v1367_v49 = vpack.c.bf16 %v337_v0, %v329_v41 }
  0x62   : > { %1258 = vmatpush1.bf16.msra.mxu0 %v1257_v59  ;;  %v1267_v22 = vpack.c.bf16 %v223_v1, %v215_v17  ;;  %v1279_v59 = vpack.c.bf16 %v271_v54, %v263_v53  ;;  %v297_v17 = vld [vmem:[%s1480_s16 + $0x4b8] sm:$0xff]  ;;  %v1369_v56 = vpack.c.bf16 %v336_v50, %v328_v48  ;;  %v416_v48 = vld [vmem:[%s1480_s16 + $0x870] sm:$0xff]  ;;  %v431_v50 = vld [vmem:[%s1480_s16 + $0x8e8] sm:$0xff] }
  0x63   : > { %1330 = vmatpush1.bf16.msra.mxu1 %v1329_v60  ;;  %1260 = vmatprep.subr.bf16.mxu0 %v1259_v61  ;;  %v262_v60 = vld [vmem:[%s1480_s16 + $0x3a0] sm:$0xff]  ;;  %v305_v1 = vld [vmem:[%s1480_s16 + $0x4f8] sm:$0xff] }
  0x64   : > { %1332 = vmatprep.subr.bf16.mxu1 %v1331_v3  ;;  %v270_v61 = vld [vmem:[%s1480_s16 + $0x3e0] sm:$0xff]  ;;  %v279_v3 = vld [vmem:[%s1480_s16 + $0x428] sm:$0xff]  ;;  %v1359_v24 = vpack.c.bf16 %v305_v1, %v297_v17  ;;  %v345_v53 = vld [vmem:[%s1480_s16 + $0x638] sm:$0xff] }
  0x65   : > { %v1281_v7 = vpack.c.bf16 %v270_v61, %v262_v60  ;;  %v353_v54 = vld [vmem:[%s1480_s16 + $0x678] sm:$0xff]  ;;  %v344_v60 = vld [vmem:[%s1480_s16 + $0x630] sm:$0xff] }
  0x66   : > { %1262 = vmatpush1.bf16.msra.mxu0 %v1261_v9  ;;  %v1283_v9 = vpack.c.bf16 %v287_v4, %v279_v3  ;;  %v1371_v61 = vpack.c.bf16 %v353_v54, %v345_v53  ;;  %v361_v3 = vld [vmem:[%s1480_s16 + $0x6b8] sm:$0xff]  ;;  %v1373_v6 = vpack.c.bf16 %v352_v62, %v344_v60  ;;  %v432_v60 = vld [vmem:[%s1480_s16 + $0x8f0] sm:$0xff] }
  0x67   : > { %1334 = vmatpush1.bf16.msra.mxu1 %v1333_v10  ;;  %1264 = vmatprep.subr.bf16.mxu0 %v1263_v11  ;;  %v278_v10 = vld [vmem:[%s1480_s16 + $0x420] sm:$0xff]  ;;  %v369_v4 = vld [vmem:[%s1480_s16 + $0x6f8] sm:$0xff] }
  0x68   : > { %1336 = vmatprep.subr.bf16.mxu1 %v1335_v15  ;;  %v286_v11 = vld [vmem:[%s1480_s16 + $0x460] sm:$0xff]  ;;  %v295_v15 = vld [vmem:[%s1480_s16 + $0x4a8] sm:$0xff] }
  0x69   : > { %v1285_v18 = vpack.c.bf16 %v286_v11, %v278_v10  ;;  %v360_v10 = vld [vmem:[%s1480_s16 + $0x6b0] sm:$0xff]  ;;  %v1375_v11 = vpack.c.bf16 %v369_v4, %v361_v3 }
  0x6a   : > { %1266 = vmatpush1.bf16.msra.mxu0 %v1265_v20  ;;  %v1287_v20 = vpack.c.bf16 %v303_v16, %v295_v15  ;;  %v377_v15 = vld [vmem:[%s1480_s16 + $0x738] sm:$0xff]  ;;  %v1377_v1 = vpack.c.bf16 %v368_v12, %v360_v10 }
  0x6b   : > { %1338 = vmatpush1.bf16.msra.mxu1 %v1337_v21  ;;  %1268 = vmatprep.subr.bf16.mxu0 %v1267_v22  ;;  %v294_v21 = vld [vmem:[%s1480_s16 + $0x4a0] sm:$0xff]  ;;  %v385_v16 = vld [vmem:[%s1480_s16 + $0x778] sm:$0xff] }
  0x6c   : > { %1340 = vmatprep.subr.bf16.mxu1 %v1339_v26  ;;  %v302_v22 = vld [vmem:[%s1480_s16 + $0x4e0] sm:$0xff]  ;;  %v311_v26 = vld [vmem:[%s1480_s16 + $0x528] sm:$0xff] }
  0x6d   : > { %v1289_v30 = vpack.c.bf16 %v302_v22, %v294_v21  ;;  %v376_v21 = vld [vmem:[%s1480_s16 + $0x730] sm:$0xff]  ;;  %v1379_v22 = vpack.c.bf16 %v385_v16, %v377_v15 }
  0x6e   : > { %1270 = vmatpush1.bf16.msra.mxu0 %v1269_v32  ;;  %v1291_v32 = vpack.c.bf16 %v319_v27, %v311_v26  ;;  %v393_v26 = vld [vmem:[%s1480_s16 + $0x7b8] sm:$0xff]  ;;  %v1381_v29 = vpack.c.bf16 %v384_v23, %v376_v21 }
  0x6f   : > { %1342 = vmatpush1.bf16.msra.mxu1 %v1341_v33  ;;  %1272 = vmatprep.subr.bf16.mxu0 %v1271_v34  ;;  %v310_v33 = vld [vmem:[%s1480_s16 + $0x520] sm:$0xff]  ;;  %v401_v27 = vld [vmem:[%s1480_s16 + $0x7f8] sm:$0xff] }
  0x70   : > { %1344 = vmatprep.subr.bf16.mxu1 %v1343_v38  ;;  %v318_v34 = vld [vmem:[%s1480_s16 + $0x560] sm:$0xff]  ;;  %v327_v38 = vld [vmem:[%s1480_s16 + $0x5a8] sm:$0xff] }
  0x71   : > { %v1293_v42 = vpack.c.bf16 %v318_v34, %v310_v33  ;;  %v392_v33 = vld [vmem:[%s1480_s16 + $0x7b0] sm:$0xff]  ;;  %v1383_v34 = vpack.c.bf16 %v401_v27, %v393_v26 }
  0x72   : > { %1274 = vmatpush1.bf16.msra.mxu0 %v1273_v44  ;;  %v1295_v44 = vpack.c.bf16 %v335_v39, %v327_v38  ;;  %v409_v38 = vld [vmem:[%s1480_s16 + $0x838] sm:$0xff]  ;;  %v1385_v0 = vpack.c.bf16 %v400_v35, %v392_v33 }
  0x73   : > { %1346 = vmatpush1.bf16.msra.mxu1 %v1345_v45  ;;  %1276 = vmatprep.subr.bf16.mxu0 %v1275_v47  ;;  %v326_v45 = vld [vmem:[%s1480_s16 + $0x5a0] sm:$0xff]  ;;  %v417_v39 = vld [vmem:[%s1480_s16 + $0x878] sm:$0xff] }
  0x74   : > { %1348 = vmatprep.subr.bf16.mxu1 %v1347_v51  ;;  %v334_v47 = vld [vmem:[%s1480_s16 + $0x5e0] sm:$0xff]  ;;  %v343_v51 = vld [vmem:[%s1480_s16 + $0x628] sm:$0xff] }
  0x75   : > { %v1297_v55 = vpack.c.bf16 %v334_v47, %v326_v45  ;;  %v408_v45 = vld [vmem:[%s1480_s16 + $0x830] sm:$0xff]  ;;  %v1387_v47 = vpack.c.bf16 %v417_v39, %v409_v38 }
  0x76   : > { %1278 = vmatpush1.bf16.msra.mxu0 %v1277_v57  ;;  %v1299_v57 = vpack.c.bf16 %v351_v52, %v343_v51  ;;  %v425_v51 = vld [vmem:[%s1480_s16 + $0x8b8] sm:$0xff]  ;;  %v1389_v54 = vpack.c.bf16 %v416_v48, %v408_v45 }
  0x77   : > { %1350 = vmatpush1.bf16.msra.mxu1 %v1349_v58  ;;  %1280 = vmatprep.subr.bf16.mxu0 %v1279_v59  ;;  %v342_v58 = vld [vmem:[%s1480_s16 + $0x620] sm:$0xff]  ;;  %v433_v52 = vld [vmem:[%s1480_s16 + $0x8f8] sm:$0xff] }
  0x78   : > { %1352 = vmatprep.subr.bf16.mxu1 %v1351_v63  ;;  %v350_v59 = vld [vmem:[%s1480_s16 + $0x660] sm:$0xff]  ;;  %v359_v63 = vld [vmem:[%s1480_s16 + $0x6a8] sm:$0xff] }
  0x79   : > { %v1301_v5 = vpack.c.bf16 %v350_v59, %v342_v58  ;;  %v1391_v58 = vpack.c.bf16 %v433_v52, %v425_v51  ;;  %v424_v59 = vld [vmem:[%s1480_s16 + $0x8b0] sm:$0xff] }
  0x7a   : > { %1282 = vmatpush1.bf16.msra.mxu0 %v1281_v7  ;;  %v1303_v7 = vpack.c.bf16 %v367_v2, %v359_v63  ;;  %v1393_v63 = vpack.c.bf16 %v432_v60, %v424_v59 }
  0x7b   : > { %1354 = vmatpush1.bf16.msra.mxu1 %v1353_v8  ;;  %1284 = vmatprep.subr.bf16.mxu0 %v1283_v9  ;;  %v358_v8 = vld [vmem:[%s1480_s16 + $0x6a0] sm:$0xff] }
  0x7c   : > { %1356 = vmatprep.subr.bf16.mxu1 %v1355_v13  ;;  %v366_v9 = vld [vmem:[%s1480_s16 + $0x6e0] sm:$0xff]  ;;  %v375_v13 = vld [vmem:[%s1480_s16 + $0x728] sm:$0xff] }
  0x7d   : > { %v1305_v17 = vpack.c.bf16 %v366_v9, %v358_v8 }
  0x7e   : > { %1286 = vmatpush1.bf16.msra.mxu0 %v1285_v18  ;;  %v1307_v18 = vpack.c.bf16 %v383_v14, %v375_v13 }
  0x7f   : > { %1358 = vmatpush1.bf16.msra.mxu1 %v1357_v19  ;;  %1288 = vmatprep.subr.bf16.mxu0 %v1287_v20  ;;  %v374_v19 = vld [vmem:[%s1480_s16 + $0x720] sm:$0xff] }
  0x80   : > { %1360 = vmatprep.subr.bf16.mxu1 %v1359_v24  ;;  %v382_v20 = vld [vmem:[%s1480_s16 + $0x760] sm:$0xff]  ;;  %v391_v24 = vld [vmem:[%s1480_s16 + $0x7a8] sm:$0xff] }
  0x81   : > { %v1309_v28 = vpack.c.bf16 %v382_v20, %v374_v19 }
  0x82   : > { %1290 = vmatpush1.bf16.msra.mxu0 %v1289_v30  ;;  %v1311_v30 = vpack.c.bf16 %v399_v25, %v391_v24 }
  0x83   : > { %1362 = vmatpush1.bf16.msra.mxu1 %v1361_v31  ;;  %1292 = vmatprep.subr.bf16.mxu0 %v1291_v32  ;;  %v390_v31 = vld [vmem:[%s1480_s16 + $0x7a0] sm:$0xff] }
  0x84   : > { %1364 = vmatprep.subr.bf16.mxu1 %v1363_v36  ;;  %v398_v32 = vld [vmem:[%s1480_s16 + $0x7e0] sm:$0xff]  ;;  %v407_v36 = vld [vmem:[%s1480_s16 + $0x828] sm:$0xff] }
  0x85   : > { %v1313_v41 = vpack.c.bf16 %v398_v32, %v390_v31 }
  0x86   : > { %1294 = vmatpush1.bf16.msra.mxu0 %v1293_v42  ;;  %v1315_v42 = vpack.c.bf16 %v415_v37, %v407_v36 }
  0x87   : > { %1366 = vmatpush1.bf16.msra.mxu1 %v1365_v43  ;;  %1296 = vmatprep.subr.bf16.mxu0 %v1295_v44  ;;  %v406_v43 = vld [vmem:[%s1480_s16 + $0x820] sm:$0xff] }
  0x88   : > { %1368 = vmatprep.subr.bf16.mxu1 %v1367_v49  ;;  %v414_v44 = vld [vmem:[%s1480_s16 + $0x860] sm:$0xff]  ;;  %v423_v49 = vld [vmem:[%s1480_s16 + $0x8a8] sm:$0xff] }
  0x89   : > { %v1317_v53 = vpack.c.bf16 %v414_v44, %v406_v43 }
  0x8a   : > { %1298 = vmatpush1.bf16.msra.mxu0 %v1297_v55  ;;  %v1319_v55 = vpack.c.bf16 %v431_v50, %v423_v49 }
  0x8b   : > { %1370 = vmatpush1.bf16.msra.mxu1 %v1369_v56  ;;  %1300 = vmatprep.subr.bf16.mxu0 %v1299_v57  ;;  %v422_v56 = vld [vmem:[%s1480_s16 + $0x8a0] sm:$0xff] }
  0x8c   : > { %1372 = vmatprep.subr.bf16.mxu1 %v1371_v61  ;;  %v430_v57 = vld [vmem:[%s1480_s16 + $0x8e0] sm:$0xff] }
  0x8d   : > { %v1430_v61 = vld [vmem:[%s1802_s1] sm:$0x77]  ;;  %v1321_v62 = vpack.c.bf16 %v430_v57, %v422_v56 }
  0x8e   : > { %1302 = vmatpush1.bf16.msra.mxu0 %v1301_v5 }
  0x8f   : > { %1374 = vmatpush1.bf16.msra.mxu1 %v1373_v6  ;;  %1304 = vmatprep.subr.bf16.mxu0 %v1303_v7 }
  0x90   : > { %1376 = vmatprep.subr.bf16.mxu1 %v1375_v11 }
  0x92   : > { %1306 = vmatpush1.bf16.msra.mxu0 %v1305_v17 }
  0x93   : > { %1378 = vmatpush1.bf16.msra.mxu1 %v1377_v1  ;;  %1308 = vmatprep.subr.bf16.mxu0 %v1307_v18 }
  0x94   : > { %1380 = vmatprep.subr.bf16.mxu1 %v1379_v22 }
  0x96   : > { %1310 = vmatpush1.bf16.msra.mxu0 %v1309_v28 }
  0x97   : > { %1382 = vmatpush1.bf16.msra.mxu1 %v1381_v29  ;;  %1312 = vmatprep.subr.bf16.mxu0 %v1311_v30 }
  0x98   : > { %1384 = vmatprep.subr.bf16.mxu1 %v1383_v34 }
  0x9a   : > { %1314 = vmatpush1.bf16.msra.mxu0 %v1313_v41 }
  0x9b   : > { %1386 = vmatpush1.bf16.msra.mxu1 %v1385_v0  ;;  %1316 = vmatprep.subr.bf16.mxu0 %v1315_v42 }
  0x9c   : > { %1388 = vmatprep.subr.bf16.mxu1 %v1387_v47 }
  0x9d   : > { %790 = vmatmul.mubr.f32.vlgmr.msra.gmra.mrb[2].mxu0 %v1430_v61 }
  0x9e   : > { %932 = vmatmul.mubr.f32.vlgmr.msra.gmra.mrb[2].mxu1 %v1430_v61  ;;  %1318 = vmatpush1.bf16.msra.mxu0 %v1317_v53 }
  0x9f   : > { %1390 = vmatpush1.bf16.msra.mxu1 %v1389_v54  ;;  %1320 = vmatprep.subr.bf16.mxu0 %v1319_v55 }
  0xa0   : > { %1392 = vmatprep.subr.bf16.mxu1 %v1391_v58  ;;  %860 = vmatprep.mubr.f32.mxu0 %v1439_v40 }
  0xa1   : > { %1002 = vmatprep.mubr.f32.mxu1 %v1439_v40 }
  0xa2   : > { %1322 = vmatpush1.bf16.msra.mxu0 %v1321_v62 }
  0xa3   : > { %1394 = vmatpush1.bf16.msra.mxu1 %v1393_v63 }
  0xa5   : > { %1102 = vmatmul.mubr.msk.f32.vlgmr.msra.gmra.mrb[2].mxu0 %vm438_vm0, %v1645_v46 }
  0xa6   : > { %1103 = vmatmul.mubr.msk.f32.vlgmr.msra.gmra.mrb[2].mxu1 %vm438_vm0, %v1645_v46 }
 0x130   : > { %v578_v2 = vpop.f32.mrb[0].mxu0 }
 0x131   : > { %1414 = vtanh.f32 %v578_v2  ;;  %v720_v3 = vpop.f32.mrb[0].mxu1  ;;  %v580_v4 = vpop.f32.mrb[1].mxu0 }
 0x132   : > { %1416 = vtanh.f32 %v720_v3  ;;  %v722_v5 = vpop.f32.mrb[1].mxu1 }
 0x133   : > { %1418 = vtanh.f32 %v580_v4 }
 0x134   : > { %1420 = vtanh.f32 %v722_v5 }
 0x13b   : > { %v1415_v6 = vpop.eup %1414 }
 0x13c   : > { %v1417_v7 = vpop.eup %1416 }
 0x13d   : > { %v1419_v40 = vpop.eup %1418 }
 0x13e   : > { %v1421_v8 = vpop.eup %1420  ;;  %v1025_v9 = vcombine.low %v1415_v6, %v1419_v40 }
 0x13f   : > { %v1026_v10 = vcombine.low %v1417_v7, %v1421_v8 }
 0x140   : > { %1033 = vst [vmem:[%s143_s24] sm:$0x77] %v1025_v9 }
 0x141   : > { %1034 = vst [vmem:[%s143_s24 + $0x8] sm:$0x77] %v1026_v10 }
 0x178   : > { %v862_v46 = vpop.f32.mrb[2].mxu0 }
 0x179   : > { %1422 = vtanh.f32 %v862_v46  ;;  %v1004_v11 = vpop.f32.mrb[2].mxu1  ;;  %v864_v12 = vpop.f32.mrb[3].mxu0 }
 0x17a   : > { %1424 = vtanh.f32 %v1004_v11  ;;  %v1006_v13 = vpop.f32.mrb[3].mxu1 }
 0x17b   : > { %1426 = vtanh.f32 %v864_v12 }
 0x17c   : > { %1428 = vtanh.f32 %v1006_v13 }
 0x183   : > { %v1423_v14 = vpop.eup %1422 }
 0x184   : > { %v1425_v15 = vpop.eup %1424 }
 0x185   : > { %v1427_v16 = vpop.eup %1426 }
 0x186   : > { %v1429_v17 = vpop.eup %1428  ;;  %v1027_v1 = vcombine.low %v1423_v14, %v1427_v16 }
 0x187   : > { %v1028_v18 = vcombine.low %v1425_v15, %v1429_v17 }
 0x188   : > { %1035 = vst [vmem:[%s143_s24 + $0x10] sm:$0x77] %v1027_v1 }
 0x189   : > { %1036 = vst [vmem:[%s143_s24 + $0x18] sm:$0x77] %v1028_v18 }
 0x18a PF: > { %s12_s9 = sadd.s32 1, %s1437_s9  }
 0x18b   : > { %p9_p4 = scmp.ge.s32.totalorder %s12_s9, 4  }
 0x18d   :  { %11 = sbr.rel (!%p9_p4) target bundleno = 1 (0x1), region = 58 }

</bundles_post_ra>
